<compile_context>
chip_gen: v5e
topology: v5e:2x2
jax: 0.10.0
libtpu: 0.0.40
codegen_flags: <defaults>
</compile_context>

<pallas_src>
import numpy as np
import jax
import jax.numpy as jnp
from jax.experimental import pallas as pl
from jax.experimental.pallas import tpu as pltpu

# ---------------- configuration (small, consistent with the module) --------
B = 2
H_IMG = 8
W_IMG = 8
N = H_IMG * W_IMG              # 64 tokens
DIM = 64                       # embedding dim
NUM_HEADS = 4
HEAD_DIM = DIM // NUM_HEADS    # 16
WS = 4                         # window size (ws)
WW = WS * WS                   # 16 tokens per window
H_BLK = H_IMG // WS            # 2
W_BLK = W_IMG // WS            # 2
NW = H_BLK * W_BLK             # 4 windows per image
RPE_RATIO = 1.0
RPE_DIM = int(HEAD_DIM * RPE_RATIO)   # 16
HALF = RPE_DIM // 2                   # 8
SCALE = HEAD_DIM ** -0.5
THETA = 10000.0
NEG_INF = -1e30

assert H_IMG % WS == 0 and W_IMG % WS == 0
# TODO(synk): the reference pads H/W up to a multiple of ws; test shapes are divisible,
# so the (wrapper-side) padding path is not implemented here.


# ---------------- RoPE tables (match precompute_freqs_cis_2d exactly) ------
def rope_angles():
    """(WW, HALF) rotation angles for positions inside one ws x ws window."""
    pos = np.arange(WW)
    x_pos = (pos % WS).astype(np.float64)
    y_pos = (pos // WS).astype(np.float64)
    freqs = 1.0 / THETA ** (np.arange(0, RPE_DIM, 4)[: RPE_DIM // 4].astype(np.float64)
                            / RPE_DIM)
    xf = np.outer(x_pos, freqs)
    yf = np.outer(y_pos, freqs)
    # torch: cat([x_cis[..., None], y_cis[..., None]], -1).reshape(WW, -1)
    return np.stack([xf, yf], axis=-1).reshape(WW, HALF)


def head_channel_perms():
    """De-interleave permutation of one head's channels ([re | im | rest]) and the
    re<->im swapped partner used to express the rotation as two FMAs."""
    deint, swap = [], []
    for j in range(HEAD_DIM):
        if j < HALF:                 # re slot of rotary pair j
            deint.append(2 * j)
            swap.append(2 * j + 1)
        elif j < RPE_DIM:            # im slot of rotary pair j-HALF
            c = j - HALF
            deint.append(2 * c + 1)
            swap.append(2 * c)
        else:                        # non-rotary channel (rpe_ratio < 1)
            deint.append(j)
            swap.append(j)
    return np.array(deint), np.array(swap)


def rope_tables(rows):
    """cos / signed-sin multiplier tables (rows, DIM) for the de-interleaved layout."""
    ang = rope_angles()
    cos, sin = np.cos(ang), np.sin(ang)
    csc_h = np.ones((WW, HEAD_DIM), np.float64)
    css_h = np.zeros((WW, HEAD_DIM), np.float64)
    csc_h[:, :HALF] = cos
    css_h[:, :HALF] = -sin                       # out_re = re*cos - im*sin
    csc_h[:, HALF:RPE_DIM] = cos
    css_h[:, HALF:RPE_DIM] = sin                 # out_im = im*cos + re*sin
    csc = np.tile(np.tile(csc_h, (1, NUM_HEADS)), (rows // WW, 1))
    css = np.tile(np.tile(css_h, (1, NUM_HEADS)), (rows // WW, 1))
    return csc.astype(np.float32), css.astype(np.float32)


def window_bias(rows):
    """Additive score bias: 0 inside the ws*ws window, -1e30 outside (also keeps the
    batch elements of a flattened batch block separate)."""
    r = np.arange(rows)
    same = (r[:, None] // WW) == (r[None, :] // WW)
    return np.where(same, 0.0, NEG_INF).astype(np.float32)


# ---------------- Pallas kernel --------------------------------------------
def group_attn_kernel(x_ref, w_ref, csc_ref, css_ref, bias_ref, wp_ref, bp_ref,
                      o_ref, raw_s, work_s):
    rows = x_ref.shape[0]

    # 1) fused projection [q | q_swap | k | k_swap | v]; the attention scale is
    #    already folded into the q / q_swap columns on the host.
    raw_s[...] = jnp.dot(x_ref[...], w_ref[...], preferred_element_type=jnp.float32)

    # 2) RoPE for all heads at once: two FMAs on (rows, DIM) slabs.
    csc = csc_ref[...]
    css = css_ref[...]
    work_s[:, 0:DIM] = raw_s[:, 0:DIM] * csc + raw_s[:, DIM:2 * DIM] * css
    work_s[:, DIM:2 * DIM] = (raw_s[:, 2 * DIM:3 * DIM] * csc
                              + raw_s[:, 3 * DIM:4 * DIM] * css)

    # 3) per-head windowed attention.  Scores for the whole batch block are one
    #    (rows, rows) matmul; the additive bias restricts the softmax to each window.
    #    Intermediates go through VMEM scratch so the unrolled head loop keeps vreg
    #    live ranges short (each head only writes its own 16-column output slice).
    bias = bias_ref[...]                                     # loaded once, reused per head
    for h in range(NUM_HEADS):
        lo, hi = h * HEAD_DIM, (h + 1) * HEAD_DIM
        q_h = work_s[:, lo:hi]                               # (rows, 16) rotated+scaled
        k_h = work_s[:, DIM + lo:DIM + hi]                   # (rows, 16) rotated
        v_h = raw_s[:, 4 * DIM + lo:4 * DIM + hi]            # (rows, 16)
        s = jax.lax.dot_general(q_h, k_h, (((1,), (1,)), ((), ())),
                                preferred_element_type=jnp.float32)
        s = s + bias                                         # window mask
        m = jnp.max(s, axis=-1, keepdims=True)
        p = jnp.exp(s - m)                                   # masked entries -> exactly 0
        # approx=True is the EUP fast path; kept exact so the reference tolerance holds.
        r = pl.reciprocal(jnp.sum(p, axis=-1, keepdims=True), approx=False)
        work_s[:, 2 * DIM + lo:2 * DIM + hi] = (
            jnp.dot(p, v_h, preferred_element_type=jnp.float32) * r)

    # 4) output projection + lane-dense (rows//2, 128) store: the two row halves are
    #    packed side by side and unpacked with a free reshape outside the kernel.
    y = jnp.dot(work_s[:, 2 * DIM:3 * DIM], wp_ref[...],
                preferred_element_type=jnp.float32) + bp_ref[...]
    o_ref[...] = jnp.concatenate([y[0:rows // 2, :], y[rows // 2:rows, :]], axis=1)


# ---------------- wrapper ----------------------------------------------------
def _batch_block():
    """Batch elements per grid step.  Dual-TensorCore chips (v4 / v5p / v7x) keep the
    batch on a parallel grid so both cores get work; single-TC chips (v5e / v6e)
    flatten the whole batch into one grid step."""
    try:
        kind = jax.devices()[0].device_kind.lower()
    except Exception:
        return B
    if any(tag in kind for tag in ("v4", "v5p", "v7", "7x")):
        return 1
    return B


def group_attention_pallas(x, wqkv, wproj, bproj, batch_block=None):
    bb = _batch_block() if batch_block is None else batch_block
    assert B % bb == 0
    rows = bb * N
    n_blocks = B // bb

    # ---- glue: window-major token order (matches the reference reshape/transpose) --
    x_win = x.reshape(B, H_BLK, WS, W_BLK, WS, DIM).transpose(0, 1, 3, 2, 4, 5)
    x_flat = x_win.reshape(B * N, DIM)

    # ---- glue: fused, permuted, pre-scaled projection weight -----------------------
    deint, swap = head_channel_perms()
    perm_d = np.concatenate([h * HEAD_DIM + deint for h in range(NUM_HEADS)])
    perm_s = np.concatenate([h * HEAD_DIM + swap for h in range(NUM_HEADS)])
    wq = wqkv[:, 0:DIM]
    wk = wqkv[:, DIM:2 * DIM]
    wv = wqkv[:, 2 * DIM:3 * DIM]
    w_fused = jnp.concatenate([
        wq[:, perm_d] * SCALE,     # q   (de-interleaved, attention scale folded in)
        wq[:, perm_s] * SCALE,     # q with re<->im swapped (rotation partner)
        wk[:, perm_d],             # k
        wk[:, perm_s],             # k swapped
        wv,                        # v (natural layout)
    ], axis=1)                     # (DIM, 5*DIM)

    csc, css = rope_tables(rows)
    bias = window_bias(rows)

    full = lambda shape: pl.BlockSpec(shape, lambda i: (0,) * len(shape))

    out = pl.pallas_call(
        group_attn_kernel,
        out_shape=jax.ShapeDtypeStruct((B * N // 2, 2 * DIM), jnp.float32),
        grid=(n_blocks,),
        in_specs=[
            pl.BlockSpec((rows, DIM), lambda i: (i, 0)),   # x (window-major rows)
            full((DIM, 5 * DIM)),                          # fused qkv weight
            full((rows, DIM)),                             # rope cos table
            full((rows, DIM)),                             # rope signed-sin table
            full((rows, rows)),                            # window mask bias
            full((DIM, DIM)),                              # wproj
            full((1, DIM)),                                # bproj
        ],
        out_specs=pl.BlockSpec((rows // 2, 2 * DIM), lambda i: (i, 0)),
        scratch_shapes=[
            pltpu.VMEM((rows, 5 * DIM), jnp.float32),      # raw fused projection
            pltpu.VMEM((rows, 3 * DIM), jnp.float32),      # [q_rot | k_rot | attn out]
        ],
        compiler_params=pltpu.CompilerParams(dimension_semantics=("parallel",)),
    )(x_flat, w_fused, jnp.asarray(csc), jnp.asarray(css), jnp.asarray(bias),
      wproj, bproj.reshape(1, DIM))

    # ---- glue: undo the lane-dense packing and the window permutation --------------
    out = out.reshape(n_blocks, rows // 2, 2, DIM).transpose(0, 2, 1, 3).reshape(B, N, DIM)
    out = out.reshape(B, H_BLK, W_BLK, WS, WS, DIM).transpose(0, 1, 3, 2, 4, 5)
    return out.reshape(B, N, DIM)


# ---------------- pure-JAX reference (mirrors the PyTorch forward) ----------
def group_attention_reference(x, wqkv, wproj, bproj):
    xw = x.reshape(B, H_BLK, WS, W_BLK, WS, DIM).transpose(0, 1, 3, 2, 4, 5)
    qkv = xw @ wqkv                                                       # (..., 3C)
    qkv = qkv.reshape(B, NW, WW, 3, NUM_HEADS, HEAD_DIM).transpose(3, 0, 2, 1, 4, 5)
    q, k, v = qkv[0], qkv[1], qkv[2]                                      # (B,WW,NW,H,HD)
    q = q.reshape(B, WW, NW * NUM_HEADS, HEAD_DIM)
    k = k.reshape(B, WW, NW * NUM_HEADS, HEAD_DIM)
    v = v.reshape(B, WW, NW * NUM_HEADS, HEAD_DIM)

    ang = rope_angles()
    cos = jnp.asarray(np.cos(ang), jnp.float32)[None, :, None, :]
    sin = jnp.asarray(np.sin(ang), jnp.float32)[None, :, None, :]

    def rot(t):
        tr = t[..., :RPE_DIM]
        re, im = tr[..., 0::2], tr[..., 1::2]
        o = jnp.stack([re * cos - im * sin, re * sin + im * cos], axis=-1).reshape(tr.shape)
        if RPE_DIM < HEAD_DIM:
            o = jnp.concatenate([o, t[..., RPE_DIM:]], axis=-1)
        return o

    q, k = rot(q), rot(k)
    q = q.transpose(0, 2, 1, 3)                                           # (B, NW*H, WW, HD)
    k = k.transpose(0, 2, 1, 3)
    v = v.transpose(0, 2, 1, 3)
    attn = (q @ jnp.swapaxes(k, -1, -2)) * SCALE
    attn = jax.nn.softmax(attn, axis=-1)
    out = attn @ v                                                        # (B, NW*H, WW, HD)
    out = out.reshape(B, NW, NUM_HEADS, WW, HEAD_DIM).transpose(0, 1, 3, 2, 4)
    out = out.reshape(B, H_BLK, W_BLK, WS, WS, DIM).transpose(0, 1, 3, 2, 4, 5)
    out = out.reshape(B, N, DIM)
    return out @ wproj + bproj


# ---------------- main -------------------------------------------------------
if __name__ == "__main__":
    key = jax.random.PRNGKey(0)
    kx, kqkv, kp, kb = jax.random.split(key, 4)

    x = jax.random.normal(kx, (B, N, DIM), dtype=jnp.float32)
    # Linear weights stored (in, out); qkv has no bias (qkv_bias=False default).
    wqkv = jax.random.normal(kqkv, (DIM, 3 * DIM), dtype=jnp.float32) * 0.05
    wproj = jax.random.normal(kp, (DIM, DIM), dtype=jnp.float32) * 0.05
    bproj = jax.random.normal(kb, (DIM,), dtype=jnp.float32) * 0.05

    out = jax.block_until_ready(group_attention_pallas(x, wqkv, wproj, bproj))
    ref = jax.block_until_ready(group_attention_reference(x, wqkv, wproj, bproj))
    np.testing.assert_allclose(np.asarray(out), np.asarray(ref), rtol=5e-4, atol=5e-4)

    print("KERNEL_OK")
</pallas_src>

<mosaic_0001>
module attributes {stable_mosaic.version = 11 : i64} {
  func.func @group_attn_kernel(%arg0: i32, %arg1: memref<128x64xf32, #tpu.memory_space<vmem>>, %arg2: memref<64x320xf32, #tpu.memory_space<vmem>>, %arg3: memref<128x64xf32, #tpu.memory_space<vmem>>, %arg4: memref<128x64xf32, #tpu.memory_space<vmem>>, %arg5: memref<128x128xf32, #tpu.memory_space<vmem>>, %arg6: memref<64x64xf32, #tpu.memory_space<vmem>>, %arg7: memref<1x64xf32, #tpu.memory_space<vmem>>, %arg8: memref<64x128xf32, #tpu.memory_space<vmem>>, %arg9: memref<128x320xf32, #tpu.memory_space<vmem>>, %arg10: memref<128x192xf32, #tpu.memory_space<vmem>>) attributes {dimension_semantics = [#tpu.dimension_semantics<parallel>], iteration_bounds = array<i64: 1>, scalar_prefetch = 0 : i64, scratch_operands = 2 : i64, tpu.core_type = #tpu.core_type<tc>, window_params = [{transform_indices = @transform_0, window_bounds = array<i64: 128, 64>}, {pipeline_mode = #tpu.pipeline_mode<synchronous>, transform_indices = @transform_1, window_bounds = array<i64: 64, 320>}, {pipeline_mode = #tpu.pipeline_mode<synchronous>, transform_indices = @transform_2, window_bounds = array<i64: 128, 64>}, {pipeline_mode = #tpu.pipeline_mode<synchronous>, transform_indices = @transform_3, window_bounds = array<i64: 128, 64>}, {pipeline_mode = #tpu.pipeline_mode<synchronous>, transform_indices = @transform_4, window_bounds = array<i64: 128, 128>}, {pipeline_mode = #tpu.pipeline_mode<synchronous>, transform_indices = @transform_5, window_bounds = array<i64: 64, 64>}, {pipeline_mode = #tpu.pipeline_mode<synchronous>, transform_indices = @transform_6, window_bounds = array<i64: 1, 64>}, {transform_indices = @transform_7, window_bounds = array<i64: 64, 128>}]} {
    %c0 = arith.constant 0 : index
    %c0_0 = arith.constant 0 : index
    %0 = vector.load %arg1[%c0, %c0_0] : memref<128x64xf32, #tpu.memory_space<vmem>>, vector<128x64xf32>
    %c0_1 = arith.constant 0 : index
    %c0_2 = arith.constant 0 : index
    %1 = vector.load %arg2[%c0_1, %c0_2] : memref<64x320xf32, #tpu.memory_space<vmem>>, vector<64x320xf32>
    %cst = arith.constant dense<0.000000e+00> : vector<128x320xf32>
    %2 = tpu.matmul %0, %1, %cst {dimension_numbers = #tpu.dot_dimension_numbers<[1], [0], [0], [1], [0, 0, 1, 1], [], []>} : vector<128x64xf32>, vector<64x320xf32>, vector<128x320xf32> -> vector<128x320xf32>
    %c0_3 = arith.constant 0 : index
    %c0_4 = arith.constant 0 : index
    %3 = vector.load %arg9[%c0_3, %c0_4] : memref<128x320xf32, #tpu.memory_space<vmem>>, vector<128x320xf32>
    tpu.vector_store %arg9[%c0_3, %c0_4], %2 {strides = array<i32>} : memref<128x320xf32, #tpu.memory_space<vmem>>, vector<128x320xf32>,
    %c0_5 = arith.constant 0 : index
    %c0_6 = arith.constant 0 : index
    %4 = vector.load %arg3[%c0_5, %c0_6] : memref<128x64xf32, #tpu.memory_space<vmem>>, vector<128x64xf32>
    %c0_7 = arith.constant 0 : index
    %c0_8 = arith.constant 0 : index
    %5 = vector.load %arg4[%c0_7, %c0_8] : memref<128x64xf32, #tpu.memory_space<vmem>>, vector<128x64xf32>
    %c0_9 = arith.constant 0 : index
    %c0_10 = arith.constant 0 : index
    %6 = vector.load %arg9[%c0_9, %c0_10] : memref<128x320xf32, #tpu.memory_space<vmem>>, vector<128x64xf32>
    %7 = arith.mulf %6, %4 : vector<128x64xf32>
    %c0_11 = arith.constant 0 : index
    %c64 = arith.constant 64 : index
    %8 = vector.load %arg9[%c0_11, %c64] : memref<128x320xf32, #tpu.memory_space<vmem>>, vector<128x64xf32>
    %9 = arith.mulf %8, %5 : vector<128x64xf32>
    %10 = arith.addf %7, %9 : vector<128x64xf32>
    %c0_12 = arith.constant 0 : index
    %c0_13 = arith.constant 0 : index
    %11 = vector.load %arg10[%c0_12, %c0_13] : memref<128x192xf32, #tpu.memory_space<vmem>>, vector<128x64xf32>
    tpu.vector_store %arg10[%c0_12, %c0_13], %10 {strides = array<i32>} : memref<128x192xf32, #tpu.memory_space<vmem>>, vector<128x64xf32>,
    %c0_14 = arith.constant 0 : index
    %c128 = arith.constant 128 : index
    %12 = vector.load %arg9[%c0_14, %c128] : memref<128x320xf32, #tpu.memory_space<vmem>>, vector<128x64xf32>
    %13 = arith.mulf %12, %4 : vector<128x64xf32>
    %c0_15 = arith.constant 0 : index
    %c192 = arith.constant 192 : index
    %14 = vector.load %arg9[%c0_15, %c192] : memref<128x320xf32, #tpu.memory_space<vmem>>, vector<128x64xf32>
    %15 = arith.mulf %14, %5 : vector<128x64xf32>
    %16 = arith.addf %13, %15 : vector<128x64xf32>
    %c0_16 = arith.constant 0 : index
    %c64_17 = arith.constant 64 : index
    %17 = vector.load %arg10[%c0_16, %c64_17] : memref<128x192xf32, #tpu.memory_space<vmem>>, vector<128x64xf32>
    tpu.vector_store %arg10[%c0_16, %c64_17], %16 {strides = array<i32>} : memref<128x192xf32, #tpu.memory_space<vmem>>, vector<128x64xf32>,
    %c0_18 = arith.constant 0 : index
    %c0_19 = arith.constant 0 : index
    %18 = vector.load %arg5[%c0_18, %c0_19] : memref<128x128xf32, #tpu.memory_space<vmem>>, vector<128x128xf32>
    %c0_20 = arith.constant 0 : index
    %c0_21 = arith.constant 0 : index
    %19 = vector.load %arg10[%c0_20, %c0_21] : memref<128x192xf32, #tpu.memory_space<vmem>>, vector<128x16xf32>
    %c0_22 = arith.constant 0 : index
    %c64_23 = arith.constant 64 : index
    %20 = vector.load %arg10[%c0_22, %c64_23] : memref<128x192xf32, #tpu.memory_space<vmem>>, vector<128x16xf32>
    %c0_24 = arith.constant 0 : index
    %c256 = arith.constant 256 : index
    %21 = vector.load %arg9[%c0_24, %c256] : memref<128x320xf32, #tpu.memory_space<vmem>>, vector<128x16xf32>
    %cst_25 = arith.constant dense<0.000000e+00> : vector<128x128xf32>
    %22 = tpu.matmul %19, %20, %cst_25 {dimension_numbers = #tpu.dot_dimension_numbers<[1], [1], [0], [0], [0, 0, 1, 0], [], []>} : vector<128x16xf32>, vector<128x16xf32>, vector<128x128xf32> -> vector<128x128xf32>
    %23 = arith.addf %22, %18 : vector<128x128xf32>
    %cst_26 = arith.constant dense<0xFF800000> : vector<128xf32>
    %24 = vector.multi_reduction <maximumf>, %23, %cst_26 [1] : vector<128x128xf32> to vector<128xf32>
    %25 = vector.shape_cast %24 : vector<128xf32> to vector<128x1xf32>
    %26 = vector.broadcast %25 : vector<128x1xf32> to vector<128x128xf32>
    %27 = arith.subf %23, %26 : vector<128x128xf32>
    %28 = math.exp %27 : vector<128x128xf32>
    %cst_27 = arith.constant dense<0.000000e+00> : vector<128xf32>
    %29 = vector.multi_reduction <add>, %28, %cst_27 [1] : vector<128x128xf32> to vector<128xf32>
    %30 = vector.shape_cast %29 : vector<128xf32> to vector<128x1xf32>
    %31 = tpu.reciprocal %30 : vector<128x1xf32> -> vector<128x1xf32>
    %cst_28 = arith.constant dense<0.000000e+00> : vector<128x16xf32>
    %32 = tpu.matmul %28, %21, %cst_28 {dimension_numbers = #tpu.dot_dimension_numbers<[1], [0], [0], [1], [0, 0, 1, 1], [], []>} : vector<128x128xf32>, vector<128x16xf32>, vector<128x16xf32> -> vector<128x16xf32>
    %33 = vector.broadcast %31 : vector<128x1xf32> to vector<128x16xf32>
    %34 = arith.mulf %32, %33 : vector<128x16xf32>
    %c0_29 = arith.constant 0 : index
    %c128_30 = arith.constant 128 : index
    %35 = vector.load %arg10[%c0_29, %c128_30] : memref<128x192xf32, #tpu.memory_space<vmem>>, vector<128x16xf32>
    tpu.vector_store %arg10[%c0_29, %c128_30], %34 {strides = array<i32>} : memref<128x192xf32, #tpu.memory_space<vmem>>, vector<128x16xf32>,
    %c0_31 = arith.constant 0 : index
    %c16 = arith.constant 16 : index
    %36 = vector.load %arg10[%c0_31, %c16] : memref<128x192xf32, #tpu.memory_space<vmem>>, vector<128x16xf32>
    %c0_32 = arith.constant 0 : index
    %c80 = arith.constant 80 : index
    %37 = vector.load %arg10[%c0_32, %c80] : memref<128x192xf32, #tpu.memory_space<vmem>>, vector<128x16xf32>
    %c0_33 = arith.constant 0 : index
    %c272 = arith.constant 272 : index
    %38 = vector.load %arg9[%c0_33, %c272] : memref<128x320xf32, #tpu.memory_space<vmem>>, vector<128x16xf32>
    %cst_34 = arith.constant dense<0.000000e+00> : vector<128x128xf32>
    %39 = tpu.matmul %36, %37, %cst_34 {dimension_numbers = #tpu.dot_dimension_numbers<[1], [1], [0], [0], [0, 0, 1, 0], [], []>} : vector<128x16xf32>, vector<128x16xf32>, vector<128x128xf32> -> vector<128x128xf32>
    %40 = arith.addf %39, %18 : vector<128x128xf32>
    %cst_35 = arith.constant dense<0xFF800000> : vector<128xf32>
    %41 = vector.multi_reduction <maximumf>, %40, %cst_35 [1] : vector<128x128xf32> to vector<128xf32>
    %42 = vector.shape_cast %41 : vector<128xf32> to vector<128x1xf32>
    %43 = vector.broadcast %42 : vector<128x1xf32> to vector<128x128xf32>
    %44 = arith.subf %40, %43 : vector<128x128xf32>
    %45 = math.exp %44 : vector<128x128xf32>
    %cst_36 = arith.constant dense<0.000000e+00> : vector<128xf32>
    %46 = vector.multi_reduction <add>, %45, %cst_36 [1] : vector<128x128xf32> to vector<128xf32>
    %47 = vector.shape_cast %46 : vector<128xf32> to vector<128x1xf32>
    %48 = tpu.reciprocal %47 : vector<128x1xf32> -> vector<128x1xf32>
    %cst_37 = arith.constant dense<0.000000e+00> : vector<128x16xf32>
    %49 = tpu.matmul %45, %38, %cst_37 {dimension_numbers = #tpu.dot_dimension_numbers<[1], [0], [0], [1], [0, 0, 1, 1], [], []>} : vector<128x128xf32>, vector<128x16xf32>, vector<128x16xf32> -> vector<128x16xf32>
    %50 = vector.broadcast %48 : vector<128x1xf32> to vector<128x16xf32>
    %51 = arith.mulf %49, %50 : vector<128x16xf32>
    %c0_38 = arith.constant 0 : index
    %c144 = arith.constant 144 : index
    %52 = vector.load %arg10[%c0_38, %c144] : memref<128x192xf32, #tpu.memory_space<vmem>>, vector<128x16xf32>
    tpu.vector_store %arg10[%c0_38, %c144], %51 {strides = array<i32>} : memref<128x192xf32, #tpu.memory_space<vmem>>, vector<128x16xf32>,
    %c0_39 = arith.constant 0 : index
    %c32 = arith.constant 32 : index
    %53 = vector.load %arg10[%c0_39, %c32] : memref<128x192xf32, #tpu.memory_space<vmem>>, vector<128x16xf32>
    %c0_40 = arith.constant 0 : index
    %c96 = arith.constant 96 : index
    %54 = vector.load %arg10[%c0_40, %c96] : memref<128x192xf32, #tpu.memory_space<vmem>>, vector<128x16xf32>
    %c0_41 = arith.constant 0 : index
    %c288 = arith.constant 288 : index
    %55 = vector.load %arg9[%c0_41, %c288] : memref<128x320xf32, #tpu.memory_space<vmem>>, vector<128x16xf32>
    %cst_42 = arith.constant dense<0.000000e+00> : vector<128x128xf32>
    %56 = tpu.matmul %53, %54, %cst_42 {dimension_numbers = #tpu.dot_dimension_numbers<[1], [1], [0], [0], [0, 0, 1, 0], [], []>} : vector<128x16xf32>, vector<128x16xf32>, vector<128x128xf32> -> vector<128x128xf32>
    %57 = arith.addf %56, %18 : vector<128x128xf32>
    %cst_43 = arith.constant dense<0xFF800000> : vector<128xf32>
    %58 = vector.multi_reduction <maximumf>, %57, %cst_43 [1] : vector<128x128xf32> to vector<128xf32>
    %59 = vector.shape_cast %58 : vector<128xf32> to vector<128x1xf32>
    %60 = vector.broadcast %59 : vector<128x1xf32> to vector<128x128xf32>
    %61 = arith.subf %57, %60 : vector<128x128xf32>
    %62 = math.exp %61 : vector<128x128xf32>
    %cst_44 = arith.constant dense<0.000000e+00> : vector<128xf32>
    %63 = vector.multi_reduction <add>, %62, %cst_44 [1] : vector<128x128xf32> to vector<128xf32>
    %64 = vector.shape_cast %63 : vector<128xf32> to vector<128x1xf32>
    %65 = tpu.reciprocal %64 : vector<128x1xf32> -> vector<128x1xf32>
    %cst_45 = arith.constant dense<0.000000e+00> : vector<128x16xf32>
    %66 = tpu.matmul %62, %55, %cst_45 {dimension_numbers = #tpu.dot_dimension_numbers<[1], [0], [0], [1], [0, 0, 1, 1], [], []>} : vector<128x128xf32>, vector<128x16xf32>, vector<128x16xf32> -> vector<128x16xf32>
    %67 = vector.broadcast %65 : vector<128x1xf32> to vector<128x16xf32>
    %68 = arith.mulf %66, %67 : vector<128x16xf32>
    %c0_46 = arith.constant 0 : index
    %c160 = arith.constant 160 : index
    %69 = vector.load %arg10[%c0_46, %c160] : memref<128x192xf32, #tpu.memory_space<vmem>>, vector<128x16xf32>
    tpu.vector_store %arg10[%c0_46, %c160], %68 {strides = array<i32>} : memref<128x192xf32, #tpu.memory_space<vmem>>, vector<128x16xf32>,
    %c0_47 = arith.constant 0 : index
    %c48 = arith.constant 48 : index
    %70 = vector.load %arg10[%c0_47, %c48] : memref<128x192xf32, #tpu.memory_space<vmem>>, vector<128x16xf32>
    %c0_48 = arith.constant 0 : index
    %c112 = arith.constant 112 : index
    %71 = vector.load %arg10[%c0_48, %c112] : memref<128x192xf32, #tpu.memory_space<vmem>>, vector<128x16xf32>
    %c0_49 = arith.constant 0 : index
    %c304 = arith.constant 304 : index
    %72 = vector.load %arg9[%c0_49, %c304] : memref<128x320xf32, #tpu.memory_space<vmem>>, vector<128x16xf32>
    %cst_50 = arith.constant dense<0.000000e+00> : vector<128x128xf32>
    %73 = tpu.matmul %70, %71, %cst_50 {dimension_numbers = #tpu.dot_dimension_numbers<[1], [1], [0], [0], [0, 0, 1, 0], [], []>} : vector<128x16xf32>, vector<128x16xf32>, vector<128x128xf32> -> vector<128x128xf32>
    %74 = arith.addf %73, %18 : vector<128x128xf32>
    %cst_51 = arith.constant dense<0xFF800000> : vector<128xf32>
    %75 = vector.multi_reduction <maximumf>, %74, %cst_51 [1] : vector<128x128xf32> to vector<128xf32>
    %76 = vector.shape_cast %75 : vector<128xf32> to vector<128x1xf32>
    %77 = vector.broadcast %76 : vector<128x1xf32> to vector<128x128xf32>
    %78 = arith.subf %74, %77 : vector<128x128xf32>
    %79 = math.exp %78 : vector<128x128xf32>
    %cst_52 = arith.constant dense<0.000000e+00> : vector<128xf32>
    %80 = vector.multi_reduction <add>, %79, %cst_52 [1] : vector<128x128xf32> to vector<128xf32>
    %81 = vector.shape_cast %80 : vector<128xf32> to vector<128x1xf32>
    %82 = tpu.reciprocal %81 : vector<128x1xf32> -> vector<128x1xf32>
    %cst_53 = arith.constant dense<0.000000e+00> : vector<128x16xf32>
    %83 = tpu.matmul %79, %72, %cst_53 {dimension_numbers = #tpu.dot_dimension_numbers<[1], [0], [0], [1], [0, 0, 1, 1], [], []>} : vector<128x128xf32>, vector<128x16xf32>, vector<128x16xf32> -> vector<128x16xf32>
    %84 = vector.broadcast %82 : vector<128x1xf32> to vector<128x16xf32>
    %85 = arith.mulf %83, %84 : vector<128x16xf32>
    %c0_54 = arith.constant 0 : index
    %c176 = arith.constant 176 : index
    %86 = vector.load %arg10[%c0_54, %c176] : memref<128x192xf32, #tpu.memory_space<vmem>>, vector<128x16xf32>
    tpu.vector_store %arg10[%c0_54, %c176], %85 {strides = array<i32>} : memref<128x192xf32, #tpu.memory_space<vmem>>, vector<128x16xf32>,
    %c0_55 = arith.constant 0 : index
    %c128_56 = arith.constant 128 : index
    %87 = vector.load %arg10[%c0_55, %c128_56] : memref<128x192xf32, #tpu.memory_space<vmem>>, vector<128x64xf32>
    %c0_57 = arith.constant 0 : index
    %c0_58 = arith.constant 0 : index
    %88 = vector.load %arg6[%c0_57, %c0_58] : memref<64x64xf32, #tpu.memory_space<vmem>>, vector<64x64xf32>
    %cst_59 = arith.constant dense<0.000000e+00> : vector<128x64xf32>
    %89 = tpu.matmul %87, %88, %cst_59 {dimension_numbers = #tpu.dot_dimension_numbers<[1], [0], [0], [1], [0, 0, 1, 1], [], []>} : vector<128x64xf32>, vector<64x64xf32>, vector<128x64xf32> -> vector<128x64xf32>
    %c0_60 = arith.constant 0 : index
    %c0_61 = arith.constant 0 : index
    %90 = vector.load %arg7[%c0_60, %c0_61] : memref<1x64xf32, #tpu.memory_space<vmem>>, vector<1x64xf32>
    %91 = vector.broadcast %90 : vector<1x64xf32> to vector<128x64xf32>
    %92 = arith.addf %89, %91 : vector<128x64xf32>
    %93 = vector.extract_strided_slice %92 {offsets = [0, 0], sizes = [64, 64], strides = [1, 1]} : vector<128x64xf32> to vector<64x64xf32>
    %94 = vector.extract_strided_slice %92 {offsets = [64, 0], sizes = [64, 64], strides = [1, 1]} : vector<128x64xf32> to vector<64x64xf32>
    %95 = tpu.concatenate %93, %94 in 1 : vector<64x64xf32>, vector<64x64xf32> -> vector<64x128xf32>
    %c0_62 = arith.constant 0 : index
    %c0_63 = arith.constant 0 : index
    %96 = vector.load %arg8[%c0_62, %c0_63] : memref<64x128xf32, #tpu.memory_space<vmem>>, vector<64x128xf32>
    tpu.vector_store %arg8[%c0_62, %c0_63], %95 {strides = array<i32>} : memref<64x128xf32, #tpu.memory_space<vmem>>, vector<64x128xf32>,
    return
  }
  func.func @transform_0(%arg0: i32) -> (i32, i32) {
    %c0_i32 = arith.constant 0 : i32
    %c0_i32_0 = arith.constant 0 : i32
    return %arg0, %c0_i32 : i32, i32
  }
  func.func @transform_1(%arg0: i32) -> (i32, i32) {
    %c0_i32 = arith.constant 0 : i32
    %c0_i32_0 = arith.constant 0 : i32
    %c0_i32_1 = arith.constant 0 : i32
    return %c0_i32, %c0_i32_0 : i32, i32
  }
  func.func @transform_2(%arg0: i32) -> (i32, i32) {
    %c0_i32 = arith.constant 0 : i32
    %c0_i32_0 = arith.constant 0 : i32
    %c0_i32_1 = arith.constant 0 : i32
    return %c0_i32, %c0_i32_0 : i32, i32
  }
  func.func @transform_3(%arg0: i32) -> (i32, i32) {
    %c0_i32 = arith.constant 0 : i32
    %c0_i32_0 = arith.constant 0 : i32
    %c0_i32_1 = arith.constant 0 : i32
    return %c0_i32, %c0_i32_0 : i32, i32
  }
  func.func @transform_4(%arg0: i32) -> (i32, i32) {
    %c0_i32 = arith.constant 0 : i32
    %c0_i32_0 = arith.constant 0 : i32
    %c0_i32_1 = arith.constant 0 : i32
    return %c0_i32, %c0_i32_0 : i32, i32
  }
  func.func @transform_5(%arg0: i32) -> (i32, i32) {
    %c0_i32 = arith.constant 0 : i32
    %c0_i32_0 = arith.constant 0 : i32
    %c0_i32_1 = arith.constant 0 : i32
    return %c0_i32, %c0_i32_0 : i32, i32
  }
  func.func @transform_6(%arg0: i32) -> (i32, i32) {
    %c0_i32 = arith.constant 0 : i32
    %c0_i32_0 = arith.constant 0 : i32
    %c0_i32_1 = arith.constant 0 : i32
    return %c0_i32, %c0_i32_0 : i32, i32
  }
  func.func @transform_7(%arg0: i32) -> (i32, i32) {
    %c0_i32 = arith.constant 0 : i32
    %c0_i32_0 = arith.constant 0 : i32
    return %arg0, %c0_i32 : i32, i32
  }
}

</mosaic_0001>

<bundles_post_ra>
// kernel: tpu_custom_call.1
= control target key start
LH: loop header
LB: loop body
LE: loop exit
PB: predicated region body
PF: predicated region fallthrough
CT: control target
= control target key end

     0   :  { %s4713_s11 = smov 64   ;;  %vm67_vm0 = vcmask 523264   ;;  %s7833_s0 = inlined_call_operand.vmem [shape: f32[128,64], index: 0, kind: input, shape index: {}]   ;;  %s7834_s1 = inlined_call_operand.vmem [shape: f32[64,320], index: 1, kind: input, shape index: {}]   ;;  %s7835_s2 = inlined_call_operand.vmem [shape: f32[128,64], index: 2, kind: input, shape index: {}]   ;;  %s7836_s3 = inlined_call_operand.vmem [shape: f32[128,64], index: 3, kind: input, shape index: {}]   ;;  %s7837_s4 = inlined_call_operand.vmem [shape: f32[128,128], index: 4, kind: input, shape index: {}]   ;;  %s7838_s5 = inlined_call_operand.vmem [shape: f32[64,64], index: 5, kind: input, shape index: {}]   ;;  %s7839_s6 = inlined_call_operand.vmem [shape: f32[1,64], index: 6, kind: input, shape index: {}]   ;;  %s7840_s7 = inlined_call_operand.hbm [shape: f32[64,128], index: 7, kind: output, shape index: {}]  }
   0x1   :  { %v64_v0 = vld [vmem:[%s7834_s1 + $0xa8] sm:$0xff]  ;;  %v66_v1 = vld [vmem:[%s7834_s1 + $0xb8] sm:$0xff]  ;;  %v375_v2 = vld [vmem:[%s7836_s3] sm:$0xff] }
   0x2   :  { %124 = vmatpush.msra.mxu0 %v64_v0  ;;  %4275 = vmatpush.msra.mxu1 %v64_v0  ;;  %v61_v3 = vld [vmem:[%s7834_s1 + $0x90] sm:$0xff]  ;;  %v63_v4 = vld [vmem:[%s7834_s1 + $0xa0] sm:$0xff]  ;;  %v58_v5 = vld [vmem:[%s7834_s1 + $0x78] sm:$0xff] }
   0x3   :  { %254 = vmatpush.msra.mxu2 %v66_v1  ;;  %439 = vrot.lane.b32.xlu0 %v375_v2, %s4713_s11  ;;  %v60_v6 = vld [vmem:[%s7834_s1 + $0x88] sm:$0xff]  ;;  %v55_v7 = vld [vmem:[%s7834_s1 + $0x60] sm:$0xff]  ;;  %v57_v8 = vld [vmem:[%s7834_s1 + $0x70] sm:$0xff] }
   0x4   :  { %125 = vmatpush.msra.mxu0 %v61_v3  ;;  %4276 = vmatpush.msra.mxu1 %v61_v3  ;;  %v52_v9 = vld [vmem:[%s7834_s1 + $0x48] sm:$0xff]  ;;  %v54_v10 = vld [vmem:[%s7834_s1 + $0x58] sm:$0xff]  ;;  %v49_v12 = vld [vmem:[%s7834_s1 + $0x30] sm:$0xff] }
   0x5   :  { %255 = vmatpush.msra.mxu2 %v63_v4  ;;  %v376_v11 = vld [vmem:[%s7836_s3 + $0x8] sm:$0xff]  ;;  %v51_v13 = vld [vmem:[%s7834_s1 + $0x40] sm:$0xff]  ;;  %v46_v15 = vld [vmem:[%s7834_s1 + $0x18] sm:$0xff] }
   0x6   :  { %126 = vmatpush.msra.mxu0 %v58_v5  ;;  %4277 = vmatpush.msra.mxu1 %v58_v5  ;;  %v379_v14 = vld [vmem:[%s7836_s3 + $0x20] sm:$0xff]  ;;  %v48_v16 = vld [vmem:[%s7834_s1 + $0x28] sm:$0xff]  ;;  %v45_v18 = vld [vmem:[%s7834_s1 + $0x10] sm:$0xff] }
   0x7   :  { %256 = vmatpush.msra.mxu2 %v60_v6  ;;  %v43_v17 = vld [vmem:[%s7834_s1] sm:$0xff]  ;;  %447 = vrot.lane.b32.xlu2 %v379_v14, %s4713_s11  ;;  %v377_v20 = vld [vmem:[%s7836_s3 + $0x10] sm:$0xff] }
   0x8   :  { %127 = vmatpush.msra.mxu0 %v55_v7  ;;  %4278 = vmatpush.msra.mxu1 %v55_v7  ;;  %v27_v19 = vld [vmem:[%s7833_s0] sm:$0xff]  ;;  %v4832_v21 = vld [vmem:[%s7833_s0 + $0x70] sm:$0xff] }
   0x9   :  { %257 = vmatpush.msra.mxu2 %v57_v8  ;;  %443 = vrot.lane.b32.xlu1 %v377_v20, %s4713_s11 }
   0xa   :  { %128 = vmatpush.msra.mxu0 %v52_v9  ;;  %4279 = vmatpush.msra.mxu1 %v52_v9 }
   0xb   :  { %258 = vmatpush.msra.mxu2 %v54_v10  ;;  %441 = vrot.lane.b32.xlu0 %v376_v11, %s4713_s11 }
   0xc   :  { %129 = vmatpush.msra.mxu0 %v49_v12  ;;  %4280 = vmatpush.msra.mxu1 %v49_v12 }
   0xd   :  { %259 = vmatpush.msra.mxu2 %v51_v13 }
   0xe   :  { %130 = vmatpush.msra.mxu0 %v46_v15  ;;  %4281 = vmatpush.msra.mxu1 %v46_v15 }
   0xf   :  { %260 = vmatpush.msra.mxu2 %v48_v16 }
  0x10   :  { %12 = vsyncpa [#allocation5], 0  ;;  %131 = vmatpush.msra.mxu0 %v43_v17  ;;  %4282 = vmatpush.msra.mxu1 %v43_v17  ;;  %v65_v22 = vld [vmem:[%s7834_s1 + $0xb0] sm:$0xff]  ;;  %v62_v24 = vld [vmem:[%s7834_s1 + $0x98] sm:$0xff]  ;;  %s4715_s13 = smov 80   ;;  %vm791_vm1 = vcmask 1048064  }
  0x11   :  { %v381_v23 = vld [vmem:[%s7836_s3 + $0x30] sm:$0xff]  ;;  %261 = vmatpush.msra.mxu2 %v45_v18  ;;  %4083 = vmatmul.msk.f32.vlgmr.msra.gmra.mxu0 %vm67_vm0, %v27_v19  ;;  %v380_v25 = vld [vmem:[%s7836_s3 + $0x28] sm:$0xff]  ;;  %v59_v26 = vld [vmem:[%s7834_s1 + $0x80] sm:$0xff]  ;;  %s4717_s9 = smov 16   ;;  %s4718_s10 = smov 48   ;;  %vm904_vm2 = vcmask 130048  }
  0x12   :  { %4097 = vmatmul.msk.f32.vlgmr.msra.gmra.mxu1 %vm67_vm0, %v4832_v21  ;;  %4115 = vmatmul.msk.f32.vlgmr.msra.gmra.mxu2 %vm67_vm0, %v27_v19  ;;  %v56_v27 = vld [vmem:[%s7834_s1 + $0x68] sm:$0xff]  ;;  %v4865_v29 = vld [vmem:[%s7833_s0 + $0x78] sm:$0xff]  ;;  %v53_v30 = vld [vmem:[%s7834_s1 + $0x50] sm:$0xff]  ;;  %s4719_s12 = smov 32   ;;  %s4071_s15 = sshll.u32 %s7840_s7, 4  ;;  %s4072_s15 = int_to_ptr.hbm [resolvable:$true] %s4071_s15 }
  0x13   :  { %189 = vmatpush.msrb.mxu1 %v65_v22  ;;  %451 = vrot.lane.b32.xlu0 %v381_v23, %s4713_s11  ;;  %v28_v28 = vld [vmem:[%s7833_s0 + $0x8] sm:$0xff]  ;;  %v50_v32 = vld [vmem:[%s7834_s1 + $0x38] sm:$0xff]  ;;  %v383_v33 = vld [vmem:[%s7836_s3 + $0x40] sm:$0xff]  ;;  %s4722_s16 = smov 8  }
  0x14   :  { %449 = vrot.lane.b32.xlu2 %v380_v25, %s4713_s11  ;;  %v384_v31 = vld [vmem:[%s7836_s3 + $0x48] sm:$0xff]  ;;  %v378_v34 = vld [vmem:[%s7836_s3 + $0x18] sm:$0xff]  ;;  %v47_v35 = vld [vmem:[%s7834_s1 + $0x20] sm:$0xff] }
  0x15   :  { %190 = vmatpush.msrb.mxu1 %v62_v24  ;;  %445 = vrot.lane.b32.xlu1 %v378_v34, %s4713_s11  ;;  %v44_v36 = vld [vmem:[%s7834_s1 + $0x8] sm:$0xff]  ;;  %v29_v37 = vld [vmem:[%s7833_s0 + $0x10] sm:$0xff]  ;;  %v387_v38 = vld [vmem:[%s7836_s3 + $0x60] sm:$0xff]  ;;  %s4721_s1 = smov 128  }
  0x16   :  { %v386_v39 = vld [vmem:[%s7836_s3 + $0x58] sm:$0xff]  ;;  %v389_v42 = vld [vmem:[%s7836_s3 + $0x70] sm:$0xff]  ;;  %v31_v43 = vld [vmem:[%s7833_s0 + $0x20] sm:$0xff] }
  0x17   :  { %191 = vmatpush.msrb.mxu1 %v59_v26  ;;  %v30_v40 = vld [vmem:[%s7833_s0 + $0x18] sm:$0xff]  ;;  %v32_v44 = vld [vmem:[%s7833_s0 + $0x28] sm:$0xff]  ;;  %v33_v46 = vld [vmem:[%s7833_s0 + $0x30] sm:$0xff] }
  0x18   :  { %v390_v41 = vld [vmem:[%s7836_s3 + $0x78] sm:$0xff]  ;;  %v35_v48 = vld [vmem:[%s7833_s0 + $0x40] sm:$0xff]  ;;  %v36_v49 = vld [vmem:[%s7833_s0 + $0x48] sm:$0xff] }
  0x19   :  { %192 = vmatpush.msrb.mxu1 %v56_v27  ;;  %4084 = vmatmul.msk.f32.gmra.mxu0 %vm67_vm0, %v28_v28  ;;  %v382_v45 = vld [vmem:[%s7836_s3 + $0x38] sm:$0xff]  ;;  %v385_v50 = vld [vmem:[%s7836_s3 + $0x50] sm:$0xff]  ;;  %v388_v54 = vld [vmem:[%s7836_s3 + $0x68] sm:$0xff] }
  0x1a   :  { %4098 = vmatmul.msk.f32.gmra.mxu1 %vm67_vm0, %v4865_v29  ;;  %4116 = vmatmul.msk.f32.gmra.mxu2 %vm67_vm0, %v28_v28  ;;  %v34_v47 = vld [vmem:[%s7833_s0 + $0x38] sm:$0xff]  ;;  %v37_v51 = vld [vmem:[%s7833_s0 + $0x50] sm:$0xff]  ;;  %v39_v55 = vld [vmem:[%s7833_s0 + $0x60] sm:$0xff] }
  0x1b   :  { %193 = vmatpush.msrb.mxu1 %v53_v30  ;;  %457 = vrot.lane.b32.xlu0 %v384_v31, %s4713_s11  ;;  %v38_v52 = vld [vmem:[%s7833_s0 + $0x58] sm:$0xff]  ;;  %v40_v58 = vld [vmem:[%s7833_s0 + $0x68] sm:$0xff]  ;;  %s4714_s0 = smov 112  }
  0x1c   :  { %455 = vrot.lane.b32.xlu2 %v383_v33, %s4713_s11 }
  0x1d   :  { %194 = vmatpush.msrb.mxu1 %v50_v32  ;;  %453 = vrot.lane.b32.xlu1 %v382_v45, %s4713_s11 }
  0x1f   :  { %195 = vmatpush.msrb.mxu1 %v47_v35 }
  0x21   :  { %196 = vmatpush.msrb.mxu1 %v44_v36  ;;  %4085 = vmatmul.msk.f32.gmra.mxu0 %vm67_vm0, %v29_v37 }
  0x22   :  { %4099 = vmatmul.msk.f32.vlgmr.msrb.gmra.mxu1 %vm67_vm0, %v27_v19  ;;  %4117 = vmatmul.msk.f32.gmra.mxu2 %vm67_vm0, %v29_v37 }
  0x23   :  { %463 = vrot.lane.b32.xlu0 %v387_v38, %s4713_s11 }
  0x24   :  { %461 = vrot.lane.b32.xlu2 %v386_v39, %s4713_s11 }
  0x25   :  { %459 = vrot.lane.b32.xlu1 %v385_v50, %s4713_s11 }
  0x29   :  { %4086 = vmatmul.msk.f32.gmra.mxu0 %vm67_vm0, %v30_v40 }
  0x2a   :  { %4100 = vmatmul.msk.f32.gmra.mxu1 %vm67_vm0, %v28_v28  ;;  %4118 = vmatmul.msk.f32.gmra.mxu2 %vm67_vm0, %v30_v40 }
  0x2b   :  { %469 = vrot.lane.b32.xlu0 %v390_v41, %s4713_s11 }
  0x2c   :  { %467 = vrot.lane.b32.xlu2 %v389_v42, %s4713_s11 }
  0x2d   :  { %465 = vrot.lane.b32.xlu1 %v388_v54, %s4713_s11 }
  0x31   :  { %4087 = vmatmul.msk.f32.gmra.mxu0 %vm67_vm0, %v31_v43 }
  0x32   :  { %4101 = vmatmul.msk.f32.gmra.mxu1 %vm67_vm0, %v29_v37  ;;  %4119 = vmatmul.msk.f32.gmra.mxu2 %vm67_vm0, %v31_v43 }
  0x39   :  { %4088 = vmatmul.msk.f32.gmra.mxu0 %vm67_vm0, %v32_v44 }
  0x3a   :  { %4102 = vmatmul.msk.f32.gmra.mxu1 %vm67_vm0, %v30_v40  ;;  %4120 = vmatmul.msk.f32.gmra.mxu2 %vm67_vm0, %v32_v44 }
  0x41   :  { %4089 = vmatmul.msk.f32.gmra.mxu0 %vm67_vm0, %v33_v46 }
  0x42   :  { %4103 = vmatmul.msk.f32.gmra.mxu1 %vm67_vm0, %v31_v43  ;;  %4121 = vmatmul.msk.f32.gmra.mxu2 %vm67_vm0, %v33_v46 }
  0x49   :  { %4090 = vmatmul.msk.f32.gmra.mxu0 %vm67_vm0, %v34_v47 }
  0x4a   :  { %4104 = vmatmul.msk.f32.gmra.mxu1 %vm67_vm0, %v32_v44  ;;  %4122 = vmatmul.msk.f32.gmra.mxu2 %vm67_vm0, %v34_v47 }
  0x51   :  { %4091 = vmatmul.msk.f32.gmra.mxu0 %vm67_vm0, %v35_v48 }
  0x52   :  { %4105 = vmatmul.msk.f32.gmra.mxu1 %vm67_vm0, %v33_v46  ;;  %4123 = vmatmul.msk.f32.gmra.mxu2 %vm67_vm0, %v35_v48 }
  0x59   :  { %4092 = vmatmul.msk.f32.gmra.mxu0 %vm67_vm0, %v36_v49 }
  0x5a   :  { %4106 = vmatmul.msk.f32.gmra.mxu1 %vm67_vm0, %v34_v47  ;;  %4124 = vmatmul.msk.f32.gmra.mxu2 %vm67_vm0, %v36_v49 }
  0x61   :  { %4093 = vmatmul.msk.f32.gmra.mxu0 %vm67_vm0, %v37_v51  ;;  %v4976_v53 = vpop.permute.xlu2 %447 }
  0x62   :  { %4107 = vmatmul.msk.f32.gmra.mxu1 %vm67_vm0, %v35_v48  ;;  %4125 = vmatmul.msk.f32.gmra.mxu2 %vm67_vm0, %v37_v51 }
  0x69   :  { %4094 = vmatmul.msk.f32.gmra.mxu0 %vm67_vm0, %v38_v52 }
  0x6a   :  { %4108 = vmatmul.msk.f32.gmra.mxu1 %vm67_vm0, %v36_v49  ;;  %4126 = vmatmul.msk.f32.gmra.mxu2 %vm67_vm0, %v38_v52 }
  0x6e   :  { %v4988_v56 = vpop.permute.xlu2 %449 }
  0x71   :  { %4095 = vmatmul.msk.f32.gmra.mxu0 %vm67_vm0, %v39_v55 }
  0x72   :  { %4109 = vmatmul.msk.f32.gmra.mxu1 %vm67_vm0, %v37_v51  ;;  %4127 = vmatmul.msk.f32.gmra.mxu2 %vm67_vm0, %v39_v55 }
  0x75   :  { %v440_v57 = vpop.permute.xlu0 %439 }
  0x76   :  { %v4997_v59 = vpop.permute.xlu2 %455 }
  0x79   :  { %4096 = vmatmul.msk.f32.gmra.mxu0 %vm67_vm0, %v40_v58 }
  0x7a   :  { %4110 = vmatmul.msk.f32.gmra.mxu1 %vm67_vm0, %v38_v52  ;;  %4128 = vmatmul.msk.f32.gmra.mxu2 %vm67_vm0, %v40_v58 }
  0x7b   :  { %v444_v10 = vpop.permute.xlu1 %443 }
  0x7d   :  { %v442_v60 = vpop.permute.xlu0 %441 }
  0x7e   :  { %v5004_v61 = vpop.permute.xlu2 %461 }
  0x82   :  { %4111 = vmatmul.msk.f32.gmra.mxu1 %vm67_vm0, %v39_v55  ;;  %4129 = vmatmul.msk.f32.gmra.mxu2 %vm67_vm0, %v4832_v21 }
  0x85   :  { %v5006_v62 = vpop.permute.xlu0 %451 }
  0x86   :  { %v5013_v0 = vpop.permute.xlu2 %467 }
  0x87   :  { %v446_v25 = vpop.permute.xlu1 %445 }
  0x8a   :  { %4112 = vmatmul.msk.f32.gmra.mxu1 %vm67_vm0, %v40_v58  ;;  %4130 = vmatmul.msk.f32.gmra.mxu2 %vm67_vm0, %v4865_v29 }
  0x8d   :  { %v5011_v63 = vpop.permute.xlu0 %457 }
  0x8e   :  { %v5015_v1 = vpop.f32.mrf.mxu0 }
  0x8f   :  { %v5017_v2 = vpop.f32.mrf.mxu1  ;;  %v487_v3 = vmul.f32 %v440_v57, %v5015_v1  ;;  %v454_v51 = vpop.permute.xlu1 %453 }
  0x90   :  { %v501_v4 = vmul.f32 %v5013_v0, %v5017_v2 }
  0x91   :  { %519 = vrot.lane.b32.xlu1 %v487_v3, %s4713_s11 }
  0x92   :  { %4113 = vmatmul.msk.f32.gmra.mxu1 %vm67_vm0, %v4832_v21  ;;  %547 = vrot.lane.b32.xlu0 %v501_v4, %s4713_s11 }
  0x95   :  { %v263_v5 = vpop.f32.mrf.mxu2  ;;  %v5026_v6 = vpop.permute.xlu0 %463 }
  0x96   :  { %313 = vst.msk [vmem:[#allocation2 + $0x10] sm:$0xff] %vm67_vm0, %v263_v5  ;;  %v5029_v7 = vpop.f32.mrf.mxu0 }
  0x97   :  { %v5031_v8 = vpop.f32.mrf.mxu1  ;;  %v488_v9 = vmul.f32 %v442_v60, %v5029_v7 }
  0x99   :  { %521 = vrot.lane.b32.xlu2 %v488_v9, %s4713_s11 }
  0x9a   :  { %4114 = vmatmul.msk.f32.gmra.mxu1 %vm67_vm0, %v4865_v29 }
  0x9d   :  { %v266_v11 = vpop.f32.mrf.mxu2  ;;  %v5037_v12 = vpop.permute.xlu0 %469  ;;  %v1483_v19 = vld [vmem:[#allocation2 + $0x10] sm:$0xff] }
  0x9e   :  { %316 = vst.msk [vmem:[#allocation2 + $0x28] sm:$0xff] %vm67_vm0, %v266_v11  ;;  %v502_v13 = vmul.f32 %v5037_v12, %v5031_v8  ;;  %v5042_v14 = vpop.f32.mrf.mxu0 }
  0x9f   :  { %v5044_v15 = vpop.f32.mrf.mxu1  ;;  %v489_v16 = vmul.f32 %v444_v10, %v5042_v14 }
  0xa0   :  { %549 = vrot.lane.b32.xlu1 %v502_v13, %s4713_s11  ;;  %v631_v17 = vmul.f32 %v440_v57, %v5044_v15 }
  0xa1   :  { %523 = vrot.lane.b32.xlu0 %v489_v16, %s4713_s11 }
  0xa2   :  { %663 = vrot.lane.b32.xlu2 %v631_v17, %s4713_s11 }
  0xa5   :  { %v269_v18 = vpop.f32.mrf.mxu2  ;;  %v1484_v20 = vld [vmem:[#allocation2 + $0x28] sm:$0xff] }
  0xa6   :  { %319 = vst.msk [vmem:[#allocation2 + $0x40] sm:$0xff] %vm67_vm0, %v269_v18  ;;  %v5052_v21 = vpop.f32.mrf.mxu0  ;;  %v4309_v22 = vpack.i.bf16 %v1483_v19, %v1484_v20 }
  0xa7   :  { %v5054_v23 = vpop.f32.mrf.mxu1  ;;  %v490_v26 = vmul.f32 %v446_v25, %v5052_v21 }
  0xa8   :  { %4310 = vrot.lane.b32.xlu1 %v4309_v22, %s4714_s0  ;;  %v632_v24 = vmul.f32 %v442_v60, %v5054_v23 }
  0xaa   :  { %665 = vrot.lane.b32.xlu0 %v632_v24, %s4713_s11 }
  0xad   :  { %v272_v27 = vpop.f32.mrf.mxu2  ;;  %v1485_v31 = vld [vmem:[#allocation2 + $0x40] sm:$0xff] }
  0xae   :  { %322 = vst.msk [vmem:[#allocation2 + $0x58] sm:$0xff] %vm67_vm0, %v272_v27  ;;  %v5061_v28 = vpop.f32.mrf.mxu0 }
  0xaf   :  { %v5063_v29 = vpop.f32.mrf.mxu1  ;;  %v491_v40 = vmul.f32 %v4976_v53, %v5061_v28 }
  0xb0   :  { %525 = vrot.lane.b32.xlu1 %v490_v26, %s4713_s11  ;;  %v633_v35 = vmul.f32 %v444_v10, %v5063_v29 }
  0xb5   :  { %v275_v30 = vpop.f32.mrf.mxu2  ;;  %v1486_v32 = vld [vmem:[#allocation2 + $0x58] sm:$0xff] }
  0xb6   :  { %325 = vst.msk [vmem:[#allocation2 + $0x70] sm:$0xff] %vm67_vm0, %v275_v30  ;;  %v5067_v33 = vpop.f32.mrf.mxu0  ;;  %v4314_v34 = vpack.i.bf16 %v1485_v31, %v1486_v32  ;;  %v460_v30 = vpop.permute.xlu1 %459 }
  0xb7   :  { %v5070_v36 = vpop.f32.mrf.mxu1  ;;  %v492_v37 = vmul.f32 %v4988_v56, %v5067_v33 }
  0xb8   :  { %4315 = vrot.lane.b32.xlu2 %v4314_v34, %s4714_s0  ;;  %667 = vrot.lane.b32.xlu1 %v633_v35, %s4713_s11  ;;  %v634_v47 = vmul.f32 %v446_v25, %v5070_v36 }
  0xb9   :  { %529 = vrot.lane.b32.xlu0 %v492_v37, %s4713_s11  ;;  %v5155_v37 = vld [vmem:[%s7835_s2 + $0x8] sm:$0xff] }
  0xbd   :  { %v278_v38 = vpop.f32.mrf.mxu2  ;;  %v1487_v44 = vld [vmem:[#allocation2 + $0x70] sm:$0xff] }
  0xbe   :  { %328 = vst.msk [vmem:[#allocation2 + $0x88] sm:$0xff] %vm67_vm0, %v278_v38  ;;  %v5078_v39 = vpop.f32.mrf.mxu0 }
  0xbf   :  { %v5082_v41 = vpop.f32.mrf.mxu1  ;;  %v493_v42 = vmul.f32 %v5006_v62, %v5078_v39 }
  0xc0   :  { %527 = vrot.lane.b32.xlu2 %v491_v40, %s4713_s11  ;;  %v635_v57 = vmul.f32 %v4976_v53, %v5082_v41  ;;  %v408_v40 = vmul.f32 %v5155_v37, %v5029_v7 }
  0xc1   :  { %531 = vrot.lane.b32.xlu1 %v493_v42, %s4713_s11 }
  0xc5   :  { %v281_v43 = vpop.f32.mrf.mxu2  ;;  %v1488_v45 = vld [vmem:[#allocation2 + $0x88] sm:$0xff] }
  0xc6   :  { %331 = vst.msk [vmem:[#allocation2 + $0xa0] sm:$0xff] %vm67_vm0, %v281_v43  ;;  %v5089_v46 = vpop.f32.mrf.mxu0  ;;  %v4319_v48 = vpack.i.bf16 %v1487_v44, %v1488_v45 }
  0xc7   :  { %v5092_v49 = vpop.f32.mrf.mxu1  ;;  %v494_v52 = vmul.f32 %v454_v51, %v5089_v46 }
  0xc8   :  { %669 = vrot.lane.b32.xlu2 %v634_v47, %s4713_s11  ;;  %4320 = vrot.lane.b32.xlu0 %v4319_v48, %s4714_s0  ;;  %v636_v50 = vmul.f32 %v4988_v56, %v5092_v49 }
  0xca   :  { %673 = vrot.lane.b32.xlu1 %v636_v50, %s4713_s11 }
  0xcd   :  { %v284_v54 = vpop.f32.mrf.mxu2  ;;  %v1489_v60 = vld [vmem:[#allocation2 + $0xa0] sm:$0xff] }
  0xce   :  { %334 = vst.msk [vmem:[#allocation2 + $0xb8] sm:$0xff] %vm67_vm0, %v284_v54  ;;  %v5101_v55 = vpop.f32.mrf.mxu0 }
  0xcf   :  { %v5105_v58 = vpop.f32.mrf.mxu1  ;;  %v495_v53 = vmul.f32 %v4997_v59, %v5101_v55 }
  0xd0   :  { %671 = vrot.lane.b32.xlu0 %v635_v57, %s4713_s11  ;;  %533 = vrot.lane.b32.xlu2 %v494_v52, %s4713_s11  ;;  %v637_v9 = vmul.f32 %v5006_v62, %v5105_v58  ;;  %v466_v52 = vpop.permute.xlu1 %465 }
  0xd5   :  { %v287_v56 = vpop.f32.mrf.mxu2  ;;  %v1490_v3 = vld [vmem:[#allocation2 + $0xb8] sm:$0xff] }
  0xd6   :  { %337 = vst.msk [vmem:[#allocation2 + $0xd0] sm:$0xff] %vm67_vm0, %v287_v56  ;;  %v5110_v4 = vpop.f32.mrf.mxu0  ;;  %v4324_v5 = vpack.i.bf16 %v1489_v60, %v1490_v3  ;;  %v5186_v60 = vld [vmem:[%s7835_s2 + $0x70] sm:$0xff] }
  0xd7   :  { %v5114_v10 = vpop.f32.mrf.mxu1  ;;  %v496_v62 = vmul.f32 %v5011_v63, %v5110_v4  ;;  %v421_v3 = vmul.f32 %v5186_v60, %v5017_v2 }
  0xd8   :  { %4325 = vrot.lane.b32.xlu1 %v4324_v5, %s4714_s0  ;;  %675 = vrot.lane.b32.xlu2 %v637_v9, %s4713_s11  ;;  %v638_v13 = vmul.f32 %v454_v51, %v5114_v10 }
  0xd9   :  { %535 = vrot.lane.b32.xlu0 %v495_v53, %s4713_s11 }
  0xdd   :  { %v290_v11 = vpop.f32.mrf.mxu2  ;;  %v1491_v19 = vld [vmem:[#allocation2 + $0xd0] sm:$0xff] }
  0xde   :  { %340 = vst.msk [vmem:[#allocation2 + $0xe8] sm:$0xff] %vm67_vm0, %v290_v11  ;;  %v5123_v16 = vpop.f32.mrf.mxu0 }
  0xdf   :  { %v5127_v17 = vpop.f32.mrf.mxu1  ;;  %v497_v31 = vmul.f32 %v460_v30, %v5123_v16 }
  0xe0   :  { %537 = vrot.lane.b32.xlu1 %v496_v62, %s4713_s11  ;;  %v639_v25 = vmul.f32 %v4997_v59, %v5127_v17 }
  0xe1   :  { %677 = vrot.lane.b32.xlu0 %v638_v13, %s4713_s11 }
  0xe5   :  { %v293_v18 = vpop.f32.mrf.mxu2  ;;  %v1492_v20 = vld [vmem:[#allocation2 + $0xe8] sm:$0xff] }
  0xe6   :  { %343 = vst.msk [vmem:[#allocation2 + $0x100] sm:$0xff] %vm67_vm0, %v293_v18  ;;  %v5132_v22 = vpop.f32.mrf.mxu0  ;;  %v4329_v24 = vpack.i.bf16 %v1491_v19, %v1492_v20 }
  0xe7   :  { %v5136_v26 = vpop.f32.mrf.mxu1  ;;  %v498_v27 = vmul.f32 %v5004_v61, %v5132_v22 }
  0xe8   :  { %4330 = vrot.lane.b32.xlu2 %v4329_v24, %s4714_s0  ;;  %679 = vrot.lane.b32.xlu1 %v639_v25, %s4713_s11  ;;  %v640_v48 = vmul.f32 %v5011_v63, %v5136_v26 }
  0xe9   :  { %541 = vrot.lane.b32.xlu0 %v498_v27, %s4713_s11 }
  0xed   :  { %v296_v32 = vpop.f32.mrf.mxu2  ;;  %v1493_v43 = vld [vmem:[#allocation2 + $0x100] sm:$0xff] }
  0xee   :  { %346 = vst.msk [vmem:[#allocation2 + $0x118] sm:$0xff] %vm67_vm0, %v296_v32  ;;  %v5145_v34 = vpop.f32.mrf.mxu0 }
  0xef   :  { %v5147_v59 = vpop.f32.mrf.mxu1  ;;  %v499_v35 = vmul.f32 %v5026_v6, %v5145_v34 }
  0xf0   :  { %539 = vrot.lane.b32.xlu2 %v497_v31, %s4713_s11  ;;  %v641_v63 = vmul.f32 %v460_v30, %v5147_v59  ;;  %v361_v31 = vld [vmem:[%s7835_s2 + $0x10] sm:$0xff] }
  0xf1   :  { %543 = vrot.lane.b32.xlu1 %v499_v35, %s4713_s11 }
  0xf3   :  { %v522_v38 = vpop.permute.xlu2 %521 }
  0xf4   :  { %v568_v45 = vadd.f32 %v522_v38, %v408_v40 }
  0xf5   :  { %v299_v42 = vpop.f32.mrf.mxu2  ;;  %v1494_v44 = vld [vmem:[#allocation2 + $0x118] sm:$0xff] }
  0xf6   :  { %349 = vst.msk [vmem:[#allocation2 + $0x130] sm:$0xff] %vm67_vm0, %v299_v42  ;;  %v5161_v47 = vpop.f32.mrf.mxu0  ;;  %v4334_v50 = vpack.i.bf16 %v1493_v43, %v1494_v44  ;;  %v409_v42 = vmul.f32 %v361_v31, %v5042_v14 }
  0xf7   :  { %v5165_v51 = vpop.f32.mrf.mxu1  ;;  %584 = vst.msk [vmem:[#allocation3 + $0x10] sm:$0xff] %vm67_vm0, %v568_v45  ;;  %v500_v54 = vmul.f32 %v466_v52, %v5161_v47 }
  0xf8   :  { %681 = vrot.lane.b32.xlu2 %v640_v48, %s4713_s11  ;;  %4335 = vrot.lane.b32.xlu0 %v4334_v50, %s4714_s0  ;;  %v642_v7 = vmul.f32 %v5004_v61, %v5165_v51  ;;  %v359_v61 = vld [vmem:[%s7835_s2] sm:$0xff] }
  0xf9   :  { %v407_v9 = vmul.f32 %v359_v61, %v5015_v1 }
  0xfa   :  { %685 = vrot.lane.b32.xlu1 %v642_v7, %s4713_s11 }
  0xfc   :  { %v664_v2 = vpop.permute.xlu2 %663 }
  0xfd   :  { %v302_v57 = vpop.f32.mrf.mxu2  ;;  %v1495_v13 = vld [vmem:[#allocation2 + $0x130] sm:$0xff] }
  0xfe   :  { %352 = vst.msk [vmem:[#allocation2 + $0x148] sm:$0xff] %vm67_vm0, %v302_v57 }
  0xff   :  { %v5176_v56 = vpop.f32.mrf.mxu1 }
 0x100   :  { %683 = vrot.lane.b32.xlu0 %v641_v63, %s4713_s11  ;;  %545 = vrot.lane.b32.xlu2 %v500_v54, %s4713_s11  ;;  %v643_v24 = vmul.f32 %v5026_v6, %v5176_v56  ;;  %v5206_v6 = vld [vmem:[%s7835_s2 + $0x78] sm:$0xff]  ;;  %v616_v63 = vmul.f32 %v5155_v37, %v5054_v23 }
 0x101   :  { %v422_v35 = vmul.f32 %v5206_v6, %v5031_v8 }
 0x103   :  { %v520_v5 = vpop.permute.xlu1 %519 }
 0x104   :  { %v548_v53 = vpop.permute.xlu0 %547  ;;  %v567_v19 = vadd.f32 %v520_v5, %v407_v9 }
 0x105   :  { %v305_v11 = vpop.f32.mrf.mxu2  ;;  %v1496_v62 = vld [vmem:[#allocation2 + $0x148] sm:$0xff]  ;;  %v581_v18 = vadd.f32 %v548_v53, %v421_v3  ;;  %v615_v3 = vmul.f32 %v359_v61, %v5044_v15 }
 0x106   :  { %355 = vst.msk [vmem:[#allocation2 + $0x160] sm:$0xff] %vm67_vm0, %v305_v11  ;;  %v4339_v20 = vpack.i.bf16 %v1495_v13, %v1496_v62  ;;  %v362_v11 = vld [vmem:[%s7835_s2 + $0x18] sm:$0xff] }
 0x107   :  { %v5194_v25 = vpop.f32.mrf.mxu1  ;;  %597 = vst.msk [vmem:[#allocation3 + $0xe0] sm:$0xff] %vm67_vm0, %v581_v18  ;;  %v711_v53 = vadd.f32 %v664_v2, %v615_v3  ;;  %v410_v15 = vmul.f32 %v362_v11, %v5052_v21  ;;  %v618_v13 = vmul.f32 %v362_v11, %v5070_v36  ;;  %v364_v18 = vld [vmem:[%s7835_s2 + $0x28] sm:$0xff]  ;;  %v617_v21 = vmul.f32 %v361_v31, %v5063_v29  ;;  %v365_v29 = vld [vmem:[%s7835_s2 + $0x30] sm:$0xff] }
 0x108   :  { %4340 = vrot.lane.b32.xlu1 %v4339_v20, %s4714_s0  ;;  %687 = vrot.lane.b32.xlu2 %v643_v24, %s4713_s11  ;;  %v644_v1 = vmul.f32 %v466_v52, %v5194_v25  ;;  %583 = vst.msk [vmem:[#allocation3] sm:$0xff] %vm67_vm0, %v567_v19  ;;  %v412_v36 = vmul.f32 %v364_v18, %v5067_v33 }
 0x10a   :  { %689 = vrot.lane.b32.xlu0 %v644_v1, %s4713_s11 }
 0x10d   :  { %v308_v27 = vpop.f32.mrf.mxu2  ;;  %v1497_v48 = vld [vmem:[#allocation2 + $0x160] sm:$0xff] }
 0x10e   :  { %358 = vst.msk [vmem:[#allocation2 + $0x178] sm:$0xff] %vm67_vm0, %v308_v27 }
 0x10f   :  { %v5208_v30 = vpop.f32.mrf.mxu1 }
 0x110   :  { %v645_v32 = vmul.f32 %v5013_v0, %v5208_v30  ;;  %v363_v0 = vld [vmem:[%s7835_s2 + $0x20] sm:$0xff] }
 0x111   :  { %v411_v14 = vmul.f32 %v363_v0, %v5061_v28 }
 0x112   :  { %v5217_v38 = vpop.permute.xlu2 %4315  ;;  %v550_v40 = vpop.permute.xlu1 %549  ;;  %691 = vrot.lane.b32.xlu1 %v645_v32, %s4713_s11 }
 0x113   :  { %v582_v43 = vadd.f32 %v550_v40, %v422_v35  ;;  %v524_v44 = vpop.permute.xlu0 %523  ;;  %v413_v35 = vmul.f32 %v365_v29, %v5078_v39 }
 0x114   :  { %v569_v45 = vadd.f32 %v524_v44, %v409_v42  ;;  %v620_v44 = vmul.f32 %v364_v18, %v5092_v49  ;;  %v367_v49 = vld [vmem:[%s7835_s2 + $0x40] sm:$0xff] }
 0x115   :  { %598 = vst.msk [vmem:[#allocation3 + $0xf0] sm:$0xff] %vm67_vm0, %v582_v43  ;;  %v1498_v50 = vld [vmem:[#allocation2 + $0x178] sm:$0xff] }
 0x116   :  { %v5222_v7 = vpack.i.bf16 %v1497_v48, %v1498_v50  ;;  %585 = vst.msk [vmem:[#allocation3 + $0x20] sm:$0xff] %vm67_vm0, %v569_v45 }
 0x117   :  { %v5228_v8 = vpop.f32.mrf.mxu1 }
 0x118   :  { %4345 = vrot.lane.b32.xlu2 %v5222_v7, %s4714_s0  ;;  %4350 = vrot.lane.b32.xlu0 %v5222_v7, %s4715_s13  ;;  %v646_v28 = vmul.f32 %v5037_v12, %v5228_v8  ;;  %v366_v12 = vld [vmem:[%s7835_s2 + $0x38] sm:$0xff] }
 0x119   :  { %v414_v19 = vmul.f32 %v366_v12, %v5089_v46  ;;  %v621_v46 = vmul.f32 %v365_v29, %v5105_v58  ;;  %v619_v58 = vmul.f32 %v363_v0, %v5082_v41  ;;  %v415_v41 = vmul.f32 %v367_v49, %v5101_v55 }
 0x11a   :  { %v528_v52 = vpop.permute.xlu2 %527  ;;  %v5235_v54 = vpop.permute.xlu1 %4310 }
 0x11b   :  { %v571_v57 = vadd.f32 %v528_v52, %v411_v14  ;;  %v369_v52 = vld [vmem:[%s7835_s2 + $0x50] sm:$0xff] }
 0x11c   :  { %v666_v5 = vpop.permute.xlu0 %665 }
 0x11d   :  { %587 = vst.msk [vmem:[#allocation3 + $0x40] sm:$0xff] %vm67_vm0, %v571_v57  ;;  %v712_v9 = vadd.f32 %v666_v5, %v616_v63  ;;  %v417_v57 = vmul.f32 %v369_v52, %v5123_v16 }
 0x11f   :  { %745 = vrot.lane.b32.xlu1 %v712_v9, %s4713_s11 }
 0x120   :  { %743 = vrot.lane.b32.xlu0 %v711_v53, %s4713_s11  ;;  %693 = vrot.lane.b32.xlu2 %v646_v28, %s4713_s11  ;;  %v368_v53 = vld [vmem:[%s7835_s2 + $0x48] sm:$0xff] }
 0x121   :  { %v624_v11 = vmul.f32 %v368_v53, %v5136_v26  ;;  %v416_v16 = vmul.f32 %v368_v53, %v5110_v4  ;;  %v370_v26 = vld [vmem:[%s7835_s2 + $0x58] sm:$0xff]  ;;  %v372_v4 = vld [vmem:[%s7835_s2 + $0x68] sm:$0xff] }
 0x122   :  { %v670_v23 = vpop.permute.xlu2 %669  ;;  %v526_v37 = vpop.permute.xlu1 %525 }
 0x123   :  { %v570_v61 = vadd.f32 %v526_v37, %v410_v15  ;;  %v714_v62 = vadd.f32 %v670_v23, %v618_v13  ;;  %v622_v15 = vmul.f32 %v366_v12, %v5114_v10  ;;  %v623_v10 = vmul.f32 %v367_v49, %v5127_v17  ;;  %v371_v17 = vld [vmem:[%s7835_s2 + $0x60] sm:$0xff]  ;;  %s4716_s2 = smov 96  }
 0x125   :  { %586 = vst.msk [vmem:[#allocation3 + $0x30] sm:$0xff] %vm67_vm0, %v570_v61 }
 0x128   :  { %749 = vrot.lane.b32.xlu0 %v714_v62, %s4713_s11  ;;  %v420_v62 = vmul.f32 %v372_v4, %v5161_v47  ;;  %v627_v47 = vmul.f32 %v371_v17, %v5176_v56 }
 0x12a   :  { %v668_v20 = vpop.permute.xlu1 %667  ;;  %v534_v24 = vpop.permute.xlu2 %533 }
 0x12b   :  { %v713_v1 = vadd.f32 %v668_v20, %v617_v21  ;;  %v574_v2 = vadd.f32 %v534_v24, %v414_v19  ;;  %v530_v27 = vpop.permute.xlu0 %529  ;;  %v418_v21 = vmul.f32 %v370_v26, %v5132_v22 }
 0x12c   :  { %v572_v32 = vadd.f32 %v530_v27, %v412_v36 }
 0x12d   :  { %590 = vst.msk [vmem:[#allocation3 + $0x70] sm:$0xff] %vm67_vm0, %v574_v2  ;;  %747 = vrot.lane.b32.xlu2 %v713_v1, %s4713_s11  ;;  %v419_v2 = vmul.f32 %v371_v17, %v5145_v34 }
 0x12e   :  { %588 = vst.msk [vmem:[#allocation3 + $0x50] sm:$0xff] %vm67_vm0, %v572_v32 }
 0x132   :  { %v676_v31 = vpop.permute.xlu2 %675 }
 0x133   :  { %v717_v33 = vadd.f32 %v676_v31, %v621_v46  ;;  %v532_v40 = vpop.permute.xlu1 %531  ;;  %v626_v46 = vmul.f32 %v370_v26, %v5165_v51 }
 0x134   :  { %v573_v42 = vadd.f32 %v532_v40, %v413_v35 }
 0x135   :  { %755 = vrot.lane.b32.xlu0 %v717_v33, %s4713_s11  ;;  %v625_v33 = vmul.f32 %v369_v52, %v5147_v59 }
 0x136   :  { %589 = vst.msk [vmem:[#allocation3 + $0x60] sm:$0xff] %vm67_vm0, %v573_v42 }
 0x13a   :  { %v5272_v43 = vpop.permute.xlu0 %4320 }
 0x13c   :  { %v674_v45 = vpop.permute.xlu1 %673 }
 0x13d   :  { %v716_v48 = vadd.f32 %v674_v45, %v620_v44  ;;  %v630_v45 = vmul.f32 %v5206_v6, %v5228_v8  ;;  %v629_v8 = vmul.f32 %v5186_v60, %v5208_v30  ;;  %v4322_v60 = vunpack.i.l.bf16 %v5272_v43 }
 0x13e   :  { %v4323_v30 = vunpack.i.h.bf16 %v5272_v43 }
 0x13f   :  { %753 = vrot.lane.b32.xlu2 %v716_v48, %s4713_s11 }
 0x142   :  { %v5277_v50 = vpop.permute.xlu2 %4330  ;;  %v672_v39 = vpop.permute.xlu0 %671 }
 0x143   :  { %v715_v14 = vadd.f32 %v672_v39, %v619_v58  ;;  %v4332_v6 = vunpack.i.l.bf16 %v5277_v50 }
 0x145   :  { %751 = vrot.lane.b32.xlu1 %v715_v14, %s4713_s11  ;;  %v628_v14 = vmul.f32 %v372_v4, %v5194_v25  ;;  %v4333_v25 = vunpack.i.h.bf16 %v5277_v50  ;;  %v4317_v50 = vunpack.i.l.bf16 %v5217_v38 }
 0x14a   :  { %v540_v63 = vpop.permute.xlu2 %539  ;;  %v5287_v3 = vpop.permute.xlu1 %4325 }
 0x14b   :  { %v577_v0 = vadd.f32 %v540_v63, %v417_v57  ;;  %v536_v5 = vpop.permute.xlu0 %535  ;;  %v4328_v53 = vunpack.i.h.bf16 %v5287_v3 }
 0x14c   :  { %v575_v9 = vadd.f32 %v536_v5, %v415_v41 }
 0x14d   :  { %593 = vst.msk [vmem:[#allocation3 + $0xa0] sm:$0xff] %vm67_vm0, %v577_v0 }
 0x14e   :  { %591 = vst.msk [vmem:[#allocation3 + $0x80] sm:$0xff] %vm67_vm0, %v575_v9  ;;  %v4327_v9 = vunpack.i.l.bf16 %v5287_v3  ;;  %v4312_v3 = vunpack.i.l.bf16 %v5235_v54 }
 0x152   :  { %v682_v28 = vpop.permute.xlu2 %681  ;;  %v538_v23 = vpop.permute.xlu1 %537 }
 0x153   :  { %v720_v55 = vadd.f32 %v682_v28, %v624_v11  ;;  %v678_v37 = vpop.permute.xlu0 %677  ;;  %v576_v61 = vadd.f32 %v538_v23, %v416_v16  ;;  %v4318_v16 = vunpack.i.h.bf16 %v5217_v38  ;;  %v4313_v23 = vunpack.i.h.bf16 %v5235_v54 }
 0x154   :  { %v718_v13 = vadd.f32 %v678_v37, %v622_v15 }
 0x155   :  { %592 = vst.msk [vmem:[#allocation3 + $0x90] sm:$0xff] %vm67_vm0, %v576_v61  ;;  %761 = vrot.lane.b32.xlu0 %v720_v55, %s4713_s11 }
 0x156   :  { %757 = vrot.lane.b32.xlu1 %v718_v13, %s4713_s11 }
 0x15a   :  { %v680_v12 = vpop.permute.xlu1 %679  ;;  %v546_v18 = vpop.permute.xlu2 %545 }
 0x15b   :  { %v719_v19 = vadd.f32 %v680_v12, %v623_v10  ;;  %v580_v20 = vadd.f32 %v546_v18, %v420_v62  ;;  %v542_v24 = vpop.permute.xlu0 %541 }
 0x15c   :  { %v578_v36 = vadd.f32 %v542_v24, %v418_v21 }
 0x15d   :  { %596 = vst.msk [vmem:[#allocation3 + $0xd0] sm:$0xff] %vm67_vm0, %v580_v20  ;;  %759 = vrot.lane.b32.xlu2 %v719_v19, %s4713_s11 }
 0x15e   :  { %594 = vst.msk [vmem:[#allocation3 + $0xb0] sm:$0xff] %vm67_vm0, %v578_v36 }
 0x162   :  { %v688_v1 = vpop.permute.xlu2 %687 }
 0x163   :  { %v723_v22 = vadd.f32 %v688_v1, %v627_v47  ;;  %v544_v27 = vpop.permute.xlu1 %543 }
 0x164   :  { %v579_v32 = vadd.f32 %v544_v27, %v419_v2 }
 0x165   :  { %767 = vrot.lane.b32.xlu0 %v723_v22, %s4713_s11 }
 0x166   :  { %595 = vst.msk [vmem:[#allocation3 + $0xc0] sm:$0xff] %vm67_vm0, %v579_v32 }
 0x16a   :  { %v4336_v29 = vpop.permute.xlu0 %4335 }
 0x16b   :  { %v4337_v57 = vunpack.i.l.bf16 %v4336_v29  ;;  %v4338_v63 = vunpack.i.h.bf16 %v4336_v29 }
 0x16c   :  { %v686_v31 = vpop.permute.xlu1 %685 }
 0x16d   :  { %v722_v35 = vadd.f32 %v686_v31, %v626_v46 }
 0x16f   :  { %765 = vrot.lane.b32.xlu2 %v722_v35, %s4713_s11 }
 0x172   :  { %v4346_v56 = vpop.permute.xlu2 %4345  ;;  %v684_v40 = vpop.permute.xlu0 %683 }
 0x173   :  { %v721_v42 = vadd.f32 %v684_v40, %v625_v33  ;;  %v4347_v34 = vunpack.i.l.bf16 %v4346_v56  ;;  %v4348_v44 = vunpack.i.h.bf16 %v4346_v56 }
 0x175   :  { %2108 = vmatpush.msrb.mxu2 %v4347_v34  ;;  %763 = vrot.lane.b32.xlu1 %v721_v42, %s4713_s11 }
 0x177   :  { %2109 = vmatpush.msrb.mxu2 %v4348_v44 }
 0x17a   :  { %v4341_v48 = vpop.permute.xlu1 %4340  ;;  %v694_v51 = vpop.permute.xlu2 %693 }
 0x17b   :  { %v726_v58 = vadd.f32 %v694_v51, %v630_v45  ;;  %v4342_v39 = vunpack.i.l.bf16 %v4341_v48  ;;  %v4343_v59 = vunpack.i.h.bf16 %v4341_v48 }
 0x17c   :  { %v690_v49 = vpop.permute.xlu0 %689 }
 0x17d   :  { %773 = vrot.lane.b32.xlu0 %v726_v58, %s4713_s11  ;;  %2110 = vmatpush.msrb.mxu2 %v4342_v39  ;;  %v724_v52 = vadd.f32 %v690_v49, %v628_v14 }
 0x17f   :  { %2111 = vmatpush.msrb.mxu2 %v4343_v59  ;;  %769 = vrot.lane.b32.xlu1 %v724_v52, %s4713_s11 }
 0x181   :  { %2112 = vmatpush.msrb.mxu2 %v4337_v57 }
 0x183   :  { %2113 = vmatpush.msrb.mxu2 %v4338_v63 }
 0x184   :  { %v692_v41 = vpop.permute.xlu1 %691 }
 0x185   :  { %2114 = vmatpush.msrb.mxu2 %v4332_v6  ;;  %v725_v0 = vadd.f32 %v692_v41, %v629_v8 }
 0x187   :  { %v748_v5 = vpop.permute.xlu2 %747  ;;  %2115 = vmatpush.msrb.mxu2 %v4333_v25  ;;  %771 = vrot.lane.b32.xlu2 %v725_v0, %s4713_s11 }
 0x188   :  { %794 = vst.msk [vmem:[#allocation3 + $0x20] sm:$0xff] %vm791_vm1, %v748_v5 }
 0x189   :  { %2116 = vmatpush.msrb.mxu2 %v4327_v9 }
 0x18a   :  { %v4351_v11 = vpop.permute.xlu0 %4350 }
 0x18b   :  { %2117 = vmatpush.msrb.mxu2 %v4328_v53  ;;  %v4352_v55 = vunpack.i.l.bf16 %v4351_v11  ;;  %v4353_v43 = vunpack.i.h.bf16 %v4351_v11 }
 0x18d   :  { %2118 = vmatpush.msrb.mxu2 %v4322_v60 }
 0x18f   :  { %2119 = vmatpush.msrb.mxu2 %v4323_v30  ;;  %v5382_v10 = vld [vmem:[#allocation3 + $0x20] sm:$0xff] }
 0x191   :  { %2120 = vmatpush.msrb.mxu2 %v4317_v50  ;;  %v746_v28 = vpop.permute.xlu1 %745 }
 0x192   :  { %v744_v15 = vpop.permute.xlu0 %743  ;;  %793 = vst.msk [vmem:[#allocation3 + $0x10] sm:$0xff] %vm791_vm1, %v746_v28 }
 0x193   :  { %792 = vst.msk [vmem:[#allocation3] sm:$0xff] %vm791_vm1, %v744_v15  ;;  %2121 = vmatpush.msrb.mxu2 %v4318_v16 }
 0x195   :  { %2122 = vmatpush.msrb.mxu2 %v4312_v3 }
 0x197   :  { %2123 = vmatpush.msrb.mxu2 %v4313_v23 }
 0x199   :  { %3714 = vmatpush.msra.mxu2 %v4352_v55  ;;  %v754_v37 = vpop.permute.xlu2 %753  ;;  %v5355_v54 = vld [vmem:[#allocation3 + $0x10] sm:$0xff] }
 0x19a   :  { %v750_v61 = vpop.permute.xlu0 %749  ;;  %v5345_v38 = vld [vmem:[#allocation3] sm:$0xff]  ;;  %797 = vst.msk [vmem:[#allocation3 + $0x50] sm:$0xff] %vm791_vm1, %v754_v37 }
 0x19b   :  { %3715 = vmatpush.msra.mxu2 %v4353_v43  ;;  %795 = vst.msk [vmem:[#allocation3 + $0x30] sm:$0xff] %vm791_vm1, %v750_v61  ;;  %872 = vrot.lane.b32.xlu1 %v5345_v38, %s4713_s11 }
 0x19c   :  { %2318 = vrot.lane.b32.xlu2 %v5345_v38, %s4716_s2  ;;  %1515 = vrot.lane.b32.xlu0 %v5345_v38, %s4714_s0 }
 0x1a1   :  { %v5426_v17 = vld [vmem:[#allocation3 + $0x50] sm:$0xff] }
 0x1a2   :  { %v5401_v21 = vld [vmem:[#allocation3 + $0x30] sm:$0xff] }
 0x1a3   :  { %3153 = vrot.lane.b32.xlu1 %v5345_v38, %s4717_s9  ;;  %7864 = vst [vmem:[#allocation7_spill] sm:$0xff] %v5401_v21 }
 0x1a4   :  { %874 = vrot.lane.b32.xlu2 %v5355_v54, %s4713_s11  ;;  %1547 = vrot.lane.b32.xlu0 %v5345_v38, %s4718_s10 }
 0x1a7   :  { %v756_v13 = vpop.permute.xlu0 %755 }
 0x1a8   :  { %798 = vst.msk [vmem:[#allocation3 + $0x60] sm:$0xff] %vm791_vm1, %v756_v13 }
 0x1ab   :  { %1517 = vrot.lane.b32.xlu1 %v5355_v54, %s4714_s0 }
 0x1ac   :  { %1549 = vrot.lane.b32.xlu2 %v5355_v54, %s4718_s10  ;;  %2350 = vrot.lane.b32.xlu0 %v5345_v38, %s4719_s12 }
 0x1af   :  { %v5452_v27 = vld [vmem:[#allocation3 + $0x60] sm:$0xff] }
 0x1b3   :  { %2352 = vrot.lane.b32.xlu1 %v5355_v54, %s4719_s12 }
 0x1b4   :  { %3155 = vrot.lane.b32.xlu2 %v5355_v54, %s4717_s9  ;;  %3121 = vrot.lane.b32.xlu0 %v5345_v38, %s4715_s13 }
 0x1b7   :  { %v752_v26 = vpop.permute.xlu1 %751  ;;  %v760_v4 = vpop.permute.xlu2 %759 }
 0x1b8   :  { %796 = vst.msk [vmem:[#allocation3 + $0x40] sm:$0xff] %vm791_vm1, %v752_v26 }
 0x1b9   :  { %800 = vst.msk [vmem:[#allocation3 + $0x80] sm:$0xff] %vm791_vm1, %v760_v4 }
 0x1bb   :  { %2320 = vrot.lane.b32.xlu1 %v5355_v54, %s4716_s2 }
 0x1bc   :  { %3123 = vrot.lane.b32.xlu2 %v5355_v54, %s4715_s13  ;;  %876 = vrot.lane.b32.xlu0 %v5382_v10, %s4713_s11 }
 0x1bf   :  { %v5410_v20 = vld [vmem:[#allocation3 + $0x40] sm:$0xff] }
 0x1c0   :  { %v5512_v58 = vld [vmem:[#allocation3 + $0x80] sm:$0xff] }
 0x1c1   :  { %7875 = vst [vmem:[#allocation18_spill] sm:$0xff] %v5512_v58 }
 0x1c3   :  { %1551 = vrot.lane.b32.xlu1 %v5382_v10, %s4718_s10 }
 0x1c4   :  { %1519 = vrot.lane.b32.xlu2 %v5382_v10, %s4714_s0  ;;  %3157 = vrot.lane.b32.xlu0 %v5382_v10, %s4717_s9 }
 0x1c7   :  { %v762_v62 = vpop.permute.xlu0 %761 }
 0x1c8   :  { %801 = vst.msk [vmem:[#allocation3 + $0x90] sm:$0xff] %vm791_vm1, %v762_v62  ;;  %v758_v12 = vpop.permute.xlu1 %757 }
 0x1c9   :  { %799 = vst.msk [vmem:[#allocation3 + $0x70] sm:$0xff] %vm791_vm1, %v758_v12  ;;  %v766_v18 = vpop.permute.xlu2 %765 }
 0x1ca   :  { %803 = vst.msk [vmem:[#allocation3 + $0xb0] sm:$0xff] %vm791_vm1, %v766_v18 }
 0x1cb   :  { %3125 = vrot.lane.b32.xlu1 %v5382_v10, %s4715_s13 }
 0x1cc   :  { %2354 = vrot.lane.b32.xlu2 %v5382_v10, %s4719_s12  ;;  %2322 = vrot.lane.b32.xlu0 %v5382_v10, %s4716_s2 }
 0x1cf   :  { %v5538_v63 = vld [vmem:[#allocation3 + $0x90] sm:$0xff] }
 0x1d0   :  { %v5474_v35 = vld [vmem:[#allocation3 + $0x70] sm:$0xff]  ;;  %7879 = vst [vmem:[#allocation22_spill] sm:$0xff] %v5538_v63 }
 0x1d1   :  { %7867 = vst [vmem:[#allocation10_spill] sm:$0xff] %v5474_v35  ;;  %v5602_v23 = vld [vmem:[#allocation3 + $0xb0] sm:$0xff] }
 0x1d2   :  { %7892 = vst [vmem:[#allocation35_spill] sm:$0xff] %v5602_v23 }
 0x1d3   :  { %878 = vrot.lane.b32.xlu1 %v5401_v21, %s4713_s11 }
 0x1d4   :  { %3127 = vrot.lane.b32.xlu2 %v5401_v21, %s4715_s13  ;;  %1521 = vrot.lane.b32.xlu0 %v5401_v21, %s4714_s0 }
 0x1d7   :  { %v768_v19 = vpop.permute.xlu0 %767 }
 0x1d8   :  { %804 = vst.msk [vmem:[#allocation3 + $0xc0] sm:$0xff] %vm791_vm1, %v768_v19 }
 0x1db   :  { %3159 = vrot.lane.b32.xlu1 %v5401_v21, %s4717_s9 }
 0x1dc   :  { %880 = vrot.lane.b32.xlu2 %v5410_v20, %s4713_s11  ;;  %1553 = vrot.lane.b32.xlu0 %v5401_v21, %s4718_s10 }
 0x1df   :  { %v5628_v4 = vld [vmem:[#allocation3 + $0xc0] sm:$0xff] }
 0x1e0   :  { %7897 = vst [vmem:[#allocation40_spill] sm:$0xff] %v5628_v4 }
 0x1e1   :  { %v772_v24 = vpop.permute.xlu2 %771 }
 0x1e2   :  { %806 = vst.msk [vmem:[#allocation3 + $0xe0] sm:$0xff] %vm791_vm1, %v772_v24 }
 0x1e3   :  { %1523 = vrot.lane.b32.xlu1 %v5410_v20, %s4714_s0 }
 0x1e4   :  { %3161 = vrot.lane.b32.xlu2 %v5410_v20, %s4717_s9  ;;  %2356 = vrot.lane.b32.xlu0 %v5401_v21, %s4719_s12 }
 0x1e7   :  { %v764_v36 = vpop.permute.xlu1 %763 }
 0x1e8   :  { %802 = vst.msk [vmem:[#allocation3 + $0xa0] sm:$0xff] %vm791_vm1, %v764_v36 }
 0x1eb   :  { %1555 = vrot.lane.b32.xlu1 %v5410_v20, %s4718_s10 }
 0x1ec   :  { %1557 = vrot.lane.b32.xlu2 %v5426_v17, %s4718_s10  ;;  %2324 = vrot.lane.b32.xlu0 %v5401_v21, %s4716_s2 }
 0x1ef   :  { %v774_v47 = vpop.permute.xlu0 %773  ;;  %v5576_v60 = vld [vmem:[#allocation3 + $0xa0] sm:$0xff] }
 0x1f0   :  { %807 = vst.msk [vmem:[#allocation3 + $0xf0] sm:$0xff] %vm791_vm1, %v774_v47 }
 0x1f1   :  { %v770_v1 = vpop.permute.xlu1 %769  ;;  %7886 = vst [vmem:[#allocation29_spill] sm:$0xff] %v5576_v60 }
 0x1f2   :  { %805 = vst.msk [vmem:[#allocation3 + $0xd0] sm:$0xff] %vm791_vm1, %v770_v1 }
 0x1f3   :  { %2358 = vrot.lane.b32.xlu1 %v5410_v20, %s4719_s12 }
 0x1f4   :  { %2360 = vrot.lane.b32.xlu2 %v5426_v17, %s4719_s12  ;;  %3129 = vrot.lane.b32.xlu0 %v5410_v20, %s4715_s13 }
 0x1f6   :  { %v5442_v2 = vpop.permute.xlu2 %2318 }
 0x1f7   :  { %7865 = vst [vmem:[#allocation8_spill] sm:$0xff] %v5442_v2  ;;  %v5718_v2 = vld [vmem:[#allocation3 + $0xf0] sm:$0xff] }
 0x1f8   :  { %7916 = vst [vmem:[#allocation59_spill] sm:$0xff] %v5718_v2 }
 0x1f9   :  { %v5654_v47 = vld [vmem:[#allocation3 + $0xd0] sm:$0xff] }
 0x1fa   :  { %7902 = vst [vmem:[#allocation45_spill] sm:$0xff] %v5654_v47 }
 0x1fb   :  { %2326 = vrot.lane.b32.xlu1 %v5410_v20, %s4716_s2 }
 0x1fc   :  { %2328 = vrot.lane.b32.xlu2 %v5426_v17, %s4716_s2  ;;  %882 = vrot.lane.b32.xlu0 %v5426_v17, %s4713_s11 }
 0x1fe   :  { %v5450_v22 = vpop.permute.xlu2 %874 }
 0x203   :  { %3131 = vrot.lane.b32.xlu1 %v5426_v17, %s4715_s13 }
 0x204   :  { %1527 = vrot.lane.b32.xlu2 %v5452_v27, %s4714_s0  ;;  %1525 = vrot.lane.b32.xlu0 %v5426_v17, %s4714_s0 }
 0x206   :  { %v5460_v32 = vpop.permute.xlu2 %1549 }
 0x20b   :  { %884 = vrot.lane.b32.xlu1 %v5452_v27, %s4713_s11 }
 0x20c   :  { %3133 = vrot.lane.b32.xlu2 %v5452_v27, %s4715_s13  ;;  %3163 = vrot.lane.b32.xlu0 %v5426_v17, %s4717_s9 }
 0x20d   :  { %v5468_v29 = vpop.permute.xlu1 %872 }
 0x20e   :  { %v5470_v46 = vpop.permute.xlu2 %3155  ;;  %v5472_v31 = vpop.permute.xlu0 %1515 }
 0x20f   :  { %7866 = vst [vmem:[#allocation9_spill] sm:$0xff] %v5470_v46 }
 0x213   :  { %1559 = vrot.lane.b32.xlu1 %v5452_v27, %s4718_s10 }
 0x214   :  { %886 = vrot.lane.b32.xlu2 %v5474_v35, %s4713_s11  ;;  %2362 = vrot.lane.b32.xlu0 %v5452_v27, %s4719_s12 }
 0x215   :  { %v5482_v33 = vpop.permute.xlu1 %3153 }
 0x216   :  { %7868 = vst [vmem:[#allocation11_spill] sm:$0xff] %v5482_v33  ;;  %v5484_v56 = vpop.permute.xlu2 %3123  ;;  %v5486_v40 = vpop.permute.xlu0 %1547  ;;  %v5742_v33 = vld [vmem:[#allocation2 + $0xe8] sm:$0xff] }
 0x217   :  { %7869 = vst [vmem:[#allocation12_spill] sm:$0xff] %v5484_v56  ;;  %v5680_v56 = vld [vmem:[#allocation3 + $0xe0] sm:$0xff] }
 0x218   :  { %7908 = vst [vmem:[#allocation51_spill] sm:$0xff] %v5680_v56 }
 0x21b   :  { %3165 = vrot.lane.b32.xlu1 %v5452_v27, %s4717_s9 }
 0x21c   :  { %1561 = vrot.lane.b32.xlu2 %v5474_v35, %s4718_s10  ;;  %2330 = vrot.lane.b32.xlu0 %v5452_v27, %s4716_s2 }
 0x21d   :  { %v5494_v42 = vpop.permute.xlu1 %1517 }
 0x21e   :  { %v5496_v34 = vpop.permute.xlu2 %1519  ;;  %v5498_v44 = vpop.permute.xlu0 %2350 }
 0x21f   :  { %7870 = vst [vmem:[#allocation13_spill] sm:$0xff] %v5496_v34 }
 0x220   :  { %7871 = vst [vmem:[#allocation14_spill] sm:$0xff] %v5498_v44 }
 0x223   :  { %1529 = vrot.lane.b32.xlu1 %v5474_v35, %s4714_s0 }
 0x224   :  { %3167 = vrot.lane.b32.xlu2 %v5474_v35, %s4717_s9  ;;  %2332 = vrot.lane.b32.xlu0 %v5474_v35, %s4716_s2 }
 0x225   :  { %v5506_v45 = vpop.permute.xlu1 %2352 }
 0x226   :  { %7872 = vst [vmem:[#allocation15_spill] sm:$0xff] %v5506_v45  ;;  %v5508_v48 = vpop.permute.xlu2 %2354  ;;  %v5510_v51 = vpop.permute.xlu0 %3121 }
 0x227   :  { %7873 = vst [vmem:[#allocation16_spill] sm:$0xff] %v5508_v48 }
 0x228   :  { %7874 = vst [vmem:[#allocation17_spill] sm:$0xff] %v5510_v51 }
 0x22b   :  { %2364 = vrot.lane.b32.xlu1 %v5474_v35, %s4719_s12 }
 0x22c   :  { %2366 = vrot.lane.b32.xlu2 %v5512_v58, %s4719_s12  ;;  %888 = vrot.lane.b32.xlu0 %v5512_v58, %s4713_s11 }
 0x22d   :  { %v5520_v39 = vpop.permute.xlu1 %2320 }
 0x22e   :  { %7876 = vst [vmem:[#allocation19_spill] sm:$0xff] %v5520_v39  ;;  %v5522_v14 = vpop.permute.xlu2 %3127  ;;  %v5524_v49 = vpop.permute.xlu0 %876 }
 0x22f   :  { %7877 = vst [vmem:[#allocation20_spill] sm:$0xff] %v5522_v14 }
 0x233   :  { %3135 = vrot.lane.b32.xlu1 %v5474_v35, %s4715_s13 }
 0x234   :  { %2334 = vrot.lane.b32.xlu2 %v5512_v58, %s4716_s2  ;;  %1531 = vrot.lane.b32.xlu0 %v5512_v58, %s4714_s0 }
 0x235   :  { %v5532_v59 = vpop.permute.xlu1 %1551 }
 0x236   :  { %v5534_v52 = vpop.permute.xlu2 %880  ;;  %v5536_v57 = vpop.permute.xlu0 %3157 }
 0x237   :  { %7878 = vst [vmem:[#allocation21_spill] sm:$0xff] %v5536_v57 }
 0x23b   :  { %890 = vrot.lane.b32.xlu1 %v5538_v63, %s4713_s11 }
 0x23c   :  { %1533 = vrot.lane.b32.xlu2 %v5538_v63, %s4714_s0  ;;  %1563 = vrot.lane.b32.xlu0 %v5512_v58, %s4718_s10 }
 0x23d   :  { %v5546_v6 = vpop.permute.xlu1 %3125 }
 0x23e   :  { %7880 = vst [vmem:[#allocation23_spill] sm:$0xff] %v5546_v6  ;;  %v5548_v8 = vpop.permute.xlu2 %3161  ;;  %v5550_v41 = vpop.permute.xlu0 %2322 }
 0x23f   :  { %7881 = vst [vmem:[#allocation24_spill] sm:$0xff] %v5548_v8 }
 0x240   :  { %7882 = vst [vmem:[#allocation25_spill] sm:$0xff] %v5550_v41 }
 0x243   :  { %3171 = vrot.lane.b32.xlu1 %v5538_v63, %s4717_s9 }
 0x244   :  { %1565 = vrot.lane.b32.xlu2 %v5538_v63, %s4718_s10  ;;  %3169 = vrot.lane.b32.xlu0 %v5512_v58, %s4717_s9 }
 0x245   :  { %v5558_v25 = vpop.permute.xlu1 %878 }
 0x246   :  { %v5560_v0 = vpop.permute.xlu2 %1557  ;;  %v5562_v5 = vpop.permute.xlu0 %1521 }
 0x247   :  { %7883 = vst [vmem:[#allocation26_spill] sm:$0xff] %v5562_v5 }
 0x24b   :  { %2336 = vrot.lane.b32.xlu1 %v5538_v63, %s4716_s2 }
 0x24c   :  { %3139 = vrot.lane.b32.xlu2 %v5538_v63, %s4715_s13  ;;  %3137 = vrot.lane.b32.xlu0 %v5512_v58, %s4715_s13 }
 0x24d   :  { %v5570_v9 = vpop.permute.xlu1 %3159 }
 0x24e   :  { %7884 = vst [vmem:[#allocation27_spill] sm:$0xff] %v5570_v9  ;;  %v5572_v53 = vpop.permute.xlu2 %2360  ;;  %v5574_v11 = vpop.permute.xlu0 %1553  ;;  %v5770_v9 = vld [vmem:[#allocation2 + $0x148] sm:$0xff] }
 0x24f   :  { %7885 = vst [vmem:[#allocation28_spill] sm:$0xff] %v5572_v53  ;;  %v5826_v53 = vld [vmem:[#allocation2 + $0x70] sm:$0xff] }
 0x253   :  { %1535 = vrot.lane.b32.xlu1 %v5576_v60, %s4714_s0 }
 0x254   :  { %892 = vrot.lane.b32.xlu2 %v5576_v60, %s4713_s11  ;;  %2368 = vrot.lane.b32.xlu0 %v5538_v63, %s4719_s12  ;;  %v5813_v63 = vld [vmem:[#allocation2 + $0x10] sm:$0xff] }
 0x255   :  { %v5584_v30 = vpop.permute.xlu1 %1523  ;;  %7929 = vst [vmem:[#allocation72_spill] sm:$0xff] %v5813_v63 }
 0x256   :  { %7887 = vst [vmem:[#allocation30_spill] sm:$0xff] %v5584_v30  ;;  %v5586_v50 = vpop.permute.xlu2 %2328  ;;  %v5588_v16 = vpop.permute.xlu0 %2356  ;;  %v5811_v30 = vld [vmem:[#allocation2 + $0x40] sm:$0xff] }
 0x257   :  { %7888 = vst [vmem:[#allocation31_spill] sm:$0xff] %v5586_v50 }
 0x258   :  { %7889 = vst [vmem:[#allocation32_spill] sm:$0xff] %v5588_v16 }
 0x259   :  { %7928 = vst [vmem:[#allocation71_spill] sm:$0xff] %v5811_v30 }
 0x25b   :  { %2370 = vrot.lane.b32.xlu1 %v5576_v60, %s4719_s12 }
 0x25c   :  { %3173 = vrot.lane.b32.xlu2 %v5576_v60, %s4717_s9  ;;  %1567 = vrot.lane.b32.xlu0 %v5576_v60, %s4718_s10 }
 0x25d   :  { %v5596_v28 = vpop.permute.xlu1 %1555 }
 0x25e   :  { %v5598_v15 = vpop.permute.xlu2 %1527  ;;  %v5600_v3 = vpop.permute.xlu0 %2324 }
 0x25f   :  { %7890 = vst [vmem:[#allocation33_spill] sm:$0xff] %v5598_v15 }
 0x260   :  { %7891 = vst [vmem:[#allocation34_spill] sm:$0xff] %v5600_v3 }
 0x263   :  { %3141 = vrot.lane.b32.xlu1 %v5576_v60, %s4715_s13 }
 0x264   :  { %2372 = vrot.lane.b32.xlu2 %v5602_v23, %s4719_s12  ;;  %2338 = vrot.lane.b32.xlu0 %v5576_v60, %s4716_s2  ;;  %v5794_v60 = vld [vmem:[#allocation2 + $0xa0] sm:$0xff] }
 0x265   :  { %v5610_v55 = vpop.permute.xlu1 %2358 }
 0x266   :  { %7893 = vst [vmem:[#allocation36_spill] sm:$0xff] %v5610_v55  ;;  %v5612_v43 = vpop.permute.xlu2 %3133  ;;  %v5614_v37 = vpop.permute.xlu0 %3129  ;;  %v5809_v55 = vld [vmem:[#allocation2 + $0x28] sm:$0xff] }
 0x267   :  { %7894 = vst [vmem:[#allocation37_spill] sm:$0xff] %v5612_v43 }
 0x268   :  { %7895 = vst [vmem:[#allocation38_spill] sm:$0xff] %v5614_v37 }
 0x269   :  { %7927 = vst [vmem:[#allocation70_spill] sm:$0xff] %v5809_v55 }
 0x26b   :  { %1569 = vrot.lane.b32.xlu1 %v5602_v23, %s4718_s10 }
 0x26c   :  { %2340 = vrot.lane.b32.xlu2 %v5602_v23, %s4716_s2  ;;  %894 = vrot.lane.b32.xlu0 %v5602_v23, %s4713_s11 }
 0x26d   :  { %v5622_v61 = vpop.permute.xlu1 %2326 }
 0x26e   :  { %7896 = vst [vmem:[#allocation39_spill] sm:$0xff] %v5622_v61  ;;  %v5624_v13 = vpop.permute.xlu2 %886  ;;  %v5626_v26 = vpop.permute.xlu0 %882 }
 0x273   :  { %896 = vrot.lane.b32.xlu1 %v5628_v4, %s4713_s11 }
 0x274   :  { %1539 = vrot.lane.b32.xlu2 %v5628_v4, %s4714_s0  ;;  %1537 = vrot.lane.b32.xlu0 %v5602_v23, %s4714_s0 }
 0x275   :  { %v5636_v62 = vpop.permute.xlu1 %3131 }
 0x276   :  { %7898 = vst [vmem:[#allocation41_spill] sm:$0xff] %v5636_v62  ;;  %v5638_v12 = vpop.permute.xlu2 %1561  ;;  %v5640_v18 = vpop.permute.xlu0 %1525 }
 0x277   :  { %7899 = vst [vmem:[#allocation42_spill] sm:$0xff] %v5640_v18  ;;  %v5792_v18 = vld [vmem:[#allocation2 + $0xb8] sm:$0xff] }
 0x27b   :  { %3177 = vrot.lane.b32.xlu1 %v5628_v4, %s4717_s9 }
 0x27c   :  { %3145 = vrot.lane.b32.xlu2 %v5628_v4, %s4715_s13  ;;  %3175 = vrot.lane.b32.xlu0 %v5602_v23, %s4717_s9 }
 0x27d   :  { %v5648_v19 = vpop.permute.xlu1 %884 }
 0x27e   :  { %v5650_v24 = vpop.permute.xlu2 %3167  ;;  %v5652_v36 = vpop.permute.xlu0 %3163 }
 0x27f   :  { %7900 = vst [vmem:[#allocation43_spill] sm:$0xff] %v5650_v24 }
 0x280   :  { %7901 = vst [vmem:[#allocation44_spill] sm:$0xff] %v5652_v36  ;;  %v4399_v36 = vpack.i.bf16 %v5794_v60, %v5792_v18 }
 0x283   :  { %2342 = vrot.lane.b32.xlu1 %v5628_v4, %s4716_s2 }
 0x284   :  { %898 = vrot.lane.b32.xlu2 %v5654_v47, %s4713_s11  ;;  %3143 = vrot.lane.b32.xlu0 %v5602_v23, %s4715_s13 }
 0x285   :  { %v5662_v1 = vpop.permute.xlu1 %1559 }
 0x286   :  { %v5664_v43 = vpop.permute.xlu2 %2366  ;;  %v5666_v62 = vpop.permute.xlu0 %2362 }
 0x287   :  { %7903 = vst [vmem:[#allocation46_spill] sm:$0xff] %v5664_v43 }
 0x288   :  { %7904 = vst [vmem:[#allocation47_spill] sm:$0xff] %v5666_v62 }
 0x28b   :  { %1541 = vrot.lane.b32.xlu1 %v5654_v47, %s4714_s0 }
 0x28c   :  { %3179 = vrot.lane.b32.xlu2 %v5654_v47, %s4717_s9  ;;  %1571 = vrot.lane.b32.xlu0 %v5628_v4, %s4718_s10 }
 0x28d   :  { %v5674_v37 = vpop.permute.xlu1 %3165 }
 0x28e   :  { %7905 = vst [vmem:[#allocation48_spill] sm:$0xff] %v5674_v37  ;;  %v5676_v14 = vpop.permute.xlu2 %2334  ;;  %v5678_v6 = vpop.permute.xlu0 %2330  ;;  %v5807_v37 = vld [vmem:[#allocation2 + $0x58] sm:$0xff] }
 0x28f   :  { %7906 = vst [vmem:[#allocation49_spill] sm:$0xff] %v5676_v14 }
 0x290   :  { %7907 = vst [vmem:[#allocation50_spill] sm:$0xff] %v5678_v6 }
 0x293   :  { %1573 = vrot.lane.b32.xlu1 %v5654_v47, %s4718_s10 }
 0x294   :  { %1575 = vrot.lane.b32.xlu2 %v5680_v56, %s4718_s10  ;;  %2374 = vrot.lane.b32.xlu0 %v5628_v4, %s4719_s12  ;;  %v5746_v4 = vld [vmem:[#allocation2 + $0xd0] sm:$0xff] }
 0x295   :  { %v5688_v51 = vpop.permute.xlu1 %1529  ;;  %v4374_v46 = vpack.i.bf16 %v5746_v4, %v5742_v33 }
 0x296   :  { %7909 = vst [vmem:[#allocation52_spill] sm:$0xff] %v5688_v51  ;;  %v5690_v50 = vpop.permute.xlu2 %1533  ;;  %v5692_v61 = vpop.permute.xlu0 %2332 }
 0x297   :  { %7910 = vst [vmem:[#allocation53_spill] sm:$0xff] %v5690_v50 }
 0x298   :  { %7911 = vst [vmem:[#allocation54_spill] sm:$0xff] %v5692_v61 }
 0x29b   :  { %2376 = vrot.lane.b32.xlu1 %v5654_v47, %s4719_s12 }
 0x29c   :  { %2378 = vrot.lane.b32.xlu2 %v5680_v56, %s4719_s12  ;;  %2344 = vrot.lane.b32.xlu0 %v5654_v47, %s4716_s2 }
 0x29d   :  { %v5700_v14 = vpop.permute.xlu1 %2364 }
 0x29e   :  { %7912 = vst [vmem:[#allocation55_spill] sm:$0xff] %v5700_v14  ;;  %v5702_v6 = vpop.permute.xlu2 %1565  ;;  %v5704_v3 = vpop.permute.xlu0 %888 }
 0x2a3   :  { %3147 = vrot.lane.b32.xlu1 %v5654_v47, %s4715_s13 }
 0x2a4   :  { %2346 = vrot.lane.b32.xlu2 %v5680_v56, %s4716_s2  ;;  %900 = vrot.lane.b32.xlu0 %v5680_v56, %s4713_s11 }
 0x2a5   :  { %v5712_v61 = vpop.permute.xlu1 %3135 }
 0x2a6   :  { %7913 = vst [vmem:[#allocation56_spill] sm:$0xff] %v5712_v61  ;;  %v5714_v41 = vpop.permute.xlu2 %3139  ;;  %v5716_v39 = vpop.permute.xlu0 %1531 }
 0x2a7   :  { %7914 = vst [vmem:[#allocation57_spill] sm:$0xff] %v5714_v41 }
 0x2a8   :  { %7915 = vst [vmem:[#allocation58_spill] sm:$0xff] %v5716_v39 }
 0x2ab   :  { %902 = vrot.lane.b32.xlu1 %v5718_v2, %s4713_s11 }
 0x2ac   :  { %1545 = vrot.lane.b32.xlu2 %v5718_v2, %s4714_s0  ;;  %1543 = vrot.lane.b32.xlu0 %v5680_v56, %s4714_s0 }
 0x2ad   :  { %v5726_v50 = vpop.permute.xlu1 %890 }
 0x2ae   :  { %v5728_v47 = vpop.permute.xlu0 %1563  ;;  %v5730_v61 = vpop.permute.xlu2 %892 }
 0x2b3   :  { %1577 = vrot.lane.b32.xlu1 %v5718_v2, %s4718_s10 }
 0x2b4   :  { %4360 = vrot.lane.b32.xlu2 %v5222_v7, %s4716_s2  ;;  %3181 = vrot.lane.b32.xlu0 %v5680_v56, %s4717_s9 }
 0x2b5   :  { %v5738_v41 = vpop.permute.xlu1 %3171 }
 0x2b6   :  { %7917 = vst [vmem:[#allocation60_spill] sm:$0xff] %v5738_v41  ;;  %v5740_v39 = vpop.permute.xlu0 %3169  ;;  %v5744_v51 = vpop.permute.xlu2 %3173 }
 0x2b7   :  { %7918 = vst [vmem:[#allocation61_spill] sm:$0xff] %v5740_v39 }
 0x2b8   :  { %7919 = vst [vmem:[#allocation62_spill] sm:$0xff] %v5744_v51 }
 0x2bb   :  { %2380 = vrot.lane.b32.xlu1 %v5718_v2, %s4719_s12 }
 0x2bc   :  { %4375 = vrot.lane.b32.xlu2 %v4374_v46, %s4715_s13  ;;  %3149 = vrot.lane.b32.xlu0 %v5680_v56, %s4715_s13  ;;  %v5772_v56 = vld [vmem:[#allocation2 + $0x118] sm:$0xff] }
 0x2bd   :  { %v5755_v7 = vpop.permute.xlu1 %2336 }
 0x2be   :  { %7920 = vst [vmem:[#allocation63_spill] sm:$0xff] %v5755_v7  ;;  %v5757_v57 = vpop.permute.xlu0 %3137  ;;  %v5759_v44 = vpop.permute.xlu2 %2372  ;;  %v5774_v7 = vld [vmem:[#allocation2 + $0x130] sm:$0xff] }
 0x2bf   :  { %7921 = vst [vmem:[#allocation64_spill] sm:$0xff] %v5757_v57  ;;  %v5776_v57 = vld [vmem:[#allocation2 + $0x100] sm:$0xff]  ;;  %v4354_v45 = vpack.i.bf16 %v5774_v7, %v5770_v9 }
 0x2c3   :  { %2348 = vrot.lane.b32.xlu1 %v5718_v2, %s4716_s2 }
 0x2c4   :  { %4390 = vrot.lane.b32.xlu2 %v4374_v46, %s4716_s2  ;;  %3183 = vrot.lane.b32.xlu0 %v5718_v2, %s4717_s9  ;;  %v4364_v46 = vpack.i.bf16 %v5776_v57, %v5772_v56 }
 0x2c5   :  { %v5766_v15 = vpop.permute.xlu1 %1535 }
 0x2c6   :  { %7922 = vst [vmem:[#allocation65_spill] sm:$0xff] %v5766_v15  ;;  %v5768_v23 = vpop.permute.xlu0 %2368  ;;  %v5785_v15 = vpop.permute.xlu2 %2340 }
 0x2c7   :  { %7923 = vst [vmem:[#allocation66_spill] sm:$0xff] %v5785_v15 }
 0x2cb   :  { %4355 = vrot.lane.b32.xlu1 %v4354_v45, %s4715_s13 }
 0x2cc   :  { %3151 = vrot.lane.b32.xlu2 %v5718_v2, %s4715_s13  ;;  %4365 = vrot.lane.b32.xlu0 %v4364_v46, %s4715_s13 }
 0x2cd   :  { %v5788_v8 = vpop.permute.xlu1 %2370 }
 0x2ce   :  { %v5790_v48 = vpop.permute.xlu0 %1567  ;;  %v5803_v2 = vpop.permute.xlu2 %1539 }
 0x2cf   :  { %7925 = vst [vmem:[#allocation68_spill] sm:$0xff] %v5803_v2  ;;  %v5822_v2 = vld [vmem:[#allocation2 + $0x88] sm:$0xff] }
 0x2d0   :  { %v4394_v39 = vpack.i.bf16 %v5826_v53, %v5822_v2 }
 0x2d3   :  { %4370 = vrot.lane.b32.xlu1 %v4354_v45, %s4716_s2  ;;  %v4404_v45 = vpack.i.bf16 %v5811_v30, %v5807_v37 }
 0x2d4   :  { %4400 = vrot.lane.b32.xlu2 %v4399_v36, %s4716_s2  ;;  %4380 = vrot.lane.b32.xlu0 %v4364_v46, %s4716_s2  ;;  %v4414_v46 = vpack.i.bf16 %v5813_v63, %v5809_v55 }
 0x2d5   :  { %v5801_v15 = vpop.permute.xlu1 %3141 }
 0x2d6   :  { %7924 = vst [vmem:[#allocation67_spill] sm:$0xff] %v5801_v15  ;;  %v5805_v16 = vpop.permute.xlu0 %2338  ;;  %v5824_v24 = vpop.permute.xlu2 %3145 }
 0x2d7   :  { %7926 = vst [vmem:[#allocation69_spill] sm:$0xff] %v5805_v16 }
 0x2d8   :  { %7930 = vst [vmem:[#allocation73_spill] sm:$0xff] %v5824_v24 }
 0x2db   :  { %4385 = vrot.lane.b32.xlu1 %v4399_v36, %s4715_s13 }
 0x2dc   :  { %4405 = vrot.lane.b32.xlu2 %v4404_v45, %s4715_s13  ;;  %4415 = vrot.lane.b32.xlu0 %v4414_v46, %s4715_s13 }
 0x2dd   :  { %v1570_v15 = vpop.permute.xlu1 %1569 }
 0x2de   :  { %v895_v16 = vpop.permute.xlu0 %894  ;;  %v899_v5 = vpop.permute.xlu2 %898 }
 0x2e3   :  { %4395 = vrot.lane.b32.xlu1 %v4394_v39, %s4715_s13 }
 0x2e4   :  { %4410 = vrot.lane.b32.xlu2 %v4394_v39, %s4716_s2 }
 0x2e5   :  { %v897_v36 = vpop.permute.xlu1 %896 }
 0x2e6   :  { %v5832_v62 = vpop.permute.xlu0 %1537  ;;  %v5840_v41 = vpop.permute.xlu2 %3179 }
 0x2e7   :  { %7931 = vst [vmem:[#allocation74_spill] sm:$0xff] %v5832_v62 }
 0x2eb   :  { %4420 = vrot.lane.b32.xlu1 %v4404_v45, %s4716_s2 }
 0x2ec   :  { %4425 = vrot.lane.b32.xlu2 %v4414_v46, %s4716_s2 }
 0x2ed   :  { %v5836_v58 = vpop.permute.xlu1 %3177 }
 0x2ee   :  { %v5838_v24 = vpop.permute.xlu0 %3175  ;;  %v1576_v39 = vpop.permute.xlu2 %1575 }
 0x2ef   :  { %7932 = vst [vmem:[#allocation75_spill] sm:$0xff] %v5838_v24 }
 0x2f5   :  { %v5842_v14 = vpop.permute.xlu1 %2342 }
 0x2f6   :  { %7933 = vst [vmem:[#allocation76_spill] sm:$0xff] %v5842_v14  ;;  %v5844_v63 = vpop.permute.xlu0 %3143  ;;  %v5850_v45 = vpop.permute.xlu2 %2378 }
 0x2f7   :  { %7934 = vst [vmem:[#allocation77_spill] sm:$0xff] %v5844_v63 }
 0x2fd   :  { %v5846_v51 = vpop.permute.xlu1 %1541 }
 0x2fe   :  { %7935 = vst [vmem:[#allocation78_spill] sm:$0xff] %v5846_v51  ;;  %v1572_v43 = vpop.permute.xlu0 %1571  ;;  %v5856_v30 = vpop.permute.xlu2 %2346 }
 0x2ff   :  { %7937 = vst [vmem:[#allocation80_spill] sm:$0xff] %v5856_v30 }
 0x305   :  { %v1574_v62 = vpop.permute.xlu1 %1573 }
 0x306   :  { %v5848_v55 = vpop.permute.xlu0 %2374  ;;  %v5860_v63 = vpop.permute.xlu2 %1545 }
 0x30d   :  { %v5852_v46 = vpop.permute.xlu1 %2376 }
 0x30e   :  { %v5854_v34 = vpop.permute.xlu0 %2344  ;;  %v5868_v24 = vpop.permute.xlu2 %4360 }
 0x30f   :  { %7936 = vst [vmem:[#allocation79_spill] sm:$0xff] %v5854_v34 }
 0x315   :  { %v5858_v35 = vpop.permute.xlu1 %3147 }
 0x316   :  { %7938 = vst [vmem:[#allocation81_spill] sm:$0xff] %v5858_v35  ;;  %v901_v14 = vpop.permute.xlu0 %900  ;;  %v4376_v35 = vpop.permute.xlu2 %4375 }
 0x31d   :  { %v903_v51 = vpop.permute.xlu1 %902 }
 0x31e   :  { %v5862_v21 = vpop.permute.xlu0 %1543  ;;  %4131 = vmatpush.xpose.msk.msrb.mxu0 %vm904_vm2, %v903_v51  ;;  %4283 = vmatpush.xpose.msk.msra.mxu3 %vm904_vm2, %v903_v51 }
 0x322   :  { %4132 = vmatpush.xpose.msk.msrb.mxu0 %vm904_vm2, %v901_v14  ;;  %4284 = vmatpush.xpose.msk.msra.mxu3 %vm904_vm2, %v901_v14 }
 0x325   :  { %v1578_v34 = vpop.permute.xlu1 %1577 }
 0x326   :  { %v5870_v30 = vpop.permute.xlu0 %3181  ;;  %4133 = vmatpush.xpose.msk.msrb.mxu0 %vm904_vm2, %v899_v5  ;;  %4285 = vmatpush.xpose.msk.msra.mxu3 %vm904_vm2, %v899_v5 }
 0x327   :  { %4163 = vmatpush.xpose.msk.msra.mxu1 %vm904_vm2, %v1578_v34 }
 0x32a   :  { %4134 = vmatpush.xpose.msk.msrb.mxu0 %vm904_vm2, %v897_v36  ;;  %4286 = vmatpush.xpose.msk.msra.mxu3 %vm904_vm2, %v897_v36 }
 0x32b   :  { %4164 = vmatpush.xpose.msk.msra.mxu1 %vm904_vm2, %v1576_v39 }
 0x32d   :  { %v5878_v51 = vpop.permute.xlu1 %2380 }
 0x32e   :  { %v5880_v14 = vpop.permute.xlu0 %3149  ;;  %4135 = vmatpush.xpose.msk.msrb.mxu0 %vm904_vm2, %v895_v16  ;;  %4287 = vmatpush.xpose.msk.msra.mxu3 %vm904_vm2, %v895_v16  ;;  %v5899_v16 = vpop.permute.xlu2 %4390 }
 0x32f   :  { %4165 = vmatpush.xpose.msk.msra.mxu1 %vm904_vm2, %v1574_v62 }
 0x332   :  { %4136 = vmatpush.xpose.msk.msrb.mxu0 %vm904_vm2, %v5730_v61  ;;  %4288 = vmatpush.xpose.msk.msra.mxu3 %vm904_vm2, %v5730_v61 }
 0x333   :  { %4166 = vmatpush.xpose.msk.msra.mxu1 %vm904_vm2, %v1572_v43 }
 0x335   :  { %v5890_v34 = vpop.permute.xlu1 %2348 }
 0x336   :  { %v5892_v5 = vpop.permute.xlu0 %3183  ;;  %4137 = vmatpush.xpose.msk.msrb.mxu0 %vm904_vm2, %v5726_v50  ;;  %4289 = vmatpush.xpose.msk.msra.mxu3 %vm904_vm2, %v5726_v50 }
 0x337   :  { %4167 = vmatpush.xpose.msk.msra.mxu1 %vm904_vm2, %v1570_v15 }
 0x33a   :  { %4138 = vmatpush.xpose.msk.msrb.mxu0 %vm904_vm2, %v5704_v3  ;;  %4290 = vmatpush.xpose.msk.msra.mxu3 %vm904_vm2, %v5704_v3  ;;  %v5919_v3 = vpop.permute.xlu2 %3151 }
 0x33b   :  { %4168 = vmatpush.xpose.msk.msra.mxu1 %vm904_vm2, %v5790_v48 }
 0x33d   :  { %v4356_v43 = vpop.permute.xlu1 %4355 }
 0x33e   :  { %v4357_v61 = vunpack.i.l.bf16 %v4356_v43  ;;  %4139 = vmatpush.xpose.msk.msrb.mxu0 %vm904_vm2, %v5624_v13  ;;  %4291 = vmatpush.xpose.msk.msra.mxu3 %vm904_vm2, %v5624_v13  ;;  %v4366_v50 = vpop.permute.xlu0 %4365  ;;  %v4358_v15 = vunpack.i.h.bf16 %v4356_v43  ;;  %v7961_v43 = vld [vmem:[#allocation44_spill] sm:$0xff] }
 0x33f   :  { %4169 = vmatpush.xpose.msk.msra.mxu1 %vm904_vm2, %v5702_v6  ;;  %v4367_v48 = vunpack.i.l.bf16 %v4366_v50  ;;  %v4368_v13 = vunpack.i.h.bf16 %v4366_v50  ;;  %v4377_v6 = vunpack.i.l.bf16 %v4376_v35  ;;  %v7962_v50 = vld [vmem:[#allocation29_spill] sm:$0xff] }
 0x340   :  { %3716 = vmatpush.msra.mxu2 %v4357_v61 }
 0x342   :  { %4140 = vmatpush.xpose.msk.msrb.mxu0 %vm904_vm2, %v5648_v19  ;;  %4292 = vmatpush.xpose.msk.msra.mxu3 %vm904_vm2, %v5648_v19  ;;  %v4378_v19 = vunpack.i.h.bf16 %v4376_v35  ;;  %v5935_v36 = vpop.permute.xlu2 %4400 }
 0x343   :  { %4170 = vmatpush.xpose.msk.msra.mxu1 %vm904_vm2, %v5728_v47  ;;  %3717 = vmatpush.msra.mxu2 %v4358_v15 }
 0x345   :  { %3718 = vmatpush.msra.mxu2 %v4367_v48  ;;  %v5921_v62 = vpop.permute.xlu1 %4370  ;;  %v7963_v48 = vld [vmem:[#allocation42_spill] sm:$0xff] }
 0x346   :  { %4141 = vmatpush.xpose.msk.msrb.mxu0 %vm904_vm2, %v5626_v26  ;;  %4293 = vmatpush.xpose.msk.msra.mxu3 %vm904_vm2, %v5626_v26 }
 0x347   :  { %4171 = vmatpush.xpose.msk.msra.mxu1 %vm904_vm2, %v5638_v12  ;;  %3719 = vmatpush.msra.mxu2 %v4368_v13  ;;  %v7964_v13 = vld [vmem:[#allocation16_spill] sm:$0xff] }
 0x349   :  { %3720 = vmatpush.msra.mxu2 %v4377_v6  ;;  %v7965_v6 = vld [vmem:[#allocation24_spill] sm:$0xff] }
 0x34a   :  { %4142 = vmatpush.xpose.msk.msrb.mxu0 %vm904_vm2, %v5534_v52  ;;  %4294 = vmatpush.xpose.msk.msra.mxu3 %vm904_vm2, %v5534_v52  ;;  %v5943_v52 = vpop.permute.xlu0 %4380 }
 0x34b   :  { %4172 = vmatpush.xpose.msk.msra.mxu1 %vm904_vm2, %v5662_v1  ;;  %3721 = vmatpush.msra.mxu2 %v4378_v19 }
 0x34d   :  { %v4386_v47 = vpop.permute.xlu1 %4385 }
 0x34e   :  { %v4387_v26 = vunpack.i.l.bf16 %v4386_v47  ;;  %4143 = vmatpush.xpose.msk.msrb.mxu0 %vm904_vm2, %v5558_v25  ;;  %4295 = vmatpush.xpose.msk.msra.mxu3 %vm904_vm2, %v5558_v25  ;;  %v4388_v35 = vunpack.i.h.bf16 %v4386_v47  ;;  %v4406_v25 = vpop.permute.xlu2 %4405 }
 0x34f   :  { %4173 = vmatpush.xpose.msk.msra.mxu1 %vm904_vm2, %v5560_v0 }
 0x350   :  { %3722 = vmatpush.msra.mxu2 %v4387_v26 }
 0x352   :  { %4144 = vmatpush.xpose.msk.msrb.mxu0 %vm904_vm2, %v5524_v49  ;;  %4296 = vmatpush.xpose.msk.msra.mxu3 %vm904_vm2, %v5524_v49  ;;  %v4407_v49 = vunpack.i.l.bf16 %v4406_v25  ;;  %v4416_v39 = vpop.permute.xlu0 %4415 }
 0x353   :  { %4174 = vmatpush.xpose.msk.msra.mxu1 %vm904_vm2, %v5596_v28  ;;  %3723 = vmatpush.msra.mxu2 %v4388_v35  ;;  %v855_v28 = vld [vmem:[#allocation2 + $0x178] sm:$0xff]  ;;  %v7967_v35 = vld [vmem:[#allocation27_spill] sm:$0xff] }
 0x355   :  { %v4396_v12 = vpop.permute.xlu1 %4395 }
 0x356   :  { %v4397_v1 = vunpack.i.l.bf16 %v4396_v12  ;;  %4145 = vmatpush.xpose.msk.msrb.mxu0 %vm904_vm2, %v5450_v22  ;;  %4297 = vmatpush.xpose.msk.msra.mxu3 %vm904_vm2, %v5450_v22  ;;  %v4398_v0 = vunpack.i.h.bf16 %v4396_v12  ;;  %v4408_v22 = vunpack.i.h.bf16 %v4406_v25  ;;  %v7970_v25 = vld [vmem:[#allocation14_spill] sm:$0xff] }
 0x357   :  { %4175 = vmatpush.xpose.msk.msra.mxu1 %vm904_vm2, %v5574_v11  ;;  %v854_v11 = vld [vmem:[#allocation2 + $0x160] sm:$0xff] }
 0x358   :  { %3724 = vmatpush.msra.mxu2 %v4397_v1  ;;  %v7969_v1 = vld [vmem:[#allocation33_spill] sm:$0xff] }
 0x35a   :  { %4146 = vmatpush.xpose.msk.msrb.mxu0 %vm904_vm2, %v5468_v29  ;;  %4298 = vmatpush.xpose.msk.msra.mxu3 %vm904_vm2, %v5468_v29  ;;  %v4417_v29 = vunpack.i.l.bf16 %v4416_v39 }
 0x35b   :  { %4176 = vmatpush.xpose.msk.msra.mxu1 %vm904_vm2, %v5532_v59  ;;  %3725 = vmatpush.msra.mxu2 %v4398_v0  ;;  %v4418_v59 = vunpack.i.h.bf16 %v4416_v39  ;;  %v7971_v0 = vld [vmem:[#allocation21_spill] sm:$0xff]  ;;  %v7974_v39 = vld [vmem:[#allocation52_spill] sm:$0xff] }
 0x35d   :  { %3726 = vmatpush.msra.mxu2 %v4407_v49  ;;  %4147 = vmatmul.msk.f32.vlgmr.msrb.gmra.mxu0 %vm904_vm2, %v5345_v38  ;;  %v7939_v38 = vld [vmem:[#allocation75_spill] sm:$0xff]  ;;  %v4421_v61 = vpop.permute.xlu1 %4420  ;;  %v7972_v49 = vld [vmem:[#allocation9_spill] sm:$0xff] }
 0x35e   :  { %1370 = vmatpush.msra.mxu0 %v855_v28  ;;  %4195 = vmatpush.xpose.msk.msrb.mxu3 %vm904_vm2, %v5878_v51  ;;  %v4403_v51 = vunpack.i.h.bf16 %v5935_v36  ;;  %v4423_v47 = vunpack.i.h.bf16 %v4421_v61  ;;  %v7973_v28 = vld [vmem:[#allocation40_spill] sm:$0xff] }
 0x35f   :  { %4151 = vmatmul.msk.f32.vlgmr.msra.gmra.mxu3 %vm904_vm2, %v5410_v20  ;;  %4177 = vmatpush.xpose.msk.msra.mxu1 %vm904_vm2, %v5460_v32  ;;  %v7942_v20 = vld [vmem:[#allocation71_spill] sm:$0xff]  ;;  %v4362_v32 = vunpack.i.l.bf16 %v5868_v24 }
 0x360   :  { %1371 = vmatpush.msra.mxu0 %v854_v11  ;;  %3727 = vmatpush.msra.mxu2 %v4408_v22  ;;  %v7975_v22 = vld [vmem:[#allocation11_spill] sm:$0xff]  ;;  %v7976_v11 = vld [vmem:[#allocation45_spill] sm:$0xff] }
 0x362   :  { %1372 = vmatpush.msra.mxu0 %v5770_v9  ;;  %4196 = vmatpush.xpose.msk.msrb.mxu3 %vm904_vm2, %v5850_v45  ;;  %v4382_v9 = vunpack.i.l.bf16 %v5943_v52  ;;  %v4402_v45 = vunpack.i.l.bf16 %v5935_v36  ;;  %v7966_v36 = vld [vmem:[#allocation15_spill] sm:$0xff] }
 0x363   :  { %3728 = vmatpush.msra.mxu2 %v4417_v29  ;;  %4178 = vmatpush.xpose.msk.msra.mxu1 %vm904_vm2, %v5486_v40  ;;  %v7948_v40 = vld [vmem:[#allocation55_spill] sm:$0xff]  ;;  %v7977_v29 = vld [vmem:[#allocation58_spill] sm:$0xff] }
 0x364   :  { %1373 = vmatpush.msra.mxu0 %v5774_v7  ;;  %v7958_v7 = vld [vmem:[#allocation36_spill] sm:$0xff] }
 0x365   :  { %3729 = vmatpush.msra.mxu2 %v4418_v59  ;;  %4148 = vmatmul.msk.f32.gmra.mxu0 %vm904_vm2, %v5355_v54  ;;  %v7940_v54 = vld [vmem:[#allocation7_spill] sm:$0xff] }
 0x366   :  { %1374 = vmatpush.msra.mxu0 %v5772_v56  ;;  %4197 = vmatpush.xpose.msk.msrb.mxu3 %vm904_vm2, %v5852_v46  ;;  %v4363_v56 = vunpack.i.h.bf16 %v5868_v24  ;;  %v4411_v24 = vpop.permute.xlu2 %4410  ;;  %v7959_v46 = vld [vmem:[#allocation48_spill] sm:$0xff]  ;;  %v7978_v59 = vld [vmem:[#allocation51_spill] sm:$0xff] }
 0x367   :  { %4227 = vmatpush.xpose.msk.msrb.mxu1 %vm904_vm2, %v5892_v5  ;;  %4152 = vmatmul.msk.f32.gmra.mxu3 %vm904_vm2, %v5426_v17  ;;  %v7943_v17 = vld [vmem:[#allocation13_spill] sm:$0xff]  ;;  %v7960_v5 = vld [vmem:[#allocation32_spill] sm:$0xff]  ;;  %v4413_v15 = vunpack.i.h.bf16 %v4411_v24 }
 0x368   :  { %1375 = vmatpush.msra.mxu0 %v5776_v57  ;;  %4179 = vmatmul.msk.f32.vlgmr.msra.gmra.mxu1 %vm904_vm2, %v5472_v31  ;;  %v7946_v31 = vld [vmem:[#allocation62_spill] sm:$0xff]  ;;  %v4373_v57 = vunpack.i.h.bf16 %v5921_v62 }
 0x36a   :  { %1376 = vmatpush.msra.mxu0 %v5742_v33  ;;  %4198 = vmatpush.xpose.msk.msrb.mxu3 %vm904_vm2, %v5848_v55  ;;  %v7947_v33 = vld [vmem:[#allocation72_spill] sm:$0xff]  ;;  %v7955_v55 = vld [vmem:[#allocation43_spill] sm:$0xff] }
 0x36b   :  { %4228 = vmatpush.xpose.msk.msrb.mxu1 %vm904_vm2, %v5870_v30  ;;  %v7954_v30 = vld [vmem:[#allocation28_spill] sm:$0xff] }
 0x36c   :  { %1377 = vmatpush.msra.mxu0 %v5746_v4  ;;  %v4393_v4 = vunpack.i.h.bf16 %v5899_v16 }
 0x36d   :  { %4149 = vmatmul.msk.f32.gmra.mxu0 %vm904_vm2, %v5382_v10  ;;  %v7941_v10 = vld [vmem:[#allocation10_spill] sm:$0xff] }
 0x36e   :  { %1378 = vmatpush.msra.mxu0 %v5792_v18  ;;  %4199 = vmatpush.xpose.msk.msrb.mxu3 %vm904_vm2, %v5759_v44  ;;  %v7949_v44 = vld [vmem:[#allocation60_spill] sm:$0xff]  ;;  %v7957_v18 = vld [vmem:[#allocation30_spill] sm:$0xff]  ;;  %v4426_v19 = vpop.permute.xlu2 %4425 }
 0x36f   :  { %4229 = vmatpush.xpose.msk.msrb.mxu1 %vm904_vm2, %v5840_v41  ;;  %4153 = vmatmul.msk.f32.gmra.mxu3 %vm904_vm2, %v5452_v27  ;;  %v7945_v27 = vld [vmem:[#allocation46_spill] sm:$0xff]  ;;  %v7952_v41 = vld [vmem:[#allocation47_spill] sm:$0xff]  ;;  %v4427_v26 = vunpack.i.l.bf16 %v4426_v19  ;;  %v4428_v12 = vunpack.i.h.bf16 %v4426_v19 }
 0x370   :  { %1379 = vmatpush.msra.mxu0 %v5794_v60  ;;  %4180 = vmatmul.msk.f32.gmra.mxu1 %vm904_vm2, %v5494_v42  ;;  %v4372_v42 = vunpack.i.l.bf16 %v5921_v62  ;;  %v4383_v60 = vunpack.i.h.bf16 %v5943_v52  ;;  %v4422_v62 = vunpack.i.l.bf16 %v4421_v61  ;;  %v7968_v52 = vld [vmem:[#allocation35_spill] sm:$0xff]  ;;  %v6215_v19 = vld [vmem:[%s7837_s4 + $0x38] sm:$0xff] }
 0x372   :  { %1380 = vmatpush.msra.mxu0 %v5822_v2  ;;  %4200 = vmatpush.xpose.msk.msrb.mxu3 %vm904_vm2, %v5788_v8  ;;  %v7944_v2 = vld [vmem:[#allocation70_spill] sm:$0xff] }
 0x373   :  { %4230 = vmatpush.xpose.msk.msrb.mxu1 %vm904_vm2, %v5836_v58  ;;  %v7950_v58 = vld [vmem:[#allocation18_spill] sm:$0xff] }
 0x374   :  { %1381 = vmatpush.msra.mxu0 %v5826_v53  ;;  %v7951_v8 = vld [vmem:[#allocation26_spill] sm:$0xff]  ;;  %v7953_v53 = vld [vmem:[#allocation61_spill] sm:$0xff] }
 0x375   :  { %4150 = vmatmul.msk.f32.gmra.mxu0 %vm904_vm2, %v7940_v54  ;;  %v7980_v54 = vld [vmem:[#allocation59_spill] sm:$0xff] }
 0x376   :  { %1382 = vmatpush.msra.mxu0 %v5807_v37  ;;  %4201 = vmatpush.xpose.msk.msrb.mxu3 %vm904_vm2, %v5768_v23  ;;  %v4392_v23 = vunpack.i.l.bf16 %v5899_v16  ;;  %v7956_v37 = vld [vmem:[#allocation22_spill] sm:$0xff]  ;;  %v4412_v16 = vunpack.i.l.bf16 %v4411_v24 }
 0x377   :  { %4231 = vmatpush.xpose.msk.msrb.mxu1 %vm904_vm2, %v7939_v38  ;;  %4154 = vmatmul.msk.f32.gmra.mxu3 %vm904_vm2, %v7941_v10  ;;  %v7979_v38 = vld [vmem:[#allocation53_spill] sm:$0xff] }
 0x378   :  { %1383 = vmatpush.msra.mxu0 %v7942_v20  ;;  %4181 = vmatmul.msk.f32.gmra.mxu1 %vm904_vm2, %v7943_v17  ;;  %v7981_v10 = vld [vmem:[#allocation65_spill] sm:$0xff]  ;;  %v7982_v20 = vld [vmem:[#allocation8_spill] sm:$0xff]  ;;  %v7983_v17 = vld [vmem:[#allocation74_spill] sm:$0xff] }
 0x37a   :  { %1384 = vmatpush.msra.mxu0 %v7944_v2  ;;  %4202 = vmatpush.xpose.msk.msrb.mxu3 %vm904_vm2, %v7945_v27  ;;  %v7984_v2 = vld [vmem:[#allocation19_spill] sm:$0xff]  ;;  %v7985_v27 = vld [vmem:[#allocation68_spill] sm:$0xff] }
 0x37b   :  { %4232 = vmatpush.xpose.msk.msrb.mxu1 %vm904_vm2, %v7946_v31  ;;  %v7987_v31 = vld [vmem:[#allocation78_spill] sm:$0xff] }
 0x37c   :  { %1385 = vmatpush.msra.mxu0 %v7947_v33  ;;  %v7988_v33 = vld [vmem:[#allocation34_spill] sm:$0xff] }
 0x37e   :  { %2911 = vmatpush.msrb.mxu0 %v4362_v32  ;;  %4203 = vmatpush.xpose.msk.msrb.mxu3 %vm904_vm2, %v7948_v40  ;;  %v7986_v32 = vld [vmem:[#allocation25_spill] sm:$0xff] }
 0x37f   :  { %4233 = vmatpush.xpose.msk.msrb.mxu1 %vm904_vm2, %v7949_v44  ;;  %4155 = vmatmul.msk.f32.gmra.mxu3 %vm904_vm2, %v7950_v58  ;;  %v7989_v44 = vld [vmem:[#allocation39_spill] sm:$0xff] }
 0x380   :  { %2912 = vmatpush.msrb.mxu0 %v4363_v56  ;;  %4182 = vmatmul.msk.f32.gmra.mxu1 %vm904_vm2, %v7951_v8  ;;  %v6128_v56 = vld [vmem:[%s7837_s4] sm:$0xff] }
 0x382   :  { %2913 = vmatpush.msrb.mxu0 %v4372_v42  ;;  %4204 = vmatpush.xpose.msk.msrb.mxu3 %vm904_vm2, %v7952_v41 }
 0x383   :  { %4234 = vmatpush.xpose.msk.msrb.mxu1 %vm904_vm2, %v7953_v53  ;;  %v7990_v53 = vld [vmem:[#allocation31_spill] sm:$0xff] }
 0x384   :  { %2914 = vmatpush.msrb.mxu0 %v4373_v57 }
 0x386   :  { %2915 = vmatpush.msrb.mxu0 %v4382_v9  ;;  %4205 = vmatpush.xpose.msk.msrb.mxu3 %vm904_vm2, %v7954_v30 }
 0x387   :  { %4235 = vmatpush.xpose.msk.msrb.mxu1 %vm904_vm2, %v7955_v55  ;;  %4156 = vmatmul.msk.f32.gmra.mxu3 %vm904_vm2, %v7956_v37 }
 0x388   :  { %2916 = vmatpush.msrb.mxu0 %v4383_v60  ;;  %4183 = vmatmul.msk.f32.gmra.mxu1 %vm904_vm2, %v7957_v18  ;;  %v6158_v60 = vld [vmem:[%s7837_s4 + $0x10] sm:$0xff] }
 0x38a   :  { %2917 = vmatpush.msrb.mxu0 %v4392_v23  ;;  %4206 = vmatpush.xpose.msk.msrb.mxu3 %vm904_vm2, %v7958_v7  ;;  %v6163_v23 = vld [vmem:[%s7837_s4 + $0x8] sm:$0xff]  ;;  %v7992_v7 = vld [vmem:[#allocation50_spill] sm:$0xff] }
 0x38b   :  { %4236 = vmatpush.xpose.msk.msrb.mxu1 %vm904_vm2, %v7959_v46  ;;  %v6184_v46 = vld [vmem:[%s7837_s4 + $0x18] sm:$0xff] }
 0x38c   :  { %2918 = vmatpush.msrb.mxu0 %v4393_v4 }
 0x38e   :  { %2919 = vmatpush.msrb.mxu0 %v4402_v45  ;;  %4207 = vmatpush.xpose.msk.msrb.mxu3 %vm904_vm2, %v7960_v5  ;;  %v7993_v45 = vld [vmem:[#allocation12_spill] sm:$0xff] }
 0x38f   :  { %4237 = vmatpush.xpose.msk.msrb.mxu1 %vm904_vm2, %v7961_v43  ;;  %4157 = vmatmul.msk.f32.gmra.mxu3 %vm904_vm2, %v7962_v50 }
 0x390   :  { %2920 = vmatpush.msrb.mxu0 %v4403_v51  ;;  %4184 = vmatmul.msk.f32.gmra.mxu1 %vm904_vm2, %v7963_v48  ;;  %v7994_v48 = vld [vmem:[#allocation54_spill] sm:$0xff] }
 0x392   :  { %2921 = vmatpush.msrb.mxu0 %v4412_v16  ;;  %4208 = vmatpush.xpose.msk.msrb.mxu3 %vm904_vm2, %v7964_v13  ;;  %v6189_v16 = vld [vmem:[%s7837_s4 + $0x28] sm:$0xff]  ;;  %v7995_v13 = vld [vmem:[#allocation23_spill] sm:$0xff] }
 0x393   :  { %4238 = vmatpush.xpose.msk.msrb.mxu1 %vm904_vm2, %v7965_v6  ;;  %v6210_v6 = vld [vmem:[%s7837_s4 + $0x30] sm:$0xff] }
 0x394   :  { %2922 = vmatpush.msrb.mxu0 %v4413_v15 }
 0x396   :  { %2923 = vmatpush.msrb.mxu0 %v4422_v62  ;;  %4209 = vmatpush.xpose.msk.msrb.mxu3 %vm904_vm2, %v7966_v36 }
 0x397   :  { %4239 = vmatpush.xpose.msk.msrb.mxu1 %vm904_vm2, %v7967_v35  ;;  %4158 = vmatmul.msk.f32.gmra.mxu3 %vm904_vm2, %v7968_v52  ;;  %v7996_v52 = vld [vmem:[#allocation49_spill] sm:$0xff] }
 0x398   :  { %2924 = vmatpush.msrb.mxu0 %v4423_v47  ;;  %4185 = vmatmul.msk.f32.gmra.mxu1 %vm904_vm2, %v7969_v1 }
 0x39a   :  { %2925 = vmatpush.msrb.mxu0 %v4427_v26  ;;  %4210 = vmatpush.xpose.msk.msrb.mxu3 %vm904_vm2, %v7970_v25  ;;  %v6236_v25 = vld [vmem:[%s7837_s4 + $0x40] sm:$0xff] }
 0x39b   :  { %4240 = vmatpush.xpose.msk.msrb.mxu1 %vm904_vm2, %v7971_v0 }
 0x39c   :  { %2926 = vmatpush.msrb.mxu0 %v4428_v12  ;;  %v7997_v12 = vld [vmem:[#allocation20_spill] sm:$0xff] }
 0x39f   :  { %4241 = vmatpush.xpose.msk.msrb.mxu1 %vm904_vm2, %v7972_v49  ;;  %4159 = vmatmul.msk.f32.gmra.mxu3 %vm904_vm2, %v7973_v28 }
 0x3a0   :  { %4186 = vmatmul.msk.f32.gmra.mxu1 %vm904_vm2, %v7974_v39  ;;  %v7998_v39 = vld [vmem:[#allocation63_spill] sm:$0xff] }
 0x3a3   :  { %4242 = vmatpush.xpose.msk.msrb.mxu1 %vm904_vm2, %v7975_v22  ;;  %v7999_v22 = vld [vmem:[#allocation38_spill] sm:$0xff] }
 0x3a7   :  { %4160 = vmatmul.msk.f32.gmra.mxu3 %vm904_vm2, %v7976_v11 }
 0x3a8   :  { %4187 = vmatmul.msk.f32.gmra.mxu1 %vm904_vm2, %v7977_v29 }
 0x3af   :  { %4161 = vmatmul.msk.f32.gmra.mxu3 %vm904_vm2, %v7978_v59 }
 0x3b0   :  { %4188 = vmatmul.msk.f32.gmra.mxu1 %vm904_vm2, %v7979_v38  ;;  %v8000_v38 = vld [vmem:[#allocation69_spill] sm:$0xff] }
 0x3b7   :  { %4162 = vmatmul.msk.f32.gmra.mxu3 %vm904_vm2, %v7980_v54  ;;  %v6259_v54 = vld [vmem:[%s7837_s4 + $0x50] sm:$0xff] }
 0x3b8   :  { %4189 = vmatmul.msk.f32.gmra.mxu1 %vm904_vm2, %v7981_v10  ;;  %v8001_v10 = vld [vmem:[#allocation41_spill] sm:$0xff] }
 0x3bf   :  { %4211 = vmatmul.msk.f32.vlgmr.msrb.gmra.mxu3 %vm904_vm2, %v7982_v20 }
 0x3c0   :  { %4190 = vmatmul.msk.f32.gmra.mxu1 %vm904_vm2, %v7983_v17  ;;  %v6266_v17 = vld [vmem:[%s7837_s4 + $0x48] sm:$0xff] }
 0x3c7   :  { %4212 = vmatmul.msk.f32.gmra.mxu3 %vm904_vm2, %v7984_v2 }
 0x3c8   :  { %4191 = vmatmul.msk.f32.gmra.mxu1 %vm904_vm2, %v7985_v27 }
 0x3cf   :  { %4213 = vmatmul.msk.f32.gmra.mxu3 %vm904_vm2, %v7986_v32 }
 0x3d0   :  { %4192 = vmatmul.msk.f32.gmra.mxu1 %vm904_vm2, %v7987_v31 }
 0x3d7   :  { %4214 = vmatmul.msk.f32.gmra.mxu3 %vm904_vm2, %v7988_v33  ;;  %v8002_v33 = vld [vmem:[#allocation66_spill] sm:$0xff] }
 0x3d8   :  { %4193 = vmatmul.msk.f32.gmra.mxu1 %vm904_vm2, %v5862_v21  ;;  %v6141_v21 = vld [vmem:[%s7837_s4 + $0x20] sm:$0xff] }
 0x3da   :  { %v986_v40 = vpop.f32.mrf.mxu0 }
 0x3db   :  { %v6131_v42 = vadd.f32 %v986_v40, %v6128_v56  ;;  %v8003_v40 = vld [vmem:[#allocation37_spill] sm:$0xff] }
 0x3dd   :  { %1034 = vmax.xlane.f32.xlu2 %v6131_v42 }
 0x3df   :  { %4215 = vmatmul.msk.f32.gmra.mxu3 %vm904_vm2, %v7989_v44 }
 0x3e0   :  { %4194 = vmatmul.msk.f32.gmra.mxu1 %vm904_vm2, %v5860_v63  ;;  %v7991_v63 = vld [vmem:[#allocation17_spill] sm:$0xff] }
 0x3e2   :  { %v998_v58 = vpop.f32.mrf.mxu3  ;;  %v989_v57 = vpop.f32.mrf.mxu0 }
 0x3e3   :  { %v6144_v8 = vadd.f32 %v998_v58, %v6141_v21  ;;  %v6169_v18 = vadd.f32 %v989_v57, %v6163_v23  ;;  %v6287_v58 = vld [vmem:[%s7837_s4 + $0x58] sm:$0xff] }
 0x3e5   :  { %v1660_v41 = vpop.f32.mrf.mxu1  ;;  %1042 = vmax.xlane.f32.xlu2 %v6144_v8 }
 0x3e6   :  { %v6147_v9 = vadd.f32 %v1660_v41, %v6128_v56 }
 0x3e7   :  { %4216 = vmatmul.msk.f32.gmra.mxu3 %vm904_vm2, %v7990_v53 }
 0x3e8   :  { %1708 = vmax.xlane.f32.xlu0 %v6147_v9  ;;  %4243 = vmatmul.msk.f32.vlgmr.msrb.gmra.mxu1 %vm904_vm2, %v7991_v63  ;;  %v8004_v63 = vld [vmem:[#allocation76_spill] sm:$0xff] }
 0x3ea   :  { %v1001_v30 = vpop.f32.mrf.mxu3  ;;  %v992_v55 = vpop.f32.mrf.mxu0 }
 0x3eb   :  { %v6166_v37 = vadd.f32 %v992_v55, %v6158_v60  ;;  %v6198_v15 = vadd.f32 %v1001_v30, %v6189_v16  ;;  %v8005_v30 = vld [vmem:[#allocation56_spill] sm:$0xff] }
 0x3ed   :  { %v1663_v4 = vpop.f32.mrf.mxu1  ;;  %1038 = vmax.xlane.f32.xlu1 %v6166_v37 }
 0x3ee   :  { %v6172_v24 = vadd.f32 %v1663_v4, %v6163_v23 }
 0x3ef   :  { %4217 = vmatmul.msk.f32.gmra.mxu3 %vm904_vm2, %v7992_v7 }
 0x3f0   :  { %1710 = vmax.xlane.f32.xlu2 %v6172_v24  ;;  %1036 = vmax.xlane.f32.xlu0 %v6169_v18 }
 0x3f1   :  { %4244 = vmatmul.msk.f32.gmra.mxu1 %vm904_vm2, %v7993_v45  ;;  %v8006_v45 = vld [vmem:[#allocation79_spill] sm:$0xff] }
 0x3f2   :  { %v1004_v51 = vpop.f32.mrf.mxu3  ;;  %v995_v5 = vpop.f32.mrf.mxu0 }
 0x3f3   :  { %v6192_v43 = vadd.f32 %v995_v5, %v6184_v46  ;;  %v6218_v36 = vadd.f32 %v1004_v51, %v6210_v6  ;;  %v6310_v51 = vld [vmem:[%s7837_s4 + $0x68] sm:$0xff] }
 0x3f4   :  { %v8007_v5 = vld [vmem:[#allocation64_spill] sm:$0xff] }
 0x3f5   :  { %v1666_v61 = vpop.f32.mrf.mxu1 }
 0x3f6   :  { %v6195_v50 = vadd.f32 %v1666_v61, %v6158_v60 }
 0x3f7   :  { %4218 = vmatmul.msk.f32.gmra.mxu3 %vm904_vm2, %v7994_v48  ;;  %v6317_v48 = vld [vmem:[%s7837_s4 + $0x60] sm:$0xff] }
 0x3f8   :  { %1712 = vmax.xlane.f32.xlu1 %v6195_v50  ;;  %1040 = vmax.xlane.f32.xlu2 %v6192_v43 }
 0x3f9   :  { %1044 = vmax.xlane.f32.xlu0 %v6198_v15  ;;  %4245 = vmatmul.msk.f32.gmra.mxu1 %vm904_vm2, %v7995_v13 }
 0x3fa   :  { %v1007_v62 = vpop.f32.mrf.mxu3 }
 0x3fb   :  { %v6221_v26 = vadd.f32 %v1007_v62, %v6215_v19 }
 0x3fd   :  { %v1669_v47 = vpop.f32.mrf.mxu1 }
 0x3fe   :  { %v6224_v35 = vadd.f32 %v1669_v47, %v6184_v46 }
 0x3ff   :  { %4219 = vmatmul.msk.f32.gmra.mxu3 %vm904_vm2, %v7996_v52 }
 0x400   :  { %1046 = vmax.xlane.f32.xlu1 %v6218_v36  ;;  %1048 = vmax.xlane.f32.xlu2 %v6221_v26 }
 0x401   :  { %1714 = vmax.xlane.f32.xlu0 %v6224_v35  ;;  %4246 = vmatmul.msk.f32.gmra.mxu1 %vm904_vm2, %v7997_v12  ;;  %v8008_v12 = vld [vmem:[#allocation80_spill] sm:$0xff] }
 0x402   :  { %v1010_v1 = vpop.f32.mrf.mxu3 }
 0x403   :  { %v6242_v28 = vadd.f32 %v1010_v1, %v6236_v25  ;;  %v8009_v1 = vld [vmem:[#allocation57_spill] sm:$0xff] }
 0x405   :  { %v1672_v0 = vpop.f32.mrf.mxu1 }
 0x406   :  { %v6239_v49 = vadd.f32 %v1672_v0, %v6141_v21 }
 0x407   :  { %4220 = vmatmul.msk.f32.gmra.mxu3 %vm904_vm2, %v7998_v39  ;;  %v6338_v39 = vld [vmem:[%s7837_s4 + $0x70] sm:$0xff] }
 0x408   :  { %1716 = vmax.xlane.f32.xlu2 %v6239_v49 }
 0x409   :  { %1050 = vmax.xlane.f32.xlu0 %v6242_v28  ;;  %4247 = vmatmul.msk.f32.gmra.mxu1 %vm904_vm2, %v7999_v22 }
 0x40a   :  { %v1013_v11 = vpop.f32.mrf.mxu3 }
 0x40b   :  { %v6273_v32 = vadd.f32 %v1013_v11, %v6266_v17 }
 0x40d   :  { %v1675_v29 = vpop.f32.mrf.mxu1 }
 0x40e   :  { %v6251_v59 = vadd.f32 %v1675_v29, %v6189_v16 }
 0x40f   :  { %4221 = vmatmul.msk.f32.gmra.mxu3 %vm904_vm2, %v8000_v38  ;;  %v8010_v38 = vld [vmem:[#allocation67_spill] sm:$0xff] }
 0x410   :  { %1718 = vmax.xlane.f32.xlu1 %v6251_v59 }
 0x411   :  { %4248 = vmatmul.msk.f32.gmra.mxu1 %vm904_vm2, %v8001_v10 }
 0x412   :  { %v1016_v20 = vpop.f32.mrf.mxu3 }
 0x413   :  { %v6269_v2 = vadd.f32 %v1016_v20, %v6259_v54 }
 0x415   :  { %v1678_v27 = vpop.f32.mrf.mxu1  ;;  %1054 = vmax.xlane.f32.xlu2 %v6269_v2 }
 0x416   :  { %v6276_v31 = vadd.f32 %v1678_v27, %v6210_v6 }
 0x417   :  { %4222 = vmatmul.msk.f32.gmra.mxu3 %vm904_vm2, %v8002_v33  ;;  %v8011_v33 = vld [vmem:[#allocation77_spill] sm:$0xff] }
 0x418   :  { %1052 = vmax.xlane.f32.xlu1 %v6273_v32  ;;  %1720 = vmax.xlane.f32.xlu0 %v6276_v31 }
 0x419   :  { %4249 = vmatmul.msk.f32.gmra.mxu1 %vm904_vm2, %v8003_v40 }
 0x41a   :  { %v1019_v44 = vpop.f32.mrf.mxu3 }
 0x41b   :  { %v6290_v41 = vadd.f32 %v1019_v44, %v6287_v58 }
 0x41d   :  { %v1681_v57 = vpop.f32.mrf.mxu1 }
 0x41e   :  { %v6293_v53 = vadd.f32 %v1681_v57, %v6215_v19 }
 0x41f   :  { %4223 = vmatmul.msk.f32.gmra.mxu3 %vm904_vm2, %v8004_v63 }
 0x420   :  { %1722 = vmax.xlane.f32.xlu2 %v6293_v53  ;;  %1056 = vmax.xlane.f32.xlu0 %v6290_v41 }
 0x421   :  { %4250 = vmatmul.msk.f32.gmra.mxu1 %vm904_vm2, %v8005_v30  ;;  %v8013_v30 = vld [vmem:[#allocation73_spill] sm:$0xff] }
 0x422   :  { %v1022_v55 = vpop.f32.mrf.mxu3 }
 0x423   :  { %v6324_v47 = vadd.f32 %v1022_v55, %v6317_v48 }
 0x425   :  { %v1684_v4 = vpop.f32.mrf.mxu1 }
 0x426   :  { %v6302_v7 = vadd.f32 %v1684_v4, %v6236_v25 }
 0x427   :  { %4224 = vmatmul.msk.f32.gmra.mxu3 %vm904_vm2, %v8006_v45 }
 0x428   :  { %1724 = vmax.xlane.f32.xlu1 %v6302_v7 }
 0x429   :  { %4251 = vmatmul.msk.f32.gmra.mxu1 %vm904_vm2, %v8007_v5 }
 0x42a   :  { %v1025_v61 = vpop.f32.mrf.mxu3 }
 0x42b   :  { %v6320_v13 = vadd.f32 %v1025_v61, %v6310_v51 }
 0x42d   :  { %v1687_v62 = vpop.f32.mrf.mxu1  ;;  %1060 = vmax.xlane.f32.xlu2 %v6320_v13 }
 0x42e   :  { %v6327_v52 = vadd.f32 %v1687_v62, %v6266_v17  ;;  %v8014_v62 = vld [vmem:[#allocation81_spill] sm:$0xff] }
 0x42f   :  { %4225 = vmatmul.msk.f32.gmra.mxu3 %vm904_vm2, %v8008_v12 }
 0x430   :  { %1058 = vmax.xlane.f32.xlu1 %v6324_v47  ;;  %1726 = vmax.xlane.f32.xlu0 %v6327_v52 }
 0x431   :  { %4252 = vmatmul.msk.f32.gmra.mxu1 %vm904_vm2, %v8009_v1 }
 0x432   :  { %v1028_v0 = vpop.f32.mrf.mxu3 }
 0x433   :  { %v6341_v11 = vadd.f32 %v1028_v0, %v6338_v39 }
 0x435   :  { %v1690_v22 = vpop.f32.mrf.mxu1 }
 0x436   :  { %v6344_v29 = vadd.f32 %v1690_v22, %v6259_v54 }
 0x437   :  { %4226 = vmatmul.msk.f32.gmra.mxu3 %vm904_vm2, %v5890_v34  ;;  %v6361_v34 = vld [vmem:[%s7837_s4 + $0x78] sm:$0xff] }
 0x438   :  { %1728 = vmax.xlane.f32.xlu2 %v6344_v29  ;;  %1062 = vmax.xlane.f32.xlu0 %v6341_v11  ;;  %8012 = vst [vmem:[#allocation75_spill] sm:$0xff] %v6361_v34 }
 0x439   :  { %4253 = vmatmul.msk.f32.gmra.mxu1 %vm904_vm2, %v8010_v38 }
 0x43a   :  { %v1031_v10 = vpop.f32.mrf.mxu3 }
 0x43b   :  { %v6364_v57 = vadd.f32 %v1031_v10, %v6361_v34 }
 0x43d   :  { %v1693_v20 = vpop.f32.mrf.mxu1 }
 0x43e   :  { %v6353_v27 = vadd.f32 %v1693_v20, %v6287_v58 }
 0x440   :  { %1730 = vmax.xlane.f32.xlu1 %v6353_v27 }
 0x441   :  { %4254 = vmatmul.msk.f32.gmra.mxu1 %vm904_vm2, %v8011_v33 }
 0x442   :  { %v2463_v40 = vpop.f32.mrf.mxu3 }
 0x443   :  { %v6380_v61 = vadd.f32 %v2463_v40, %v6128_v56 }
 0x445   :  { %v1696_v44 = vpop.f32.mrf.mxu1 }
 0x446   :  { %v6367_v63 = vadd.f32 %v1696_v44, %v6317_v48 }
 0x448   :  { %1064 = vmax.xlane.f32.xlu1 %v6364_v57  ;;  %1732 = vmax.xlane.f32.xlu0 %v6367_v63 }
 0x449   :  { %4255 = vmatmul.msk.f32.gmra.mxu1 %vm904_vm2, %v8013_v30 }
 0x44a   :  { %v2466_v55 = vpop.f32.mrf.mxu3 }
 0x44b   :  { %v6374_v45 = vadd.f32 %v2466_v55, %v6163_v23 }
 0x44d   :  { %v1699_v4 = vpop.f32.mrf.mxu1 }
 0x44e   :  { %v6377_v5 = vadd.f32 %v1699_v4, %v6310_v51 }
 0x450   :  { %1734 = vmax.xlane.f32.xlu2 %v6377_v5  ;;  %2513 = vmax.xlane.f32.xlu0 %v6374_v45  ;;  %v1035_v12 = vpop.xlane.xlu2 %1034 }
 0x451   :  { %2511 = vmax.xlane.f32.xlu1 %v6380_v61  ;;  %4256 = vmatmul.msk.f32.gmra.mxu1 %vm904_vm2, %v8014_v62  ;;  %v1066_v0 = vsub.f32 %v6131_v42, %v1035_v12 }
 0x452   :  { %v2469_v1 = vpop.f32.mrf.mxu3 }
 0x453   :  { %v1082_v22 = vmul.f32 1.442695, %v1066_v0  ;;  %v6389_v10 = vadd.f32 %v2469_v1, %v6158_v60 }
 0x455   :  { %v1702_v38 = vpop.f32.mrf.mxu1  ;;  %4430 = vpow2.f32 %v1082_v22 }
 0x456   :  { %v6392_v20 = vadd.f32 %v1702_v38, %v6338_v39 }
 0x458   :  { %2515 = vmax.xlane.f32.xlu2 %v6389_v10  ;;  %v1043_v33 = vpop.xlane.xlu2 %1042 }
 0x459   :  { %1736 = vmax.xlane.f32.xlu1 %v6392_v20  ;;  %4257 = vmatmul.msk.f32.gmra.mxu1 %vm904_vm2, %v5880_v14 }
 0x45a   :  { %v2472_v30 = vpop.f32.mrf.mxu3 }
 0x45b   :  { %v1709_v40 = vpop.xlane.xlu0 %1708  ;;  %v4431_v44 = vpop.eup %4430 }
 0x45c   :  { %v1740_v42 = vsub.f32 %v6147_v9, %v1709_v40  ;;  %1386 = vmatmul.f32.vlgmr.msra.gmra.mxu0 %v4431_v44  ;;  %v6408_v40 = vadd.f32 %v2472_v30, %v6184_v46 }
 0x45d   :  { %v1705_v55 = vpop.f32.mrf.mxu1 }
 0x45e   :  { %v1756_v4 = vmul.f32 1.442695, %v1740_v42  ;;  %v6400_v62 = vadd.f32 %v1705_v55, %v6361_v34 }
 0x460   :  { %4432 = vpow2.f32 %v1756_v4  ;;  %1738 = vmax.xlane.f32.xlu0 %v6400_v62  ;;  %1114 = vadd.xlane.f32.xlu2 %v4431_v44  ;;  %v1039_v14 = vpop.xlane.xlu1 %1038 }
 0x461   :  { %4258 = vmatmul.msk.f32.gmra.mxu1 %vm904_vm2, %v5919_v3  ;;  %v1068_v42 = vsub.f32 %v6166_v37, %v1039_v14  ;;  %v1070_v3 = vsub.f32 %v6144_v8, %v1043_v33 }
 0x462   :  { %v2475_v4 = vpop.f32.mrf.mxu3 }
 0x463   :  { %v1037_v12 = vpop.xlane.xlu0 %1036  ;;  %v1711_v1 = vpop.xlane.xlu2 %1710  ;;  %v1090_v14 = vmul.f32 1.442695, %v1070_v3 }
 0x464   :  { %v1067_v0 = vsub.f32 %v6169_v18, %v1037_v12  ;;  %v1741_v9 = vsub.f32 %v6172_v24, %v1711_v1  ;;  %v1086_v18 = vmul.f32 1.442695, %v1068_v42 }
 0x465   :  { %v3266_v22 = vpop.f32.mrf.mxu1 }
 0x466   :  { %v4433_v38 = vpop.eup %4432  ;;  %v1084_v55 = vmul.f32 1.442695, %v1067_v0  ;;  %v1758_v44 = vmul.f32 1.442695, %v1741_v9 }
 0x467   :  { %2124 = vmatmul.f32.vlgmr.msrb.gmra.mxu2 %v4433_v38 }
 0x468   :  { %4434 = vpow2.f32 %v1084_v55  ;;  %2517 = vmax.xlane.f32.xlu0 %v6408_v40  ;;  %1788 = vadd.xlane.f32.xlu2 %v4433_v38  ;;  %v6418_v38 = vadd.f32 %v3266_v22, %v6128_v56 }
 0x469   :  { %4436 = vpow2.f32 %v1758_v44 }
 0x46a   :  { %4438 = vpow2.f32 %v1086_v18 }
 0x46b   :  { %v1713_v24 = vpop.xlane.xlu1 %1712  ;;  %v1041_v12 = vpop.xlane.xlu2 %1040 }
 0x46c   :  { %v1742_v1 = vsub.f32 %v6195_v50, %v1713_v24  ;;  %v1045_v30 = vpop.xlane.xlu0 %1044  ;;  %v1069_v8 = vsub.f32 %v6192_v43, %v1041_v12  ;;  %v6425_v50 = vpop.f32.mrf.mxu3 }
 0x46d   :  { %v1071_v34 = vsub.f32 %v6198_v15, %v1045_v30 }
 0x46e   :  { %v6415_v37 = vpop.eup %4434  ;;  %v1760_v0 = vmul.f32 1.442695, %v1742_v1  ;;  %v3269_v9 = vpop.f32.mrf.mxu1  ;;  %v1088_v56 = vmul.f32 1.442695, %v1069_v8 }
 0x46f   :  { %v4437_v55 = vpop.eup %4436  ;;  %v1092_v44 = vmul.f32 1.442695, %v1071_v34  ;;  %v6422_v33 = vadd.f32 %v3269_v9, %v6163_v23  ;;  %1389 = vmatmul.f32.gmra.mxu0 %v6415_v37 }
 0x470   :  { %4440 = vpow2.f32 %v1760_v0  ;;  %1790 = vadd.xlane.f32.xlu1 %v4437_v55  ;;  %2127 = vmatmul.f32.gmra.mxu2 %v4437_v55  ;;  %v4439_v43 = vpop.eup %4438 }
 0x471   :  { %4442 = vpow2.f32 %v1092_v44  ;;  %3314 = vmax.xlane.f32.xlu0 %v6418_v38  ;;  %3316 = vmax.xlane.f32.xlu2 %v6422_v33 }
 0x472   :  { %4444 = vpow2.f32 %v1090_v14 }
 0x473   :  { %v1047_v15 = vpop.xlane.xlu1 %1046  ;;  %v6429_v34 = vpop.xlane.xlu2 %1048  ;;  %4446 = vpow2.f32 %v1088_v56  ;;  %v6442_v56 = vadd.f32 %v2475_v4, %v6141_v21 }
 0x474   :  { %v1072_v23 = vsub.f32 %v6218_v36, %v1047_v15  ;;  %v1715_v22 = vpop.xlane.xlu0 %1714  ;;  %v6436_v14 = vpop.f32.mrf.mxu3 }
 0x475   :  { %v1743_v42 = vsub.f32 %v6224_v35, %v1715_v22 }
 0x476   :  { %v6433_v3 = vpop.eup %4440  ;;  %v1094_v18 = vmul.f32 1.442695, %v1072_v23  ;;  %v3272_v24 = vpop.f32.mrf.mxu1 }
 0x477   :  { %v4443_v12 = vpop.eup %4442  ;;  %v1762_v1 = vmul.f32 1.442695, %v1743_v42  ;;  %1392 = vmatmul.f32.gmra.mxu0 %v4439_v43 }
 0x478   :  { %v4445_v30 = vpop.eup %4444  ;;  %4448 = vpow2.f32 %v1094_v18  ;;  %1124 = vadd.xlane.f32.xlu1 %v4443_v12  ;;  %2130 = vmatmul.f32.gmra.mxu2 %v6433_v3  ;;  %v6447_v18 = vadd.f32 %v3272_v24, %v6158_v60 }
 0x479   :  { %4450 = vpow2.f32 %v1762_v1  ;;  %1122 = vadd.xlane.f32.xlu0 %v4445_v30  ;;  %v4447_v0 = vpop.eup %4446 }
 0x47b   :  { %v1717_v36 = vpop.xlane.xlu2 %1716 }
 0x47c   :  { %v1744_v35 = vsub.f32 %v6239_v49, %v1717_v36  ;;  %v1051_v15 = vpop.xlane.xlu0 %1050  ;;  %v2484_v22 = vpop.f32.mrf.mxu3 }
 0x47d   :  { %v6457_v60 = vadd.f32 %v2484_v22, %v6215_v19 }
 0x47e   :  { %v4449_v9 = vpop.eup %4448  ;;  %v1764_v55 = vmul.f32 1.442695, %v1744_v35  ;;  %v6439_v44 = vpop.f32.mrf.mxu1 }
 0x47f   :  { %v4451_v8 = vpop.eup %4450  ;;  %1126 = vadd.xlane.f32.xlu2 %v4449_v9  ;;  %1395 = vmatmul.f32.gmra.mxu0 %v4447_v0 }
 0x480   :  { %4452 = vpow2.f32 %v1764_v55  ;;  %1118 = vadd.xlane.f32.xlu1 %v4439_v43  ;;  %2133 = vmatmul.f32.gmra.mxu2 %v4451_v8 }
 0x481   :  { %2519 = vmax.xlane.f32.xlu0 %v6442_v56 }
 0x483   :  { %v1719_v23 = vpop.xlane.xlu1 %1718 }
 0x484   :  { %v1745_v49 = vsub.f32 %v6251_v59, %v1719_v23  ;;  %v2487_v24 = vpop.f32.mrf.mxu3  ;;  %v6463_v23 = vadd.f32 %v6425_v50, %v6189_v16 }
 0x486   :  { %v4453_v42 = vpop.eup %4452  ;;  %v1766_v1 = vmul.f32 1.442695, %v1745_v49  ;;  %v3278_v36 = vpop.f32.mrf.mxu1 }
 0x487   :  { %1120 = vadd.xlane.f32.xlu2 %v4447_v0  ;;  %1398 = vmatmul.f32.gmra.mxu0 %v4445_v30 }
 0x488   :  { %4454 = vpow2.f32 %v1766_v1  ;;  %3318 = vmax.xlane.f32.xlu1 %v6447_v18  ;;  %2136 = vmatmul.f32.gmra.mxu2 %v4453_v42  ;;  %v6451_v4 = vpop.xlane.xlu2 %1054 }
 0x489   :  { %1116 = vadd.xlane.f32.xlu0 %v6415_v37  ;;  %v1073_v37 = vsub.f32 %v6221_v26, %v6429_v34 }
 0x48b   :  { %v1721_v43 = vpop.xlane.xlu0 %1720  ;;  %v1053_v59 = vpop.xlane.xlu1 %1052  ;;  %v1096_v22 = vmul.f32 1.442695, %v1073_v37 }
 0x48c   :  { %v1746_v35 = vsub.f32 %v6276_v31, %v1721_v43  ;;  %v1075_v31 = vsub.f32 %v6273_v32, %v1053_v59  ;;  %v6473_v43 = vadd.f32 %v2487_v24, %v6236_v25  ;;  %v1074_v32 = vsub.f32 %v6242_v28, %v1051_v15 }
 0x48d   :  { %v6484_v15 = vadd.f32 %v3278_v36, %v6141_v21 }
 0x48e   :  { %v6454_v55 = vpop.eup %4454  ;;  %v1768_v0 = vmul.f32 1.442695, %v1746_v35  ;;  %v6459_v30 = vpop.f32.mrf.mxu1  ;;  %v1100_v1 = vmul.f32 1.442695, %v1075_v31 }
 0x48f   :  { %1794 = vadd.xlane.f32.xlu2 %v4451_v8  ;;  %1401 = vmatmul.f32.gmra.mxu0 %v4443_v12  ;;  %v6477_v12 = vpop.f32.mrf.mxu3 }
 0x490   :  { %2525 = vmax.xlane.f32.xlu1 %v6457_v60  ;;  %2139 = vmatmul.f32.gmra.mxu2 %v6454_v55  ;;  %4456 = vpow2.f32 %v1768_v0 }
 0x491   :  { %2521 = vmax.xlane.f32.xlu0 %v6463_v23  ;;  %4458 = vpow2.f32 %v1096_v22 }
 0x492   :  { %4460 = vpow2.f32 %v1100_v1  ;;  %v6502_v1 = vadd.f32 %v6439_v44, %v6184_v46 }
 0x493   :  { %v1723_v49 = vpop.xlane.xlu2 %1722  ;;  %v1057_v35 = vpop.xlane.xlu0 %1056 }
 0x494   :  { %v1747_v50 = vsub.f32 %v6293_v53, %v1723_v49  ;;  %v1098_v53 = vmul.f32 1.442695, %v1074_v32 }
 0x496   :  { %v1770_v26 = vmul.f32 1.442695, %v1747_v50  ;;  %v4457_v34 = vpop.eup %4456  ;;  %v6479_v8 = vpop.f32.mrf.mxu1  ;;  %v1076_v50 = vsub.f32 %v6269_v2, %v6451_v4  ;;  %v6516_v2 = vadd.f32 %v6459_v30, %v6189_v16  ;;  %v1077_v4 = vsub.f32 %v6290_v41, %v1057_v35 }
 0x497   :  { %2527 = vmax.xlane.f32.xlu2 %v6473_v43  ;;  %1404 = vmatmul.f32.gmra.mxu0 %v4449_v9  ;;  %v4459_v0 = vpop.eup %4458 }
 0x498   :  { %1796 = vadd.xlane.f32.xlu1 %v4453_v42  ;;  %2142 = vmatmul.f32.gmra.mxu2 %v4457_v34  ;;  %4462 = vpow2.f32 %v1770_v26  ;;  %v4461_v28 = vpop.eup %4460  ;;  %v6490_v42 = vadd.f32 %v6436_v14, %v6210_v6  ;;  %v1102_v32 = vmul.f32 1.442695, %v1076_v50 }
 0x499   :  { %1792 = vadd.xlane.f32.xlu0 %v6433_v3  ;;  %4464 = vpow2.f32 %v1098_v53 }
 0x49b   :  { %v1725_v59 = vpop.xlane.xlu1 %1724 }
 0x49c   :  { %v1748_v24 = vsub.f32 %v6302_v7, %v1725_v59  ;;  %v2493_v7 = vpop.f32.mrf.mxu3 }
 0x49e   :  { %v1772_v9 = vmul.f32 1.442695, %v1748_v24  ;;  %v6486_v37 = vpop.eup %4462  ;;  %v3287_v21 = vpop.f32.mrf.mxu1 }
 0x49f   :  { %1132 = vadd.xlane.f32.xlu2 %v4461_v28  ;;  %1407 = vmatmul.f32.gmra.mxu0 %v4459_v0  ;;  %v4465_v22 = vpop.eup %4464  ;;  %v6512_v44 = vadd.f32 %v3287_v21, %v6215_v19  ;;  %v1104_v19 = vmul.f32 1.442695, %v1077_v4 }
 0x4a0   :  { %4466 = vpow2.f32 %v1772_v9  ;;  %3322 = vmax.xlane.f32.xlu1 %v6484_v15  ;;  %2145 = vmatmul.f32.gmra.mxu2 %v6486_v37  ;;  %v6495_v3 = vpop.xlane.xlu2 %1060 }
 0x4a1   :  { %2523 = vmax.xlane.f32.xlu0 %v6490_v42 }
 0x4a3   :  { %v1727_v36 = vpop.xlane.xlu0 %1726 }
 0x4a4   :  { %v1749_v31 = vsub.f32 %v6327_v52, %v1727_v36  ;;  %v1059_v52 = vpop.xlane.xlu1 %1058  ;;  %v2496_v53 = vpop.f32.mrf.mxu3 }
 0x4a5   :  { %v1078_v9 = vsub.f32 %v6324_v47, %v1059_v52  ;;  %v6527_v35 = vadd.f32 %v2496_v53, %v6287_v58  ;;  %v6545_v52 = vadd.f32 %v2493_v7, %v6259_v54 }
 0x4a6   :  { %v6498_v14 = vpop.eup %4466  ;;  %v1774_v49 = vmul.f32 1.442695, %v1749_v31  ;;  %v6508_v59 = vpop.f32.mrf.mxu1 }
 0x4a7   :  { %1800 = vadd.xlane.f32.xlu2 %v4457_v34  ;;  %1410 = vmatmul.f32.gmra.mxu0 %v4465_v22  ;;  %v1106_v16 = vmul.f32 1.442695, %v1078_v9 }
 0x4a8   :  { %1130 = vadd.xlane.f32.xlu1 %v4465_v22  ;;  %2148 = vmatmul.f32.gmra.mxu2 %v6498_v14  ;;  %4468 = vpow2.f32 %v1774_v49 }
 0x4a9   :  { %3320 = vmax.xlane.f32.xlu0 %v6502_v1  ;;  %4470 = vpow2.f32 %v1102_v32  ;;  %v6549_v32 = vadd.f32 %v6477_v12, %v6266_v17 }
 0x4ab   :  { %v1729_v26 = vpop.xlane.xlu2 %1728 }
 0x4ac   :  { %v1750_v46 = vsub.f32 %v6344_v29, %v1729_v26  ;;  %v1063_v29 = vpop.xlane.xlu0 %1062  ;;  %v6533_v21 = vpop.f32.mrf.mxu3 }
 0x4ae   :  { %v1776_v34 = vmul.f32 1.442695, %v1750_v46  ;;  %v6519_v24 = vpop.eup %4468  ;;  %v3293_v36 = vpop.f32.mrf.mxu1 }
 0x4af   :  { %3328 = vmax.xlane.f32.xlu2 %v6512_v44  ;;  %1413 = vmatmul.f32.gmra.mxu0 %v4461_v28  ;;  %v4471_v47 = vpop.eup %4470  ;;  %v6531_v28 = vadd.f32 %v6479_v8, %v6210_v6 }
 0x4b0   :  { %3324 = vmax.xlane.f32.xlu1 %v6516_v2  ;;  %2151 = vmatmul.f32.gmra.mxu2 %v6519_v24  ;;  %4472 = vpow2.f32 %v1776_v34 }
 0x4b1   :  { %1128 = vadd.xlane.f32.xlu0 %v4459_v0  ;;  %4474 = vpow2.f32 %v1104_v19 }
 0x4b2   :  { %4476 = vpow2.f32 %v1106_v16 }
 0x4b3   :  { %v1731_v30 = vpop.xlane.xlu1 %1730 }
 0x4b4   :  { %v1751_v41 = vsub.f32 %v6353_v27, %v1731_v30  ;;  %v2502_v53 = vpop.f32.mrf.mxu3 }
 0x4b6   :  { %v1778_v31 = vmul.f32 1.442695, %v1751_v41  ;;  %v6535_v0 = vpop.eup %4472  ;;  %v3296_v46 = vpop.f32.mrf.mxu1 }
 0x4b7   :  { %8015 = vst [vmem:[#allocation7_spill] sm:$0xff] %v6535_v0  ;;  %2533 = vmax.xlane.f32.xlu2 %v6527_v35  ;;  %1416 = vmatmul.f32.gmra.mxu0 %v4471_v47  ;;  %v4475_v8 = vpop.eup %4474  ;;  %v6558_v34 = vadd.f32 %v3296_v46, %v6259_v54 }
 0x4b8   :  { %4478 = vpow2.f32 %v1778_v31  ;;  %3326 = vmax.xlane.f32.xlu1 %v6531_v28  ;;  %2154 = vmatmul.f32.gmra.mxu2 %v6535_v0  ;;  %v4477_v49 = vpop.eup %4476 }
 0x4b9   :  { %1798 = vadd.xlane.f32.xlu0 %v6454_v55  ;;  %v1079_v55 = vsub.f32 %v6320_v13, %v6495_v3  ;;  %v1080_v13 = vsub.f32 %v6341_v11, %v1063_v29 }
 0x4bb   :  { %v1065_v27 = vpop.xlane.xlu1 %1064  ;;  %v1733_v6 = vpop.xlane.xlu0 %1732  ;;  %v1108_v7 = vmul.f32 1.442695, %v1079_v55  ;;  %v1110_v54 = vmul.f32 1.442695, %v1080_v13  ;;  %v6587_v55 = vadd.f32 %v2502_v53, %v6310_v51  ;;  %v6600_v13 = vadd.f32 %v6508_v59, %v6236_v25 }
 0x4bc   :  { %v1752_v22 = vsub.f32 %v6367_v63, %v1733_v6  ;;  %v1081_v3 = vsub.f32 %v6364_v57, %v1065_v27  ;;  %v2505_v16 = vpop.f32.mrf.mxu3  ;;  %v6575_v57 = vadd.f32 %v3293_v36, %v6266_v17 }
 0x4bd   :  { %v6569_v11 = vadd.f32 %v2505_v16, %v6338_v39 }
 0x4be   :  { %v6542_v50 = vpop.eup %4478  ;;  %v1780_v26 = vmul.f32 1.442695, %v1752_v22  ;;  %v1112_v31 = vmul.f32 1.442695, %v1081_v3 }
 0x4bf   :  { %1138 = vadd.xlane.f32.xlu2 %v4477_v49  ;;  %1419 = vmatmul.f32.gmra.mxu0 %v4475_v8 }
 0x4c0   :  { %2531 = vmax.xlane.f32.xlu1 %v6545_v52  ;;  %2157 = vmatmul.f32.gmra.mxu2 %v6542_v50  ;;  %4480 = vpow2.f32 %v1780_v26 }
 0x4c1   :  { %2529 = vmax.xlane.f32.xlu0 %v6549_v32  ;;  %4482 = vpow2.f32 %v1108_v7 }
 0x4c3   :  { %v1735_v63 = vpop.xlane.xlu2 %1734  ;;  %v2514_v30 = vpop.xlane.xlu0 %2513 }
 0x4c4   :  { %v2512_v4 = vpop.xlane.xlu1 %2511  ;;  %v1753_v12 = vsub.f32 %v6377_v5, %v1735_v63  ;;  %v6566_v5 = vpop.f32.mrf.mxu1  ;;  %v2544_v3 = vsub.f32 %v6374_v45, %v2514_v30 }
 0x4c6   :  { %v1782_v9 = vmul.f32 1.442695, %v1753_v12  ;;  %v6560_v19 = vpop.eup %4480  ;;  %v2561_v25 = vmul.f32 1.442695, %v2544_v3 }
 0x4c7   :  { %8016 = vst [vmem:[#allocation10_spill] sm:$0xff] %v6560_v19  ;;  %3334 = vmax.xlane.f32.xlu2 %v6558_v34  ;;  %1422 = vmatmul.f32.gmra.mxu0 %v4477_v49  ;;  %v6572_v22 = vpop.eup %4482 }
 0x4c8   :  { %1136 = vadd.xlane.f32.xlu1 %v4475_v8  ;;  %2160 = vmatmul.f32.gmra.mxu2 %v6560_v19  ;;  %4484 = vpow2.f32 %v1782_v9 }
 0x4c9   :  { %1134 = vadd.xlane.f32.xlu0 %v4471_v47  ;;  %4486 = vpow2.f32 %v1110_v54  ;;  %v2543_v47 = vsub.f32 %v6380_v61, %v2512_v4 }
 0x4ca   :  { %4488 = vpow2.f32 %v1112_v31 }
 0x4cb   :  { %v2516_v41 = vpop.xlane.xlu2 %2515  ;;  %v2559_v17 = vmul.f32 1.442695, %v2543_v47 }
 0x4cc   :  { %v1737_v6 = vpop.xlane.xlu1 %1736  ;;  %v3302_v36 = vpop.f32.mrf.mxu1  ;;  %v2545_v31 = vsub.f32 %v6389_v10, %v2516_v41 }
 0x4cd   :  { %v1754_v29 = vsub.f32 %v6392_v20, %v1737_v6 }
 0x4ce   :  { %v6580_v8 = vpop.eup %4484  ;;  %v2563_v59 = vmul.f32 1.442695, %v2545_v31 }
 0x4cf   :  { %v1784_v27 = vmul.f32 1.442695, %v1754_v29  ;;  %2539 = vmax.xlane.f32.xlu2 %v6569_v11  ;;  %1425 = vmatmul.f32.gmra.mxu0 %v6572_v22  ;;  %8017 = vst [vmem:[#allocation71_spill] sm:$0xff] %v6580_v8  ;;  %v4487_v49 = vpop.eup %4486 }
 0x4d0   :  { %3332 = vmax.xlane.f32.xlu1 %v6575_v57  ;;  %2163 = vmatmul.f32.gmra.mxu2 %v6580_v8  ;;  %v4489_v26 = vpop.eup %4488 }
 0x4d1   :  { %4490 = vpow2.f32 %v1784_v27  ;;  %1802 = vadd.xlane.f32.xlu0 %v6486_v37 }
 0x4d3   :  { %v1739_v39 = vpop.xlane.xlu0 %1738  ;;  %v1115_v20 = vpop.xlane.xlu2 %1114 }
 0x4d4   :  { %v1755_v61 = vsub.f32 %v6400_v62, %v1739_v39  ;;  %4492 = vrcp.f32 %v1115_v20  ;;  %v3305_v16 = vpop.f32.mrf.mxu1  ;;  %v1157_v54 = vand.u32 2147483648, %v1115_v20  ;;  %v1155_v6 = vand.u32 2147483647, %v1115_v20 }
 0x4d5   :  { %4494 = vpow2.f32 %v2559_v17  ;;  %vm1151_vm4 = vweird.f32 %v1115_v20 }
 0x4d6   :  { %v1786_v46 = vmul.f32 1.442695, %v1755_v61  ;;  %v1158_v45 = vor.u32 1.1754944e-38, %v1157_v54  ;;  %vm1156_vm6 = vcmp.eq.f32.partialorder %v1155_v6, 8.507059e+37  ;;  %v6610_v61 = vadd.f32 %v3305_v16, %v6310_v51 }
 0x4d7   :  { %v6589_v63 = vpop.eup %4490  ;;  %1144 = vadd.xlane.f32.xlu2 %v4489_v26  ;;  %1428 = vmatmul.f32.gmra.mxu0 %v4487_v49 }
 0x4d8   :  { %8018 = vst [vmem:[#allocation13_spill] sm:$0xff] %v6589_v63  ;;  %4496 = vpow2.f32 %v1786_v46  ;;  %2537 = vmax.xlane.f32.xlu1 %v6587_v55  ;;  %2166 = vmatmul.f32.gmra.mxu2 %v6589_v63  ;;  %v6618_v46 = vadd.f32 %v6533_v21, %v6317_v48 }
 0x4d9   :  { %1804 = vadd.xlane.f32.xlu0 %v6498_v14  ;;  %v1387_v10 = vpop.f32.mrf.mxu0  ;;  %8020 = vst [vmem:[#allocation46_spill] sm:$0xff] %v6610_v61  ;;  %4498 = vpow2.f32 %v2561_v25 }
 0x4da   :  { %v4493_v62 = vpop.eup %4492  ;;  %4500 = vpow2.f32 %v2563_v59 }
 0x4db   :  { %v1147_v37 = vmul.f32 %v4493_v62, %v1115_v20  ;;  %v2518_v7 = vpop.xlane.xlu0 %2517  ;;  %v6594_v4 = vpop.xlane.xlu2 %1788  ;;  %vm1152_vm3 = vweird.f32 %v4493_v62 }
 0x4dc   :  { %v4495_v53 = vpop.eup %4494  ;;  %v2546_v29 = vsub.f32 %v6408_v40, %v2518_v7  ;;  %vm1153_vm5 = vmor %vm1151_vm4, %vm1152_vm3  ;;  %v6623_v51 = vpop.f32.mrf.mxu1 }
 0x4dd   :  { %v1148_v12 = vsub.f32 1.0, %v1147_v37 }
 0x4de   :  { %v6596_v9 = vpop.eup %4496  ;;  %v2565_v27 = vmul.f32 1.442695, %v2546_v29 }
 0x4df   :  { %8019 = vst [vmem:[#allocation70_spill] sm:$0xff] %v6596_v9  ;;  %v1149_v14 = vmul.f32 %v4493_v62, %v1148_v12  ;;  %2591 = vadd.xlane.f32.xlu2 %v4495_v53  ;;  %1431 = vmatmul.f32.gmra.mxu0 %v4489_v26  ;;  %v6614_v26 = vadd.f32 %v3302_v36, %v6317_v48  ;;  %v6629_v21 = vpop.eup %4498 }
 0x4e0   :  { %1142 = vadd.xlane.f32.xlu1 %v4487_v49  ;;  %2169 = vmatmul.f32.gmra.mxu2 %v6596_v9  ;;  %4502 = vpow2.f32 %v2565_v27 }
 0x4e1   :  { %v1150_v47 = vadd.f32 %v4493_v62, %v1149_v14  ;;  %3330 = vmax.xlane.f32.xlu0 %v6600_v13 }
 0x4e3   :  { %v1154_v30 = vsel %vm1153_vm5, %v4493_v62, %v1150_v47  ;;  %v6607_v41 = vpop.xlane.xlu1 %1790 }
 0x4e4   :  { %v1159_v17 = vsel %vm1156_vm6, %v1158_v45, %v1154_v30  ;;  %v3315_v39 = vpop.xlane.xlu0 %3314  ;;  %v3317_v40 = vpop.xlane.xlu2 %3316 }
 0x4e5   :  { %v1435_v20 = vmul.f32 %v1387_v10, %v1159_v17  ;;  %v3346_v49 = vsub.f32 %v6418_v38, %v3315_v39  ;;  %v3347_v37 = vsub.f32 %v6422_v33, %v3317_v40  ;;  %v4501_v33 = vpop.eup %4500  ;;  %v3311_v3 = vpop.f32.mrf.mxu1 }
 0x4e7   :  { %1451 = vst.msk [vmem:[#allocation3 + $0x8] sm:$0xff] %vm904_vm2, %v1435_v20  ;;  %v3362_v62 = vmul.f32 1.442695, %v3346_v49  ;;  %3340 = vmax.xlane.f32.xlu2 %v6610_v61  ;;  %2927 = vmatmul.f32.vlgmr.msrb.gmra.mxu0 %v4495_v53  ;;  %v3364_v38 = vmul.f32 1.442695, %v3347_v37  ;;  %v4503_v53 = vpop.eup %4502  ;;  %v6672_v37 = vadd.f32 %v6566_v5, %v6287_v58 }
 0x4e8   :  { %3338 = vmax.xlane.f32.xlu1 %v6614_v26 }
 0x4e9   :  { %4504 = vpow2.f32 %v3362_v62  ;;  %2535 = vmax.xlane.f32.xlu0 %v6618_v46 }
 0x4ea   :  { %v6643_v31 = vpop.f32.mrf.mxu2 }
 0x4eb   :  { %v6627_v48 = vpop.xlane.xlu1 %1124 }
 0x4ec   :  { %v6631_v36 = vpop.xlane.xlu0 %1122  ;;  %v6633_v7 = vpop.f32.mrf.mxu0  ;;  %vm1221_vm5 = vweird.f32 %v6627_v48 }
 0x4ed   :  { %4506 = vrcp.f32 %v6631_v36  ;;  %vm1207_vm9 = vweird.f32 %v6631_v36 }
 0x4ee   :  { %4508 = vpow2.f32 %v3364_v38 }
 0x4ef   :  { %v4505_v12 = vpop.eup %4504  ;;  %2597 = vadd.xlane.f32.xlu2 %v4503_v53  ;;  %2930 = vmatmul.f32.gmra.mxu0 %v6629_v21  ;;  %4510 = vrcp.f32 %v6627_v48 }
 0x4f0   :  { %2595 = vadd.xlane.f32.xlu1 %v4501_v33  ;;  %3730 = vmatmul.f32.vlgmr.msra.gmra.mxu2 %v4505_v12 }
 0x4f1   :  { %1806 = vadd.xlane.f32.xlu0 %v6519_v24  ;;  %v8021_v24 = vld [vmem:[#allocation75_spill] sm:$0xff] }
 0x4f2   :  { %v6639_v16 = vpop.xlane.xlu2 %1126  ;;  %v6655_v59 = vadd.f32 %v3311_v3, %v8021_v24  ;;  %v1211_v3 = vand.u32 2147483647, %v6631_v36 }
 0x4f3   :  { %v6641_v54 = vpop.eup %4506  ;;  %v6645_v14 = vpop.xlane.xlu1 %1118 }
 0x4f4   :  { %v1203_v6 = vmul.f32 %v6641_v54, %v6631_v36  ;;  %4512 = vrcp.f32 %v6645_v14  ;;  %v2520_v29 = vpop.xlane.xlu0 %2519  ;;  %v6650_v47 = vpop.f32.mrf.mxu0  ;;  %8022 = vst [vmem:[#allocation62_spill] sm:$0xff] %v6655_v59  ;;  %v1185_v58 = vand.u32 2147483648, %v6645_v14  ;;  %vm1208_vm7 = vweird.f32 %v6641_v54 }
 0x4f5   :  { %v4509_v25 = vpop.eup %4508  ;;  %4514 = vrcp.f32 %v6639_v16  ;;  %v2547_v10 = vsub.f32 %v6442_v56, %v2520_v29  ;;  %vm1179_vm10 = vweird.f32 %v6645_v14  ;;  %vm6693_vm11 = vmor %vm1207_vm9, %vm1208_vm7  ;;  %vm6697_vm12 = vcmp.eq.f32.partialorder %v1211_v3, 8.507059e+37 }
 0x4f6   :  { %v6652_v45 = vpop.eup %4510  ;;  %v1204_v30 = vsub.f32 1.0, %v1203_v6  ;;  %v1213_v6 = vand.u32 2147483648, %v6631_v36 }
 0x4f7   :  { %3396 = vadd.xlane.f32.xlu2 %v4509_v25  ;;  %2933 = vmatmul.f32.gmra.mxu0 %v4501_v33  ;;  %v1217_v27 = vmul.f32 %v6652_v45, %v6627_v48  ;;  %v2567_v49 = vmul.f32 1.442695, %v2547_v10  ;;  %v1183_v10 = vand.u32 2147483647, %v6645_v14  ;;  %vm1222_vm1 = vweird.f32 %v6652_v45 }
 0x4f8   :  { %3344 = vmax.xlane.f32.xlu1 %v6655_v59  ;;  %3733 = vmatmul.f32.gmra.mxu2 %v4509_v25  ;;  %v1205_v39 = vmul.f32 %v6641_v54, %v1204_v30  ;;  %v6681_v30 = vpop.f32.mrf.mxu2  ;;  %vm6747_vm7 = vmor %vm1221_vm5, %vm1222_vm1 }
 0x4f9   :  { %1140 = vadd.xlane.f32.xlu0 %v6572_v22  ;;  %v1218_v29 = vsub.f32 1.0, %v1217_v27  ;;  %vm1184_vm14 = vcmp.eq.f32.partialorder %v1183_v10, 8.507059e+37 }
 0x4fa   :  { %v4513_v17 = vpop.eup %4512  ;;  %v6664_v40 = vpop.xlane.xlu2 %1120 }
 0x4fb   :  { %v1175_v20 = vmul.f32 %v4513_v17, %v6645_v14  ;;  %v3319_v62 = vpop.xlane.xlu1 %3318  ;;  %4516 = vrcp.f32 %v6664_v40  ;;  %v6668_v56 = vpop.eup %4514  ;;  %vm1180_vm8 = vweird.f32 %v4513_v17  ;;  %v1219_v19 = vmul.f32 %v6652_v45, %v1218_v29 }
 0x4fc   :  { %v3348_v38 = vsub.f32 %v6447_v18, %v3319_v62  ;;  %v6675_v22 = vpop.xlane.xlu0 %1116  ;;  %v6677_v33 = vpop.f32.mrf.mxu0  ;;  %v1206_v18 = vadd.f32 %v6641_v54, %v1205_v39  ;;  %v1231_v9 = vmul.f32 %v6668_v56, %v6639_v16  ;;  %vm1181_vm13 = vmor %vm1179_vm10, %vm1180_vm8  ;;  %v1197_v59 = vand.u32 2147483647, %v6664_v40 }
 0x4fd   :  { %v1176_v25 = vsub.f32 1.0, %v1175_v20  ;;  %4518 = vrcp.f32 %v6675_v22  ;;  %vm1193_vm3 = vweird.f32 %v6664_v40  ;;  %vm1236_vm10 = vweird.f32 %v6668_v56 }
 0x4fe   :  { %v3366_v5 = vmul.f32 1.442695, %v3348_v38  ;;  %4520 = vpow2.f32 %v2567_v49  ;;  %v1210_v14 = vsel %vm6693_vm11, %v6641_v54, %v1206_v18  ;;  %v1232_v3 = vsub.f32 1.0, %v1231_v9 }
 0x4ff   :  { %v1177_v62 = vmul.f32 %v4513_v17, %v1176_v25  ;;  %2936 = vmatmul.f32.gmra.mxu0 %v4503_v53  ;;  %v1227_v53 = vand.u32 2147483648, %v6627_v48  ;;  %v1214_v25 = vor.u32 1.1754944e-38, %v1213_v6  ;;  %v1199_v9 = vand.u32 2147483648, %v6664_v40 }
 0x500   :  { %4522 = vpow2.f32 %v3366_v5  ;;  %3394 = vadd.xlane.f32.xlu1 %v4505_v12  ;;  %v1186_v12 = vor.u32 1.1754944e-38, %v1185_v58  ;;  %v6729_v61 = vpop.f32.mrf.mxu2  ;;  %vm1198_vm6 = vcmp.eq.f32.partialorder %v1197_v59, 8.507059e+37  ;;  %vm1165_vm11 = vweird.f32 %v6675_v22 }
 0x501   :  { %v4517_v27 = vpop.eup %4516  ;;  %v1178_v20 = vadd.f32 %v4513_v17, %v1177_v62  ;;  %3336 = vmax.xlane.f32.xlu0 %v6672_v37  ;;  %v2508_v62 = vpop.f32.mrf.mxu3 }
 0x502   :  { %v1189_v36 = vmul.f32 %v4517_v27, %v6664_v40  ;;  %v6703_v49 = vpop.xlane.xlu2 %1794  ;;  %vm1194_vm15 = vweird.f32 %v4517_v27 }
 0x503   :  { %8027 = vst [vmem:[#allocation72_spill] sm:$0xff] %v6703_v49  ;;  %v6708_v5 = vpop.eup %4518  ;;  %v1182_v63 = vsel %vm1181_vm13, %v4513_v17, %v1178_v20  ;;  %v6710_v8 = vpop.xlane.xlu1 %2525  ;;  %v1215_v17 = vsel %vm6697_vm12, %v1214_v25, %v1210_v14  ;;  %vm1195_vm4 = vmor %vm1193_vm3, %vm1194_vm15  ;;  %vm1235_vm13 = vweird.f32 %v6639_v16  ;;  %vm1825_vm3 = vweird.f32 %v6594_v4 }
 0x504   :  { %v1187_v58 = vsel %vm1184_vm14, %v1186_v12, %v1182_v63  ;;  %v1190_v0 = vsub.f32 1.0, %v1189_v36  ;;  %v1161_v49 = vmul.f32 %v6708_v5, %v6675_v22  ;;  %v2522_v39 = vpop.xlane.xlu0 %2521  ;;  %v1399_v54 = vpop.f32.mrf.mxu0  ;;  %v6726_v36 = vadd.f32 %v2508_v62, %v8021_v24  ;;  %vm6770_vm15 = vmor %vm1235_vm13, %vm1236_vm10 }
 0x505   :  { %v6716_v6 = vpop.eup %4520  ;;  %v1437_v18 = vmul.f32 %v6650_v47, %v1187_v58  ;;  %v2548_v20 = vsub.f32 %v6463_v23, %v2522_v39  ;;  %v1439_v12 = vmul.f32 %v1399_v54, %v1215_v17  ;;  %v1220_v47 = vadd.f32 %v6652_v45, %v1219_v19 }
 0x506   :  { %v6722_v29 = vpop.eup %4522  ;;  %v1191_v63 = vmul.f32 %v4517_v27, %v1190_v0  ;;  %v1162_v10 = vsub.f32 1.0, %v1161_v49  ;;  %v1233_v24 = vmul.f32 %v6668_v56, %v1232_v3  ;;  %v1200_v49 = vor.u32 1.1754944e-38, %v1199_v9 }
 0x507   :  { %1453 = vst.msk [vmem:[#allocation3 + $0x28] sm:$0xff] %vm904_vm2, %v1437_v18  ;;  %3736 = vmatmul.f32.gmra.mxu2 %v6722_v29  ;;  %2939 = vmatmul.f32.gmra.mxu0 %v6716_v6  ;;  %v2569_v23 = vmul.f32 1.442695, %v2548_v20  ;;  %v1225_v19 = vand.u32 2147483647, %v6627_v48  ;;  %v1228_v62 = vor.u32 1.1754944e-38, %v1227_v53  ;;  %v1224_v48 = vsel %vm6747_vm7, %v6652_v45, %v1220_v47 }
 0x508   :  { %v1163_v0 = vmul.f32 %v6708_v5, %v1162_v10  ;;  %v1192_v38 = vadd.f32 %v4517_v27, %v1191_v63  ;;  %1455 = vst.msk [vmem:[#allocation3 + $0x48] sm:$0xff] %vm904_vm2, %v1439_v12  ;;  %v1171_v3 = vand.u32 2147483648, %v6675_v22  ;;  %vm1166_vm8 = vweird.f32 %v6708_v5  ;;  %v6776_v47 = vpop.f32.mrf.mxu2 }
 0x509   :  { %2541 = vmax.xlane.f32.xlu0 %v6726_v36  ;;  %4524 = vpow2.f32 %v2569_v23  ;;  %vm1226_vm9 = vcmp.eq.f32.partialorder %v1225_v19, 8.507059e+37  ;;  %v1234_v9 = vadd.f32 %v6668_v56, %v1233_v24  ;;  %v1241_v17 = vand.u32 2147483648, %v6639_v16  ;;  %vm1167_vm12 = vmor %vm1165_vm11, %vm1166_vm8 }
 0x50a   :  { %v1196_v14 = vsel %vm1195_vm4, %v4517_v27, %v1192_v38  ;;  %v6743_v25 = vpop.xlane.xlu2 %2527  ;;  %v1164_v59 = vadd.f32 %v6708_v5, %v1163_v0  ;;  %v1169_v27 = vand.u32 2147483647, %v6675_v22  ;;  %v1229_v45 = vsel %vm1226_vm9, %v1228_v62, %v1224_v48  ;;  %v4686_v62 = vld [vmem:[%s7837_s4 + $0x70] sm:$0xff] }
 0x50b   :  { %v1201_v58 = vsel %vm1198_vm6, %v1200_v49, %v1196_v14  ;;  %v6752_v39 = vpop.xlane.xlu1 %1796  ;;  %v1172_v63 = vor.u32 1.1754944e-38, %v1171_v3  ;;  %4526 = vrcp.f32 %v6594_v4  ;;  %v1242_v23 = vor.u32 1.1754944e-38, %v1241_v17 }
 0x50c   :  { %v1438_v54 = vmul.f32 %v6677_v33, %v1201_v58  ;;  %v6761_v18 = vpop.xlane.xlu0 %1792  ;;  %v1402_v53 = vpop.f32.mrf.mxu0  ;;  %v1239_v33 = vand.u32 2147483647, %v6639_v16  ;;  %vm1170_vm14 = vcmp.eq.f32.partialorder %v1169_v27, 8.507059e+37  ;;  %v1168_v12 = vsel %vm1167_vm12, %v6708_v5, %v1164_v59 }
 0x50d   :  { %v1440_v10 = vmul.f32 %v1402_v53, %v1229_v45  ;;  %v1238_v16 = vsel %vm6770_vm15, %v6668_v56, %v1234_v9  ;;  %v1173_v0 = vsel %vm1170_vm14, %v1172_v63, %v1168_v12  ;;  %v2550_v58 = vsub.f32 %v6457_v60, %v6710_v8 }
 0x50e   :  { %1454 = vst.msk [vmem:[#allocation3 + $0x38] sm:$0xff] %vm904_vm2, %v1438_v54  ;;  %v1436_v5 = vmul.f32 %v6633_v7, %v1173_v0  ;;  %vm1240_vm1 = vcmp.eq.f32.partialorder %v1239_v33, 8.507059e+37  ;;  %v6795_v7 = vadd.f32 %v4686_v62, %v6623_v51 }
 0x50f   :  { %v4525_v22 = vpop.eup %4524  ;;  %1456 = vst.msk [vmem:[#allocation3 + $0x58] sm:$0xff] %vm904_vm2, %v1440_v10  ;;  %v1243_v19 = vsel %vm1240_vm1, %v1242_v23, %v1238_v16  ;;  %v2573_v60 = vmul.f32 1.442695, %v2550_v58  ;;  %vm1839_vm1 = vweird.f32 %v6607_v41 }
 0x510   :  { %2601 = vadd.xlane.f32.xlu1 %v4525_v22  ;;  %2942 = vmatmul.f32.gmra.mxu0 %v4525_v22  ;;  %1452 = vst.msk [vmem:[#allocation3 + $0x18] sm:$0xff] %vm904_vm2, %v1436_v5  ;;  %v6808_v51 = vpop.f32.mrf.mxu2 }
 0x511   :  { %2593 = vadd.xlane.f32.xlu0 %v6629_v21  ;;  %v6789_v40 = vpop.eup %4526 }
 0x512   :  { %v6783_v38 = vpop.xlane.xlu2 %1132  ;;  %vm1826_vm4 = vweird.f32 %v6789_v40 }
 0x513   :  { %v3323_v24 = vpop.xlane.xlu1 %3322  ;;  %4528 = vrcp.f32 %v6783_v38  ;;  %vm6848_vm7 = vmor %vm1825_vm3, %vm1826_vm4  ;;  %vm1277_vm8 = vweird.f32 %v6783_v38 }
 0x514   :  { %v2524_v49 = vpop.xlane.xlu0 %2523  ;;  %v1405_v14 = vpop.f32.mrf.mxu0  ;;  %v3350_v20 = vsub.f32 %v6484_v15, %v3323_v24  ;;  %v1829_v15 = vand.u32 2147483647, %v6594_v4 }
 0x515   :  { %v2549_v21 = vsub.f32 %v6490_v42, %v2524_v49  ;;  %v1441_v56 = vmul.f32 %v1405_v14, %v1243_v19  ;;  %v1821_v42 = vmul.f32 %v6789_v40, %v6594_v4 }
 0x516   :  { %vm6863_vm11 = vcmp.eq.f32.partialorder %v1829_v15, 8.507059e+37 }
 0x517   :  { %v2571_v3 = vmul.f32 1.442695, %v2549_v21  ;;  %1457 = vst.msk [vmem:[#allocation3 + $0x68] sm:$0xff] %vm904_vm2, %v1441_v56  ;;  %v1822_v45 = vsub.f32 1.0, %v1821_v42 }
 0x519   :  { %v6800_v48 = vpop.eup %4528  ;;  %4530 = vpow2.f32 %v2571_v3  ;;  %3342 = vmax.xlane.f32.xlu0 %v6795_v7  ;;  %v1823_v22 = vmul.f32 %v6789_v40, %v1822_v45  ;;  %v1283_v45 = vand.u32 2147483648, %v6783_v38 }
 0x51a   :  { %v6805_v59 = vpop.xlane.xlu2 %1800  ;;  %4532 = vrcp.f32 %v6607_v41  ;;  %v1273_v27 = vmul.f32 %v6800_v48, %v6783_v38  ;;  %vm1278_vm5 = vweird.f32 %v6800_v48 }
 0x51b   :  { %v6812_v54 = vpop.xlane.xlu1 %1130  ;;  %v1824_v21 = vadd.f32 %v6789_v40, %v1823_v22  ;;  %vm6858_vm10 = vmor %vm1277_vm8, %vm1278_vm5 }
 0x51c   :  { %4534 = vrcp.f32 %v6812_v54  ;;  %v3321_v8 = vpop.xlane.xlu0 %3320  ;;  %v6815_v53 = vpop.f32.mrf.mxu0  ;;  %v1274_v63 = vsub.f32 1.0, %v1273_v27  ;;  %v1269_v62 = vand.u32 2147483648, %v6812_v54  ;;  %v1267_v42 = vand.u32 2147483647, %v6812_v54 }
 0x51d   :  { %v3349_v9 = vsub.f32 %v6502_v1, %v3321_v8  ;;  %4536 = vpow2.f32 %v2573_v60  ;;  %v2551_v1 = vsub.f32 %v6473_v43, %v6743_v25  ;;  %v3370_v43 = vmul.f32 1.442695, %v3350_v20  ;;  %v6836_v25 = vpop.f32.mrf.mxu2 }
 0x51e   :  { %v1275_v5 = vmul.f32 %v6800_v48, %v1274_v63  ;;  %vm1263_vm9 = vweird.f32 %v6812_v54  ;;  %vm1268_vm13 = vcmp.eq.f32.partialorder %v1267_v42, 8.507059e+37 }
 0x51f   :  { %v4531_v17 = vpop.eup %4530  ;;  %v3368_v10 = vmul.f32 1.442695, %v3349_v9  ;;  %v2575_v56 = vmul.f32 1.442695, %v2551_v1  ;;  %v1831_v9 = vand.u32 2147483648, %v6594_v4 }
 0x520   :  { %2603 = vadd.xlane.f32.xlu2 %v4531_v17  ;;  %2945 = vmatmul.f32.gmra.mxu0 %v4531_v17  ;;  %v6818_v33 = vpop.eup %4532  ;;  %v1276_v27 = vadd.f32 %v6800_v48, %v1275_v5  ;;  %v1281_v4 = vand.u32 2147483647, %v6783_v38 }
 0x521   :  { %4538 = vpow2.f32 %v3368_v10  ;;  %2599 = vadd.xlane.f32.xlu0 %v6716_v6  ;;  %v1835_v49 = vmul.f32 %v6818_v33, %v6607_v41  ;;  %vm1840_vm3 = vweird.f32 %v6818_v33 }
 0x522   :  { %v4535_v12 = vpop.eup %4534  ;;  %v6825_v16 = vpop.xlane.xlu2 %3328  ;;  %vm1282_vm14 = vcmp.eq.f32.partialorder %v1281_v4, 8.507059e+37  ;;  %v1843_v4 = vand.u32 2147483647, %v6607_v41 }
 0x523   :  { %v1259_v0 = vmul.f32 %v4535_v12, %v6812_v54  ;;  %v3325_v23 = vpop.xlane.xlu1 %3324  ;;  %v4537_v14 = vpop.eup %4536  ;;  %vm1264_vm6 = vweird.f32 %v4535_v12  ;;  %v1836_v60 = vsub.f32 1.0, %v1835_v49  ;;  %v1270_v54 = vor.u32 1.1754944e-38, %v1269_v62 }
 0x524   :  { %v6833_v6 = vpop.xlane.xlu0 %1128  ;;  %v1411_v24 = vpop.f32.mrf.mxu0  ;;  %v3351_v20 = vsub.f32 %v6516_v2, %v3325_v23  ;;  %vm1265_vm12 = vmor %vm1263_vm9, %vm1264_vm6  ;;  %v1280_v49 = vsel %vm6858_vm10, %v6800_v48, %v1276_v27  ;;  %vm1844_vm8 = vcmp.eq.f32.partialorder %v1843_v4, 8.507059e+37 }
 0x525   :  { %v1260_v19 = vsub.f32 1.0, %v1259_v0  ;;  %4540 = vrcp.f32 %v6833_v6  ;;  %v1828_v0 = vsel %vm6848_vm7, %v6789_v40, %v1824_v21  ;;  %v1837_v40 = vmul.f32 %v6818_v33, %v1836_v60  ;;  %v6887_v27 = vpop.f32.mrf.mxu2  ;;  %vm6915_vm6 = vmor %vm1839_vm1, %vm1840_vm3 }
 0x526   :  { %4542 = vpow2.f32 %v3370_v43  ;;  %v3372_v21 = vmul.f32 1.442695, %v3351_v20  ;;  %v1255_v8 = vand.u32 2147483648, %v6833_v6  ;;  %vm1249_vm4 = vweird.f32 %v6833_v6 }
 0x527   :  { %v4539_v3 = vpop.eup %4538  ;;  %v1261_v58 = vmul.f32 %v4535_v12, %v1260_v19  ;;  %4544 = vpow2.f32 %v2575_v56  ;;  %v1284_v19 = vor.u32 1.1754944e-38, %v1283_v45  ;;  %v1832_v56 = vor.u32 1.1754944e-38, %v1831_v9 }
 0x528   :  { %3400 = vadd.xlane.f32.xlu1 %v4539_v3  ;;  %2605 = vadd.xlane.f32.xlu2 %v4537_v14  ;;  %v1253_v45 = vand.u32 2147483647, %v6833_v6  ;;  %v1256_v10 = vor.u32 1.1754944e-38, %v1255_v8 }
 0x529   :  { %v1262_v17 = vadd.f32 %v4535_v12, %v1261_v58  ;;  %2948 = vmatmul.f32.gmra.mxu0 %v4537_v14  ;;  %3739 = vmatmul.f32.gmra.mxu2 %v4539_v3  ;;  %v1285_v58 = vsel %vm1282_vm14, %v1284_v19, %v1280_v49  ;;  %v1833_v42 = vsel %vm6863_vm11, %v1832_v56, %v1828_v0 }
 0x52a   :  { %v6869_v22 = vpop.xlane.xlu2 %2533  ;;  %vm1254_vm7 = vcmp.eq.f32.partialorder %v1253_v45, 8.507059e+37 }
 0x52b   :  { %v6871_v1 = vpop.eup %4540  ;;  %v1266_v5 = vsel %vm1265_vm12, %v4535_v12, %v1262_v17  ;;  %v3327_v38 = vpop.xlane.xlu1 %3326  ;;  %v1838_v17 = vadd.f32 %v6818_v33, %v1837_v40 }
 0x52c   :  { %v1245_v2 = vmul.f32 %v6871_v1, %v6833_v6  ;;  %v1271_v23 = vsel %vm1268_vm13, %v1270_v54, %v1266_v5  ;;  %v3352_v15 = vsub.f32 %v6531_v28, %v3327_v38  ;;  %v6882_v43 = vpop.xlane.xlu0 %1798  ;;  %v1414_v14 = vpop.f32.mrf.mxu0  ;;  %v3353_v28 = vsub.f32 %v6512_v44, %v6825_v16 }
 0x52d   :  { %v1443_v12 = vmul.f32 %v1411_v24, %v1271_v23  ;;  %v4543_v48 = vpop.eup %4542  ;;  %v1444_v60 = vmul.f32 %v1414_v14, %v1285_v58  ;;  %vm1250_vm15 = vweird.f32 %v6871_v1  ;;  %v1845_v44 = vand.u32 2147483648, %v6607_v41 }
 0x52e   :  { %v1246_v62 = vsub.f32 1.0, %v1245_v2  ;;  %v3374_v3 = vmul.f32 1.442695, %v3352_v15  ;;  %v4545_v24 = vpop.eup %4544  ;;  %vm1251_vm5 = vmor %vm1249_vm4, %vm1250_vm15  ;;  %v1842_v38 = vsel %vm6915_vm6, %v6818_v33, %v1838_v17  ;;  %v2554_v17 = vsub.f32 %v6527_v35, %v6869_v22 }
 0x52f   :  { %1459 = vst.msk [vmem:[#allocation3 + $0x88] sm:$0xff] %vm904_vm2, %v1443_v12  ;;  %v1846_v23 = vor.u32 1.1754944e-38, %v1845_v44 }
 0x530   :  { %v1247_v9 = vmul.f32 %v6871_v1, %v1246_v62  ;;  %4546 = vpow2.f32 %v3374_v3  ;;  %1810 = vadd.xlane.f32.xlu1 %v6542_v50  ;;  %3402 = vadd.xlane.f32.xlu2 %v4543_v48  ;;  %1460 = vst.msk [vmem:[#allocation3 + $0x98] sm:$0xff] %vm904_vm2, %v1444_v60  ;;  %v2173_v50 = vmul.f32 %v6643_v31, %v1833_v42  ;;  %v3376_v31 = vmul.f32 1.442695, %v3353_v28 }
 0x531   :  { %2951 = vmatmul.f32.gmra.mxu0 %v4545_v24  ;;  %3742 = vmatmul.f32.gmra.mxu2 %v4543_v48  ;;  %4548 = vpow2.f32 %v3372_v21  ;;  %v1847_v56 = vsel %vm1844_vm8, %v1846_v23, %v1842_v38  ;;  %v2581_v38 = vmul.f32 1.442695, %v2554_v17  ;;  %v1885_v17 = vand.u32 2147483647, %v6752_v39 }
 0x532   :  { %v1248_v16 = vadd.f32 %v6871_v1, %v1247_v9  ;;  %v6904_v63 = vpop.xlane.xlu2 %1138  ;;  %v2174_v21 = vmul.f32 %v6681_v30, %v1847_v56 }
 0x533   :  { %v2532_v20 = vpop.xlane.xlu1 %2531  ;;  %4550 = vrcp.f32 %v6904_v63  ;;  %v1325_v30 = vand.u32 2147483648, %v6904_v63  ;;  %vm1319_vm10 = vweird.f32 %v6904_v63 }
 0x534   :  { %4552 = vrcp.f32 %v6752_v39  ;;  %v2530_v6 = vpop.xlane.xlu0 %2529  ;;  %v6920_v0 = vpop.f32.mrf.mxu0  ;;  %v1252_v5 = vsel %vm1251_vm5, %v6871_v1, %v1248_v16  ;;  %vm1881_vm5 = vweird.f32 %v6752_v39 }
 0x535   :  { %v2552_v49 = vsub.f32 %v6549_v32, %v2530_v6  ;;  %2205 = vrot.lane.b32.xlu0 %v2173_v50, %s4717_s9  ;;  %v1257_v41 = vsel %vm1254_vm7, %v1256_v10, %v1252_v5  ;;  %4554 = vpow2.f32 %v3376_v31  ;;  %v6932_v1 = vpop.f32.mrf.mxu2  ;;  %v2553_v32 = vsub.f32 %v6545_v52, %v2532_v20 }
 0x536   :  { %v4547_v2 = vpop.eup %4546  ;;  %v1442_v15 = vmul.f32 %v6815_v53, %v1257_v41  ;;  %v1326_v4 = vor.u32 1.1754944e-38, %v1325_v30 }
 0x537   :  { %v2577_v19 = vmul.f32 1.442695, %v2552_v49  ;;  %v6929_v14 = vpop.eup %4548  ;;  %v2579_v42 = vmul.f32 1.442695, %v2553_v32 }
 0x538   :  { %3406 = vadd.xlane.f32.xlu1 %v4547_v2  ;;  %2607 = vadd.xlane.f32.xlu2 %v4545_v24  ;;  %1458 = vst.msk [vmem:[#allocation3 + $0x78] sm:$0xff] %vm904_vm2, %v1442_v15  ;;  %v1323_v24 = vand.u32 2147483647, %v6904_v63 }
 0x539   :  { %v4551_v33 = vpop.eup %4550  ;;  %4556 = vpow2.f32 %v2577_v19  ;;  %3745 = vmatmul.f32.gmra.mxu2 %v6929_v14 }
 0x53a   :  { %v6936_v40 = vpop.eup %4552  ;;  %v1315_v53 = vmul.f32 %v4551_v33, %v6904_v63  ;;  %v6939_v12 = vpop.xlane.xlu2 %3334  ;;  %vm1320_vm9 = vweird.f32 %v4551_v33  ;;  %vm1324_vm12 = vcmp.eq.f32.partialorder %v1323_v24, 8.507059e+37 }
 0x53b   :  { %v1137_v62 = vpop.xlane.xlu1 %1136  ;;  %v1877_v52 = vmul.f32 %v6936_v40, %v6752_v39  ;;  %v4555_v28 = vpop.eup %4554  ;;  %vm1321_vm11 = vmor %vm1319_vm10, %vm1320_vm9  ;;  %vm1882_vm14 = vweird.f32 %v6936_v40  ;;  %vm1886_vm10 = vcmp.eq.f32.partialorder %v1885_v17, 8.507059e+37 }
 0x53c   :  { %v1316_v3 = vsub.f32 1.0, %v1315_v53  ;;  %4558 = vrcp.f32 %v1137_v62  ;;  %v6942_v58 = vpop.xlane.xlu0 %1134  ;;  %v6944_v48 = vpop.f32.mrf.mxu0  ;;  %v1311_v23 = vand.u32 2147483648, %v1137_v62  ;;  %vm1305_vm15 = vweird.f32 %v1137_v62  ;;  %vm6983_vm6 = vmor %vm1881_vm5, %vm1882_vm14 }
 0x53d   :  { %4560 = vrcp.f32 %v6942_v58  ;;  %2207 = vrot.lane.b32.xlu0 %v2174_v21, %s4717_s9  ;;  %v1878_v45 = vsub.f32 1.0, %v1877_v52  ;;  %v6957_v20 = vpop.f32.mrf.mxu2  ;;  %v1295_v21 = vand.u32 2147483647, %v6942_v58  ;;  %vm1291_vm7 = vweird.f32 %v6942_v58 }
 0x53e   :  { %v1317_v8 = vmul.f32 %v4551_v33, %v1316_v3  ;;  %4562 = vpow2.f32 %v2579_v42  ;;  %v1297_v3 = vand.u32 2147483648, %v6942_v58  ;;  %v1312_v52 = vor.u32 1.1754944e-38, %v1311_v23 }
 0x53f   :  { %v4557_v60 = vpop.eup %4556  ;;  %v1879_v5 = vmul.f32 %v6936_v40, %v1878_v45  ;;  %4564 = vpow2.f32 %v2581_v38  ;;  %vm1296_vm9 = vcmp.eq.f32.partialorder %v1295_v21, 8.507059e+37 }
 0x540   :  { %2609 = vadd.xlane.f32.xlu2 %v4557_v60  ;;  %3408 = vadd.xlane.f32.xlu1 %v4555_v28  ;;  %v1318_v9 = vadd.f32 %v4551_v33, %v1317_v8 }
 0x541   :  { %2954 = vmatmul.f32.gmra.mxu0 %v4557_v60  ;;  %3748 = vmatmul.f32.gmra.mxu2 %v4547_v2  ;;  %v1309_v2 = vand.u32 2147483647, %v1137_v62  ;;  %v1880_v32 = vadd.f32 %v6936_v40, %v1879_v5 }
 0x542   :  { %v4559_v44 = vpop.eup %4558  ;;  %v6955_v16 = vpop.xlane.xlu2 %2539  ;;  %v1322_v50 = vsel %vm1321_vm11, %v4551_v33, %v1318_v9 }
 0x543   :  { %v4561_v10 = vpop.eup %4560  ;;  %v1301_v54 = vmul.f32 %v4559_v44, %v1137_v62  ;;  %v6959_v31 = vpop.xlane.xlu1 %3332  ;;  %v1327_v35 = vsel %vm1324_vm12, %v1326_v4, %v1322_v50  ;;  %vm1306_vm13 = vweird.f32 %v4559_v44  ;;  %vm1310_vm3 = vcmp.eq.f32.partialorder %v1309_v2, 8.507059e+37 }
 0x544   :  { %v1287_v63 = vmul.f32 %v4561_v10, %v6942_v58  ;;  %v6962_v6 = vpop.xlane.xlu0 %1802  ;;  %v1423_v22 = vpop.f32.mrf.mxu0  ;;  %vm1307_vm1 = vmor %vm1305_vm15, %vm1306_vm13  ;;  %vm1292_vm4 = vweird.f32 %v4561_v10  ;;  %v1887_v62 = vand.u32 2147483648, %v6752_v39  ;;  %v1298_v4 = vor.u32 1.1754944e-38, %v1297_v3 }
 0x545   :  { %v1302_v49 = vsub.f32 1.0, %v1301_v54  ;;  %v4563_v15 = vpop.eup %4562  ;;  %v1447_v56 = vmul.f32 %v1423_v22, %v1327_v35  ;;  %v6991_v50 = vpop.f32.mrf.mxu2  ;;  %vm1293_vm8 = vmor %vm1291_vm7, %vm1292_vm4  ;;  %v3356_v3 = vsub.f32 %v6558_v34, %v6939_v12  ;;  %v2557_v34 = vsub.f32 %v6569_v11, %v6955_v16 }
 0x546   :  { %v1288_v41 = vsub.f32 1.0, %v1287_v63  ;;  %v6994_v54 = vpop.eup %4564  ;;  %v1884_v63 = vsel %vm6983_vm6, %v6936_v40, %v1880_v32  ;;  %v1888_v58 = vor.u32 1.1754944e-38, %v1887_v62 }
 0x547   :  { %v1303_v19 = vmul.f32 %v4559_v44, %v1302_v49  ;;  %1463 = vst.msk [vmem:[#allocation3 + $0xc8] sm:$0xff] %vm904_vm2, %v1447_v56 }
 0x548   :  { %v1289_v33 = vmul.f32 %v4561_v10, %v1288_v41  ;;  %2611 = vadd.xlane.f32.xlu2 %v4563_v15  ;;  %v1889_v5 = vsel %vm1886_vm10, %v1888_v58, %v1884_v63 }
 0x549   :  { %v1304_v53 = vadd.f32 %v4559_v44, %v1303_v19  ;;  %2957 = vmatmul.f32.gmra.mxu0 %v4563_v15  ;;  %3751 = vmatmul.f32.gmra.mxu2 %v4555_v28  ;;  %v2177_v23 = vmul.f32 %v6808_v51, %v1889_v5  ;;  %v3355_v15 = vsub.f32 %v6575_v57, %v6959_v31 }
 0x54a   :  { %v6970_v42 = vpop.xlane.xlu2 %1144  ;;  %v1290_v8 = vadd.f32 %v4561_v10, %v1289_v33 }
 0x54b   :  { %v1308_v30 = vsel %vm1307_vm1, %v4559_v44, %v1304_v53  ;;  %v6972_v60 = vpop.xlane.xlu1 %2537  ;;  %4566 = vrcp.f32 %v6970_v42  ;;  %v1367_v33 = vand.u32 2147483648, %v6970_v42  ;;  %v1365_v21 = vand.u32 2147483647, %v6970_v42 }
 0x54c   :  { %v1313_v28 = vsel %vm1310_vm3, %v1312_v52, %v1308_v30  ;;  %v6977_v24 = vpop.xlane.xlu0 %1804  ;;  %v6979_v9 = vpop.f32.mrf.mxu0  ;;  %v1294_v39 = vsel %vm1293_vm8, %v4561_v10, %v1290_v8  ;;  %vm1361_vm13 = vweird.f32 %v6970_v42 }
 0x54d   :  { %v1446_v44 = vmul.f32 %v6944_v48, %v1313_v28  ;;  %4568 = vrcp.f32 %v6977_v24  ;;  %v1299_v35 = vsel %vm1296_vm9, %v1298_v4, %v1294_v39  ;;  %v1941_v52 = vand.u32 2147483647, %v6977_v24 }
 0x54e   :  { %v1445_v22 = vmul.f32 %v6920_v0, %v1299_v35  ;;  %4570 = vrcp.f32 %v6761_v18  ;;  %v1943_v51 = vand.u32 2147483648, %v6977_v24  ;;  %v3380_v28 = vmul.f32 1.442695, %v3355_v15 }
 0x54f   :  { %1462 = vst.msk [vmem:[#allocation3 + $0xb8] sm:$0xff] %vm904_vm2, %v1446_v44  ;;  %vm1937_vm14 = vweird.f32 %v6977_v24  ;;  %v1368_v45 = vor.u32 1.1754944e-38, %v1367_v33  ;;  %vm1366_vm1 = vcmp.eq.f32.partialorder %v1365_v21, 8.507059e+37  ;;  %vm1942_vm4 = vcmp.eq.f32.partialorder %v1941_v52, 8.507059e+37 }
 0x550   :  { %1461 = vst.msk [vmem:[#allocation3 + $0xa8] sm:$0xff] %vm904_vm2, %v1445_v22 }
 0x551   :  { %v4567_v48 = vpop.eup %4566  ;;  %2960 = vmatmul.f32.gmra.mxu0 %v6994_v54 }
 0x552   :  { %v1357_v38 = vmul.f32 %v4567_v48, %v6970_v42  ;;  %v7004_v49 = vpop.xlane.xlu2 %2591  ;;  %vm1362_vm11 = vweird.f32 %v4567_v48  ;;  %v1944_v42 = vor.u32 1.1754944e-38, %v1943_v51 }
 0x553   :  { %v4569_v40 = vpop.eup %4568  ;;  %v7006_v41 = vpop.xlane.xlu1 %1142  ;;  %4572 = vrcp.f32 %v7004_v49  ;;  %vm1363_vm15 = vmor %vm1361_vm13, %vm1362_vm11  ;;  %vm2628_vm7 = vweird.f32 %v7004_v49 }
 0x554   :  { %v1358_v10 = vsub.f32 1.0, %v1357_v38  ;;  %v1933_v2 = vmul.f32 %v4569_v40, %v6977_v24  ;;  %4574 = vrcp.f32 %v7006_v41  ;;  %v3331_v0 = vpop.xlane.xlu0 %3330  ;;  %v7016_v56 = vpop.f32.mrf.mxu0  ;;  %vm1938_vm12 = vweird.f32 %v4569_v40 }
 0x555   :  { %v3354_v19 = vsub.f32 %v6600_v13, %v3331_v0  ;;  %v7024_v57 = vpop.eup %4570  ;;  %v7026_v13 = vpop.f32.mrf.mxu2  ;;  %vm7032_vm3 = vmor %vm1937_vm14, %vm1938_vm12  ;;  %v2632_v38 = vand.u32 2147483647, %v7004_v49  ;;  %v1353_v0 = vand.u32 2147483648, %v7006_v41  ;;  %vm1347_vm8 = vweird.f32 %v7006_v41 }
 0x556   :  { %v1934_v32 = vsub.f32 1.0, %v1933_v2  ;;  %v1359_v53 = vmul.f32 %v4567_v48, %v1358_v10  ;;  %v2634_v10 = vand.u32 2147483648, %v7004_v49  ;;  %vm1854_vm13 = vweird.f32 %v7024_v57 }
 0x557   :  { %v3378_v8 = vmul.f32 1.442695, %v3354_v19  ;;  %vm2633_vm11 = vcmp.eq.f32.partialorder %v2632_v38, 8.507059e+37  ;;  %vm1853_vm14 = vweird.f32 %v6761_v18 }
 0x558   :  { %v1935_v31 = vmul.f32 %v4569_v40, %v1934_v32  ;;  %v1360_v30 = vadd.f32 %v4567_v48, %v1359_v53 }
 0x559   :  { %v4573_v62 = vpop.eup %4572  ;;  %4576 = vpow2.f32 %v3378_v8  ;;  %v1351_v8 = vand.u32 2147483647, %v7006_v41 }
 0x55a   :  { %v4575_v17 = vpop.eup %4574  ;;  %v1936_v44 = vadd.f32 %v4569_v40, %v1935_v31  ;;  %v2624_v4 = vmul.f32 %v4573_v62, %v7004_v49  ;;  %v1364_v63 = vsel %vm1363_vm15, %v4567_v48, %v1360_v30  ;;  %vm2629_vm5 = vweird.f32 %v4573_v62  ;;  %v7077_v12 = vpop.xlane.xlu2 %3340  ;;  %vm7094_vm15 = vmor %vm1853_vm14, %vm1854_vm13 }
 0x55b   :  { %v1343_v58 = vmul.f32 %v4575_v17, %v7006_v41  ;;  %v7037_v35 = vpop.xlane.xlu1 %3338  ;;  %v1369_v24 = vsel %vm1366_vm1, %v1368_v45, %v1364_v63  ;;  %vm1348_vm6 = vweird.f32 %v4575_v17  ;;  %4578 = vpow2.f32 %v3380_v28  ;;  %vm2630_vm9 = vmor %vm2628_vm7, %vm2629_vm5 }
 0x55c   :  { %v2625_v22 = vsub.f32 1.0, %v2624_v4  ;;  %v2536_v5 = vpop.xlane.xlu0 %2535  ;;  %v1940_v48 = vsel %vm7032_vm3, %v4569_v40, %v1936_v44  ;;  %v1432_v19 = vpop.f32.mrf.mxu0  ;;  %v2556_v40 = vsub.f32 %v6587_v55, %v6972_v60  ;;  %v2635_v30 = vor.u32 1.1754944e-38, %v2634_v10  ;;  %vm1349_vm10 = vmor %vm1347_vm8, %vm1348_vm6 }
 0x55d   :  { %v1344_v2 = vsub.f32 1.0, %v1343_v58  ;;  %v2555_v15 = vsub.f32 %v6618_v46, %v2536_v5  ;;  %v1945_v33 = vsel %vm1942_vm4, %v1944_v42, %v1940_v48  ;;  %v1450_v32 = vmul.f32 %v1432_v19, %v1369_v24  ;;  %v7058_v55 = vpop.f32.mrf.mxu2 }
 0x55e   :  { %v2626_v53 = vmul.f32 %v4573_v62, %v2625_v22  ;;  %v7046_v21 = vmul.f32 %v6957_v20, %v1945_v33  ;;  %v1849_v28 = vmul.f32 %v7024_v57, %v6761_v18  ;;  %8044 = vst [vmem:[#allocation55_spill] sm:$0xff] %v7058_v55  ;;  %v1354_v60 = vor.u32 1.1754944e-38, %v1353_v0 }
 0x55f   :  { %v4577_v52 = vpop.eup %4576  ;;  %v1345_v51 = vmul.f32 %v4575_v17, %v1344_v2  ;;  %v2583_v31 = vmul.f32 1.442695, %v2555_v15  ;;  %1466 = vst.msk [vmem:[#allocation3 + $0xf8] sm:$0xff] %vm904_vm2, %v1450_v32  ;;  %vm1352_vm12 = vcmp.eq.f32.partialorder %v1351_v8, 8.507059e+37  ;;  %v3382_v44 = vmul.f32 1.442695, %v3356_v3 }
 0x560   :  { %2213 = vrot.lane.b32.xlu2 %v2177_v23, %s4717_s9  ;;  %3410 = vadd.xlane.f32.xlu1 %v4577_v52  ;;  %v2627_v46 = vadd.f32 %v4573_v62, %v2626_v53  ;;  %v2585_v39 = vmul.f32 1.442695, %v2556_v40  ;;  %v1850_v24 = vsub.f32 1.0, %v1849_v28  ;;  %v2587_v48 = vmul.f32 1.442695, %v2557_v34 }
 0x561   :  { %v1346_v20 = vadd.f32 %v4575_v17, %v1345_v51  ;;  %4580 = vpow2.f32 %v2583_v31  ;;  %3754 = vmatmul.f32.gmra.mxu2 %v4577_v52  ;;  %v1859_v15 = vand.u32 2147483648, %v6761_v18  ;;  %v1857_v19 = vand.u32 2147483647, %v6761_v18 }
 0x562   :  { %v2631_v23 = vsel %vm2630_vm9, %v4573_v62, %v2627_v46  ;;  %v4579_v62 = vpop.eup %4578  ;;  %v7102_v31 = vpop.xlane.xlu2 %2597 }
 0x563   :  { %v1350_v45 = vsel %vm1349_vm10, %v4575_v17, %v1346_v20  ;;  %v7061_v49 = vpop.xlane.xlu1 %2595  ;;  %v2636_v41 = vsel %vm2633_vm11, %v2635_v30, %v2631_v23  ;;  %v1860_v8 = vor.u32 1.1754944e-38, %v1859_v15  ;;  %vm1858_vm1 = vcmp.eq.f32.partialorder %v1857_v19, 8.507059e+37 }
 0x564   :  { %v1355_v4 = vsel %vm1352_vm12, %v1354_v60, %v1350_v45  ;;  %v7066_v63 = vpop.xlane.xlu0 %1806  ;;  %v2928_v58 = vpop.f32.mrf.mxu0  ;;  %vm2656_vm14 = vweird.f32 %v7061_v49 }
 0x565   :  { %v1449_v42 = vmul.f32 %v7016_v56, %v1355_v4  ;;  %4582 = vrcp.f32 %v7066_v63  ;;  %v2976_v17 = vmul.f32 %v2928_v58, %v2636_v41  ;;  %v1851_v56 = vmul.f32 %v7024_v57, %v1850_v24  ;;  %v7083_v38 = vpop.f32.mrf.mxu2 }
 0x566   :  { %4584 = vpow2.f32 %v3382_v44  ;;  %8045 = vst [vmem:[#allocation60_spill] sm:$0xff] %v7083_v38  ;;  %v1955_v53 = vand.u32 2147483647, %v7066_v63  ;;  %v1957_v18 = vand.u32 2147483648, %v7066_v63  ;;  %vm1951_vm4 = vweird.f32 %v7066_v63 }
 0x567   :  { %v7070_v22 = vpop.eup %4580  ;;  %1465 = vst.msk [vmem:[#allocation3 + $0xe8] sm:$0xff] %vm904_vm2, %v1449_v42  ;;  %3398 = vadd.xlane.f32.xlu0 %v6722_v29  ;;  %4586 = vpow2.f32 %v2585_v39  ;;  %v1852_v11 = vadd.f32 %v7024_v57, %v1851_v56 }
 0x568   :  { %3412 = vadd.xlane.f32.xlu1 %v4579_v62  ;;  %2963 = vmatmul.f32.gmra.mxu0 %v7070_v22  ;;  %vm7113_vm5 = vcmp.eq.f32.partialorder %v1955_v53, 8.507059e+37  ;;  %v1958_v39 = vor.u32 1.1754944e-38, %v1957_v18 }
 0x569   :  { %3757 = vmatmul.f32.gmra.mxu2 %v4579_v62  ;;  %3008 = vrot.lane.b32.xlu2 %v2976_v17, %s4719_s12  ;;  %v1856_v52 = vsel %vm7094_vm15, %v7024_v57, %v1852_v11  ;;  %v3358_v57 = vsub.f32 %v6614_v26, %v7037_v35 }
 0x56a   :  { %v1861_v60 = vsel %vm1858_vm1, %v1860_v8, %v1856_v52 }
 0x56b   :  { %v4583_v3 = vpop.eup %4582  ;;  %v7081_v5 = vpop.xlane.xlu1 %3344  ;;  %v2175_v35 = vmul.f32 %v6729_v61, %v1861_v60  ;;  %v3386_v24 = vmul.f32 1.442695, %v3358_v57 }
 0x56c   :  { %v1947_v29 = vmul.f32 %v4583_v3, %v7066_v63  ;;  %v1141_v10 = vpop.xlane.xlu0 %1140  ;;  %v4585_v2 = vpop.eup %4584  ;;  %vm1952_vm3 = vweird.f32 %v4583_v3 }
 0x56d   :  { %4588 = vrcp.f32 %v1141_v10  ;;  %v7088_v0 = vpop.eup %4586  ;;  %v7108_v23 = vpop.f32.mrf.mxu2  ;;  %vm1953_vm6 = vmor %vm1951_vm4, %vm1952_vm3  ;;  %v1339_v42 = vand.u32 2147483648, %v1141_v10  ;;  %vm1333_vm8 = vweird.f32 %v1141_v10 }
 0x56e   :  { %v1948_v16 = vsub.f32 1.0, %v1947_v29  ;;  %4590 = vpow2.f32 %v2587_v48  ;;  %8048 = vst [vmem:[#allocation18_spill] sm:$0xff] %v7108_v23  ;;  %v7117_v44 = vpop.f32.mrf.mxu0 }
 0x56f   :  { %v1340_v56 = vor.u32 1.1754944e-38, %v1339_v42 }
 0x570   :  { %v1949_v33 = vmul.f32 %v4583_v3, %v1948_v16  ;;  %3414 = vadd.xlane.f32.xlu1 %v4585_v2  ;;  %2966 = vmatmul.f32.gmra.mxu0 %v7088_v0 }
 0x571   :  { %3760 = vmatmul.f32.gmra.mxu2 %v4585_v2 }
 0x572   :  { %v1950_v40 = vadd.f32 %v4583_v3, %v1949_v33 }
 0x573   :  { %v4589_v51 = vpop.eup %4588  ;;  %v7105_v30 = vpop.xlane.xlu1 %3394 }
 0x574   :  { %v1329_v46 = vmul.f32 %v4589_v51, %v1141_v10  ;;  %v3337_v20 = vpop.xlane.xlu0 %3336  ;;  %v7119_v4 = vpop.eup %4590  ;;  %vm1334_vm7 = vweird.f32 %v4589_v51  ;;  %4592 = vrcp.f32 %v7105_v30  ;;  %v1954_v26 = vsel %vm1953_vm6, %v4583_v3, %v1950_v40 }
 0x575   :  { %v3357_v28 = vsub.f32 %v6672_v37, %v3337_v20  ;;  %v1337_v37 = vand.u32 2147483647, %v1141_v10  ;;  %v1959_v63 = vsel %vm7113_vm5, %v1958_v39, %v1954_v26  ;;  %vm1335_vm9 = vmor %vm1333_vm8, %vm1334_vm7  ;;  %v7130_v3 = vpop.xlane.xlu2 %3396  ;;  %v7137_v15 = vpop.f32.mrf.mxu2  ;;  %vm3431_vm11 = vweird.f32 %v7105_v30 }
 0x576   :  { %v1330_v41 = vsub.f32 1.0, %v1329_v46  ;;  %v7127_v34 = vmul.f32 %v6991_v50, %v1959_v63  ;;  %8051 = vst [vmem:[#allocation26_spill] sm:$0xff] %v7137_v15  ;;  %v7140_v19 = vpop.f32.mrf.mxu0  ;;  %v8054_v63 = vld [vmem:[#allocation62_spill] sm:$0xff]  ;;  %vm3445_vm7 = vweird.f32 %v7130_v3 }
 0x577   :  { %v3384_v58 = vmul.f32 1.442695, %v3357_v28  ;;  %vm1338_vm10 = vcmp.eq.f32.partialorder %v1337_v37, 8.507059e+37 }
 0x578   :  { %v1331_v62 = vmul.f32 %v4589_v51, %v1330_v41  ;;  %2969 = vmatmul.f32.gmra.mxu0 %v7119_v4 }
 0x579   :  { %4594 = vpow2.f32 %v3384_v58 }
 0x57a   :  { %v1332_v17 = vadd.f32 %v4589_v51, %v1331_v62  ;;  %v7133_v11 = vpop.eup %4592  ;;  %4596 = vpow2.f32 %v3386_v24  ;;  %v3437_v62 = vand.u32 2147483648, %v7105_v30  ;;  %v3361_v24 = vsub.f32 %v8054_v63, %v7081_v5 }
 0x57b   :  { %2209 = vrot.lane.b32.xlu0 %v2175_v35, %s4717_s9  ;;  %4598 = vrcp.f32 %v7061_v49 }
 0x57c   :  { %v2542_v29 = vpop.xlane.xlu0 %2541  ;;  %v1336_v48 = vsel %vm1335_vm9, %v4589_v51, %v1332_v17  ;;  %4600 = vrcp.f32 %v7130_v3  ;;  %v3435_v17 = vand.u32 2147483647, %v7105_v30 }
 0x57d   :  { %v2558_v61 = vsub.f32 %v6726_v36, %v2542_v29  ;;  %v1341_v2 = vsel %vm1338_vm10, %v1340_v56, %v1336_v48  ;;  %v8052_v36 = vld [vmem:[#allocation46_spill] sm:$0xff]  ;;  %v7162_v28 = vpop.f32.mrf.mxu2 }
 0x57e   :  { %v1448_v10 = vmul.f32 %v6979_v9, %v1341_v2  ;;  %v3359_v33 = vsub.f32 %v8052_v36, %v7077_v12  ;;  %v3427_v9 = vmul.f32 %v7133_v11, %v7105_v30  ;;  %8053 = vst [vmem:[#allocation47_spill] sm:$0xff] %v7162_v28  ;;  %v7165_v60 = vpop.f32.mrf.mxu0  ;;  %vm3436_vm1 = vcmp.eq.f32.partialorder %v3435_v17, 8.507059e+37 }
 0x57f   :  { %v4595_v16 = vpop.eup %4594  ;;  %v2589_v50 = vmul.f32 1.442695, %v2558_v61 }
 0x580   :  { %3416 = vadd.xlane.f32.xlu1 %v4595_v16  ;;  %3763 = vmatmul.f32.gmra.mxu2 %v4595_v16  ;;  %1464 = vst.msk [vmem:[#allocation3 + $0xd8] sm:$0xff] %vm904_vm2, %v1448_v10  ;;  %v7147_v32 = vpop.eup %4596  ;;  %v3388_v51 = vmul.f32 1.442695, %v3359_v33  ;;  %v3428_v8 = vsub.f32 1.0, %v3427_v9  ;;  %vm3432_vm2 = vweird.f32 %v7133_v11  ;;  %v3438_v16 = vor.u32 1.1754944e-38, %v3437_v62 }
 0x581   :  { %4602 = vpow2.f32 %v2589_v50  ;;  %v7149_v52 = vpop.eup %4598  ;;  %vm7179_vm12 = vmor %vm3431_vm11, %vm3432_vm2  ;;  %v2660_v9 = vand.u32 2147483647, %v7061_v49 }
 0x582   :  { %v7151_v18 = vpop.eup %4600  ;;  %v2652_v46 = vmul.f32 %v7149_v52, %v7061_v49  ;;  %v3429_v20 = vmul.f32 %v7133_v11, %v3428_v8  ;;  %vm2657_vm3 = vweird.f32 %v7149_v52 }
 0x583   :  { %v3441_v12 = vmul.f32 %v7151_v18, %v7130_v3  ;;  %vm3446_vm5 = vweird.f32 %v7151_v18  ;;  %vm7211_vm8 = vmor %vm2656_vm14, %vm2657_vm3  ;;  %vm2661_vm10 = vcmp.eq.f32.partialorder %v2660_v9, 8.507059e+37 }
 0x584   :  { %v2594_v53 = vpop.xlane.xlu0 %2593  ;;  %v2653_v45 = vsub.f32 1.0, %v2652_v46  ;;  %v3430_v42 = vadd.f32 %v7133_v11, %v3429_v20  ;;  %vm3447_vm9 = vmor %vm3445_vm7, %vm3446_vm5 }
 0x585   :  { %4604 = vrcp.f32 %v2594_v53  ;;  %v3442_v37 = vsub.f32 1.0, %v3441_v12  ;;  %v2648_v2 = vand.u32 2147483648, %v2594_v53  ;;  %v2646_v10 = vand.u32 2147483647, %v2594_v53  ;;  %v3731_v50 = vpop.f32.mrf.mxu2 }
 0x586   :  { %4606 = vpow2.f32 %v3388_v51  ;;  %v3434_v5 = vsel %vm7179_vm12, %v7133_v11, %v3430_v42  ;;  %vm2642_vm15 = vweird.f32 %v2594_v53  ;;  %v3392_v51 = vmul.f32 1.442695, %v3361_v24  ;;  %v7197_v12 = vpop.f32.mrf.mxu0 }
 0x587   :  { %v7153_v40 = vpop.eup %4602  ;;  %4608 = vrcp.f32 %v7102_v31  ;;  %v3443_v30 = vmul.f32 %v7151_v18, %v3442_v37  ;;  %v3439_v8 = vsel %vm3436_vm1, %v3438_v16, %v3434_v5  ;;  %v2649_v46 = vor.u32 1.1754944e-38, %v2648_v2  ;;  %v8059_v16 = vld [vmem:[#allocation72_spill] sm:$0xff] }
 0x588   :  { %2972 = vmatmul.f32.gmra.mxu0 %v7153_v40  ;;  %3766 = vmatmul.f32.gmra.mxu2 %v7147_v32  ;;  %vm2647_vm6 = vcmp.eq.f32.partialorder %v2646_v10, 8.507059e+37  ;;  %v3779_v62 = vmul.f32 %v3731_v50, %v3439_v8  ;;  %v2676_v50 = vand.u32 2147483648, %v7102_v31  ;;  %vm2670_vm12 = vweird.f32 %v7102_v31 }
 0x589   :  { %vm1867_vm3 = vweird.f32 %v8059_v16 }
 0x58a   :  { %v2677_v9 = vor.u32 1.1754944e-38, %v2676_v50 }
 0x58b   :  { %v4605_v57 = vpop.eup %4604 }
 0x58c   :  { %v2638_v41 = vmul.f32 %v4605_v57, %v2594_v53  ;;  %v3343_v39 = vpop.xlane.xlu0 %3342  ;;  %v7171_v35 = vpop.eup %4606  ;;  %vm2643_vm13 = vweird.f32 %v4605_v57 }
 0x58d   :  { %v3360_v58 = vsub.f32 %v6795_v7, %v3343_v39  ;;  %v7177_v29 = vpop.eup %4608  ;;  %v2654_v7 = vmul.f32 %v7149_v52, %v2653_v45  ;;  %vm2644_vm4 = vmor %vm2642_vm15, %vm2643_vm13  ;;  %v3444_v45 = vadd.f32 %v7151_v18, %v3443_v30  ;;  %v3451_v39 = vand.u32 2147483648, %v7130_v3 }
 0x58e   :  { %v2639_v26 = vsub.f32 1.0, %v2638_v41  ;;  %v2666_v33 = vmul.f32 %v7177_v29, %v7102_v31  ;;  %v2662_v41 = vand.u32 2147483648, %v7061_v49  ;;  %v7227_v2 = vpop.f32.mrf.mxu0  ;;  %vm2671_vm11 = vweird.f32 %v7177_v29 }
 0x58f   :  { %v3390_v56 = vmul.f32 1.442695, %v3360_v58  ;;  %v2655_v53 = vadd.f32 %v7149_v52, %v2654_v7  ;;  %v3448_v17 = vsel %vm3447_vm9, %v7151_v18, %v3444_v45  ;;  %vm2672_vm13 = vmor %vm2670_vm12, %vm2671_vm11  ;;  %vm2253_vm15 = vcmask 261248  }
 0x590   :  { %v2640_v61 = vmul.f32 %v4605_v57, %v2639_v26  ;;  %3769 = vmatmul.f32.gmra.mxu2 %v7171_v35  ;;  %v2667_v58 = vsub.f32 1.0, %v2666_v33  ;;  %v3449_v26 = vand.u32 2147483647, %v7130_v3  ;;  %v2663_v49 = vor.u32 1.1754944e-38, %v2662_v41  ;;  %v8060_v41 = vld [vmem:[#allocation7_spill] sm:$0xff] }
 0x591   :  { %4610 = vpow2.f32 %v3390_v56  ;;  %v2659_v24 = vsel %vm7211_vm8, %v7149_v52, %v2655_v53  ;;  %v3452_v56 = vor.u32 1.1754944e-38, %v3451_v39  ;;  %vm3056_vm8 = vcmask 392448  }
 0x592   :  { %v2641_v36 = vadd.f32 %v4605_v57, %v2640_v61  ;;  %4612 = vpow2.f32 %v3392_v51  ;;  %vm3450_vm2 = vcmp.eq.f32.partialorder %v3449_v26, 8.507059e+37  ;;  %v2664_v48 = vsel %vm2661_vm10, %v2663_v49, %v2659_v24  ;;  %v3734_v61 = vpop.f32.mrf.mxu2  ;;  %v7264_v26 = vpop.xlane.xlu1 %2601 }
 0x593   :  { %v7195_v11 = vpop.xlane.xlu2 %2603  ;;  %v3453_v7 = vsel %vm3450_vm2, %v3452_v56, %v3448_v17  ;;  %v2978_v18 = vmul.f32 %v7140_v19, %v2664_v48  ;;  %4614 = vrcp.f32 %v8059_v16 }
 0x594   :  { %v2645_v20 = vsel %vm2644_vm4, %v4605_v57, %v2641_v36  ;;  %v3780_v5 = vmul.f32 %v3734_v61, %v3453_v7  ;;  %v7234_v10 = vpop.xlane.xlu0 %2599  ;;  %v2674_v36 = vand.u32 2147483647, %v7102_v31  ;;  %v1871_v57 = vand.u32 2147483647, %v8059_v16 }
 0x595   :  { %v2650_v37 = vsel %vm2647_vm6, %v2649_v46, %v2645_v20 }
 0x596   :  { %v2977_v63 = vmul.f32 %v7117_v44, %v2650_v37  ;;  %v2668_v44 = vmul.f32 %v7177_v29, %v2667_v58  ;;  %vm2675_vm14 = vcmp.eq.f32.partialorder %v2674_v36, 8.507059e+37  ;;  %vm1872_vm5 = vcmp.eq.f32.partialorder %v1871_v57, 8.507059e+37 }
 0x597   :  { %v7205_v42 = vpop.eup %4610 }
 0x598   :  { %3772 = vmatmul.f32.gmra.mxu2 %v7205_v42  ;;  %3010 = vrot.lane.b32.xlu2 %v2977_v63, %s4719_s12  ;;  %v7229_v52 = vpop.eup %4612  ;;  %v2669_v30 = vadd.f32 %v7177_v29, %v2668_v44 }
 0x599   :  { %3811 = vrot.lane.b32.xlu1 %v3779_v62, %s4718_s10  ;;  %v4615_v51 = vpop.eup %4614  ;;  %v1873_v62 = vand.u32 2147483648, %v8059_v16 }
 0x59a   :  { %v2673_v19 = vsel %vm2672_vm13, %v7177_v29, %v2669_v30  ;;  %v1863_v53 = vmul.f32 %v4615_v51, %v8059_v16  ;;  %vm1868_vm1 = vweird.f32 %v4615_v51 }
 0x59b   :  { %v7225_v3 = vpop.xlane.xlu2 %2605  ;;  %v2678_v8 = vsel %vm2675_vm14, %v2677_v9, %v2673_v19  ;;  %vm1869_vm4 = vmor %vm1867_vm3, %vm1868_vm1  ;;  %v1874_v24 = vor.u32 1.1754944e-38, %v1873_v62  ;;  %v7269_v48 = vpop.xlane.xlu1 %3400  ;;  %vm2698_vm3 = vweird.f32 %v7264_v26 }
 0x59c   :  { %v2979_v31 = vmul.f32 %v7165_v60, %v2678_v8  ;;  %v1864_v45 = vsub.f32 1.0, %v1863_v53 }
 0x59d   :  { %v7247_v46 = vpop.f32.mrf.mxu0 }
 0x59e   :  { %v1865_v37 = vmul.f32 %v4615_v51, %v1864_v45 }
 0x5a0   :  { %3775 = vmatmul.f32.gmra.mxu2 %v7229_v52  ;;  %3012 = vrot.lane.b32.xlu2 %v2978_v18, %s4719_s12  ;;  %v1866_v60 = vadd.f32 %v4615_v51, %v1865_v37  ;;  %v7284_v37 = vpop.f32.mrf.mxu2 }
 0x5a1   :  { %3813 = vrot.lane.b32.xlu1 %v3780_v5, %s4718_s10 }
 0x5a2   :  { %v1870_v63 = vsel %vm1869_vm4, %v4615_v51, %v1866_v60 }
 0x5a3   :  { %v7244_v33 = vpop.xlane.xlu2 %3402  ;;  %v1875_v56 = vsel %vm1872_vm5, %v1874_v24, %v1870_v63  ;;  %v7276_v9 = vpop.xlane.xlu1 %1810 }
 0x5a4   :  { %v2176_v44 = vmul.f32 %v6776_v47, %v1875_v56  ;;  %vm3487_vm11 = vweird.f32 %v7244_v33 }
 0x5a5   :  { %3404 = vadd.xlane.f32.xlu0 %v6929_v14 }
 0x5a6   :  { %v7256_v39 = vpop.f32.mrf.mxu0 }
 0x5a7   :  { %v2206_v20 = vpop.permute.xlu0 %2205 }
 0x5a8   :  { %2254 = vst.msk [vmem:[#allocation3 + $0x8] sm:$0xff] %vm2253_vm15, %v2206_v20  ;;  %3014 = vrot.lane.b32.xlu2 %v2979_v31, %s4719_s12 }
 0x5ab   :  { %v7253_v29 = vpop.xlane.xlu2 %2607  ;;  %v7287_v60 = vpop.xlane.xlu1 %3406 }
 0x5ad   :  { %1808 = vadd.xlane.f32.xlu0 %v8060_v41 }
 0x5ae   :  { %v7266_v17 = vpop.f32.mrf.mxu0 }
 0x5af   :  { %v2208_v14 = vpop.permute.xlu0 %2207 }
 0x5b0   :  { %2255 = vst.msk [vmem:[#allocation3 + $0x18] sm:$0xff] %vm2253_vm15, %v2208_v14  ;;  %v8061_v14 = vld [vmem:[#allocation10_spill] sm:$0xff] }
 0x5b3   :  { %v7259_v58 = vpop.xlane.xlu2 %2609 }
 0x5bb   :  { %v2612_v49 = vpop.xlane.xlu2 %2611 }
 0x5bc   :  { %4616 = vrcp.f32 %v2612_v49  ;;  %v2774_v16 = vand.u32 2147483648, %v2612_v49  ;;  %v2772_v36 = vand.u32 2147483647, %v2612_v49  ;;  %vm2768_vm7 = vweird.f32 %v2612_v49 }
 0x5bd   :  { %4618 = vrcp.f32 %v7244_v33 }
 0x5be   :  { %v7272_v61 = vpop.f32.mrf.mxu0  ;;  %v2775_v47 = vor.u32 1.1754944e-38, %v2774_v16  ;;  %vm2773_vm10 = vcmp.eq.f32.partialorder %v2772_v36, 8.507059e+37  ;;  %4620 = vrcp.f32 %v7264_v26  ;;  %v7303_v16 = vpop.xlane.xlu1 %3408 }
 0x5bf   :  { %4622 = vrcp.f32 %v7234_v10 }
 0x5c0   :  { %4624 = vrcp.f32 %v6805_v59 }
 0x5c1   :  { %2211 = vrot.lane.b32.xlu0 %v2176_v44, %s4717_s9  ;;  %v7296_v44 = vpop.f32.mrf.mxu2 }
 0x5c2   :  { %v4617_v7 = vpop.eup %4616 }
 0x5c3   :  { %v2764_v18 = vmul.f32 %v4617_v7, %v2612_v49  ;;  %v2214_v5 = vpop.permute.xlu2 %2213  ;;  %vm2769_vm6 = vweird.f32 %v4617_v7  ;;  %v4619_v45 = vpop.eup %4618 }
 0x5c4   :  { %2258 = vst.msk [vmem:[#allocation3 + $0x48] sm:$0xff] %vm2253_vm15, %v2214_v5  ;;  %vm2770_vm9 = vmor %vm2768_vm7, %vm2769_vm6  ;;  %v3483_v41 = vmul.f32 %v4619_v45, %v7244_v33  ;;  %v7289_v62 = vpop.eup %4620  ;;  %vm3488_vm2 = vweird.f32 %v4619_v45 }
 0x5c5   :  { %v2765_v30 = vsub.f32 1.0, %v2764_v18  ;;  %v2694_v63 = vmul.f32 %v7289_v62, %v7264_v26  ;;  %v7294_v56 = vpop.eup %4622  ;;  %vm3489_vm12 = vmor %vm3487_vm11, %vm3488_vm2  ;;  %vm2699_vm14 = vweird.f32 %v7289_v62  ;;  %vm2684_vm2 = vweird.f32 %v7234_v10 }
 0x5c6   :  { %v2958_v20 = vpop.f32.mrf.mxu0  ;;  %v3484_v57 = vsub.f32 1.0, %v3483_v41  ;;  %v2680_v5 = vmul.f32 %v7294_v56, %v7234_v10  ;;  %vm7335_vm4 = vmor %vm2698_vm3, %vm2699_vm14 }
 0x5c7   :  { %v2766_v50 = vmul.f32 %v4617_v7, %v2765_v30  ;;  %v2695_v18 = vsub.f32 1.0, %v2694_v63  ;;  %v2702_v63 = vand.u32 2147483647, %v7264_v26 }
 0x5c8   :  { %v3485_v24 = vmul.f32 %v4619_v45, %v3484_v57 }
 0x5c9   :  { %v2767_v19 = vadd.f32 %v4617_v7, %v2766_v50  ;;  %v3493_v50 = vand.u32 2147483648, %v7244_v33  ;;  %vm7345_vm6 = vcmp.eq.f32.partialorder %v2702_v63, 8.507059e+37 }
 0x5ca   :  { %v3486_v30 = vadd.f32 %v4619_v45, %v3485_v24 }
 0x5cb   :  { %v2771_v51 = vsel %vm2770_vm9, %v4617_v7, %v2767_v19  ;;  %v3009_v8 = vpop.permute.xlu2 %3008  ;;  %v7298_v7 = vpop.eup %4624  ;;  %v3491_v19 = vand.u32 2147483647, %v7244_v33  ;;  %v3494_v41 = vor.u32 1.1754944e-38, %v3493_v50  ;;  %vm2685_vm9 = vweird.f32 %v7294_v56 }
 0x5cc   :  { %v2776_v31 = vsel %vm2773_vm10, %v2775_v47, %v2771_v51  ;;  %3057 = vst.msk [vmem:[#allocation3 + $0x8] sm:$0xff] %vm3056_vm8, %v3009_v8  ;;  %v1905_v36 = vmul.f32 %v7298_v7, %v6805_v59  ;;  %v2696_v51 = vmul.f32 %v7289_v62, %v2695_v18  ;;  %v2681_v8 = vsub.f32 1.0, %v2680_v5  ;;  %v3743_v18 = vpop.f32.mrf.mxu2  ;;  %v3898_v5 = vld [vmem:[%s7838_s5 + $0x30] sm:$0xff]  ;;  %vm7370_vm11 = vmor %vm2684_vm2, %vm2685_vm9 }
 0x5cd   :  { %v7279_v53 = vmul.f32 %v2958_v20, %v2776_v31  ;;  %v3490_v31 = vsel %vm3489_vm12, %v4619_v45, %v3486_v30  ;;  %vm3492_vm13 = vcmp.eq.f32.partialorder %v3491_v19, 8.507059e+37  ;;  %v3899_v45 = vld [vmem:[%s7838_s5 + $0x38] sm:$0xff]  ;;  %v2704_v19 = vand.u32 2147483648, %v7264_v26 }
 0x5ce   :  { %v1906_v57 = vsub.f32 1.0, %v1905_v36  ;;  %v2697_v28 = vadd.f32 %v7289_v62, %v2696_v51  ;;  %v3495_v33 = vsel %vm3492_vm13, %v3494_v41, %v3490_v31  ;;  %v2682_v30 = vmul.f32 %v7294_v56, %v2681_v8  ;;  %3960 = vmatpush.msra.mxu3 %v3899_v45 }
 0x5cf   :  { %v3783_v41 = vmul.f32 %v3743_v18, %v3495_v33  ;;  %v2688_v18 = vand.u32 2147483647, %v7234_v10  ;;  %vm1910_vm12 = vweird.f32 %v7298_v7  ;;  %vm1909_vm13 = vweird.f32 %v6805_v59 }
 0x5d0   :  { %3961 = vmatpush.msra.mxu3 %v3898_v5  ;;  %v1907_v45 = vmul.f32 %v7298_v7, %v1906_v57  ;;  %v2701_v23 = vsel %vm7335_vm4, %v7289_v62, %v2697_v28  ;;  %v2683_v33 = vadd.f32 %v7294_v56, %v2682_v30  ;;  %v2705_v28 = vor.u32 1.1754944e-38, %v2704_v19 }
 0x5d1   :  { %1812 = vadd.xlane.f32.xlu2 %v8061_v14  ;;  %v2690_v62 = vand.u32 2147483648, %v7234_v10  ;;  %v3894_v10 = vld [vmem:[%s7838_s5 + $0x10] sm:$0xff]  ;;  %vm2689_vm14 = vcmp.eq.f32.partialorder %v2688_v18, 8.507059e+37 }
 0x5d2   :  { %v2687_v38 = vsel %vm7370_vm11, %v7294_v56, %v2683_v33 }
 0x5d3   :  { %v7328_v31 = vpop.xlane.xlu1 %3410 }
 0x5da   :  { %v3399_v49 = vpop.xlane.xlu0 %3398 }
 0x5db   :  { %4626 = vrcp.f32 %v3399_v49  ;;  %v3465_v15 = vand.u32 2147483648, %v3399_v49  ;;  %v3463_v36 = vand.u32 2147483647, %v3399_v49  ;;  %vm3459_vm5 = vweird.f32 %v3399_v49 }
 0x5dc   :  { %4628 = vrcp.f32 %v7269_v48 }
 0x5dd   :  { %4630 = vrcp.f32 %v7287_v60  ;;  %v3466_v55 = vor.u32 1.1754944e-38, %v3465_v15  ;;  %vm3464_vm10 = vcmp.eq.f32.partialorder %v3463_v36, 8.507059e+37  ;;  %v2691_v36 = vor.u32 1.1754944e-38, %v2690_v62 }
 0x5de   :  { %v3479_v62 = vand.u32 2147483648, %v7269_v48  ;;  %4632 = vrcp.f32 %v6882_v43 }
 0x5df   :  { %4634 = vrcp.f32 %v7225_v3 }
 0x5e1   :  { %v4627_v47 = vpop.eup %4626 }
 0x5e2   :  { %v3455_v20 = vmul.f32 %v4627_v47, %v3399_v49  ;;  %v7312_v14 = vpop.eup %4628  ;;  %vm3460_vm1 = vweird.f32 %v4627_v47  ;;  %v3896_v49 = vld [vmem:[%s7838_s5 + $0x20] sm:$0xff] }
 0x5e3   :  { %v3469_v51 = vmul.f32 %v7312_v14, %v7269_v48  ;;  %v7339_v26 = vpop.eup %4630  ;;  %vm3461_vm7 = vmor %vm3459_vm5, %vm3460_vm1  ;;  %vm3474_vm3 = vweird.f32 %v7312_v14  ;;  %vm3473_vm5 = vweird.f32 %v7269_v48 }
 0x5e4   :  { %v3456_v24 = vsub.f32 1.0, %v3455_v20  ;;  %v3897_v20 = vld [vmem:[%s7838_s5 + $0x28] sm:$0xff]  ;;  %v3511_v5 = vmul.f32 %v7339_v26, %v7287_v60  ;;  %vm7394_vm1 = vmor %vm1909_vm13, %vm1910_vm12  ;;  %vm3859_vm12 = vcmask 523648  }
 0x5e5   :  { %3962 = vmatpush.msra.mxu3 %v3897_v20  ;;  %v3470_v63 = vsub.f32 1.0, %v3469_v51  ;;  %v3893_v51 = vld [vmem:[%s7838_s5 + $0x8] sm:$0xff]  ;;  %v1913_v20 = vand.u32 2147483647, %v6805_v59 }
 0x5e6   :  { %v3457_v50 = vmul.f32 %v4627_v47, %v3456_v24 }
 0x5e7   :  { %3963 = vmatpush.msra.mxu3 %v3896_v49  ;;  %v3471_v19 = vmul.f32 %v7312_v14, %v3470_v63  ;;  %v3892_v49 = vld [vmem:[%s7838_s5] sm:$0xff]  ;;  %vm1914_vm4 = vcmp.eq.f32.partialorder %v1913_v20, 8.507059e+37 }
 0x5e8   :  { %v3458_v24 = vadd.f32 %v4627_v47, %v3457_v50  ;;  %v2706_v50 = vsel %vm7345_vm6, %v2705_v28, %v2701_v23  ;;  %v1915_v23 = vand.u32 2147483648, %v6805_v59  ;;  %vm3475_vm6 = vmor %vm3473_vm5, %vm3474_vm3  ;;  %vm2726_vm5 = vweird.f32 %v7225_v3 }
 0x5e9   :  { %3819 = vrot.lane.b32.xlu2 %v3783_v41, %s4718_s10  ;;  %v2981_v8 = vmul.f32 %v7227_v2, %v2706_v50  ;;  %v3512_v41 = vsub.f32 1.0, %v3511_v5  ;;  %v3472_v33 = vadd.f32 %v7312_v14, %v3471_v19 }
 0x5ea   :  { %v3462_v57 = vsel %vm3461_vm7, %v4627_v47, %v3458_v24  ;;  %v3895_v47 = vld [vmem:[%s7838_s5 + $0x18] sm:$0xff]  ;;  %v7398_v24 = vpop.xlane.xlu1 %3412  ;;  %v1916_v2 = vor.u32 1.1754944e-38, %v1915_v23  ;;  %vm3516_vm7 = vweird.f32 %v7339_v26 }
 0x5eb   :  { %2613 = vadd.xlane.f32.xlu0 %v6994_v54  ;;  %v3467_v15 = vsel %vm3464_vm10, %v3466_v55, %v3462_v57  ;;  %3964 = vmatpush.msra.mxu3 %v3895_v47  ;;  %v7409_v57 = vpop.f32.mrf.mxu2  ;;  %v3513_v63 = vmul.f32 %v7339_v26, %v3512_v41  ;;  %v3476_v5 = vsel %vm3475_vm6, %v7312_v14, %v3472_v33  ;;  %vm3515_vm10 = vweird.f32 %v7287_v60  ;;  %v8071_v33 = vld [vmem:[#allocation13_spill] sm:$0xff] }
 0x5ec   :  { %v3781_v30 = vmul.f32 %v7284_v37, %v3467_v15  ;;  %v1908_v37 = vadd.f32 %v7298_v7, %v1907_v45  ;;  %v2692_v45 = vsel %vm2689_vm14, %v2691_v36, %v2687_v38  ;;  %vm3517_vm2 = vmor %vm3515_vm10, %vm3516_vm7  ;;  %vm1895_vm14 = vweird.f32 %v6882_v43 }
 0x5ed   :  { %v2210_v55 = vpop.permute.xlu0 %2209  ;;  %3965 = vmatpush.msra.mxu3 %v3894_v10  ;;  %v2980_v15 = vmul.f32 %v7197_v12, %v2692_v45  ;;  %v3514_v47 = vadd.f32 %v7339_v26, %v3513_v63  ;;  %v3521_v12 = vand.u32 2147483648, %v7287_v60  ;;  %v8070_v45 = vld [vmem:[#allocation71_spill] sm:$0xff] }
 0x5ee   :  { %2256 = vst.msk [vmem:[#allocation3 + $0x28] sm:$0xff] %vm2253_vm15, %v2210_v55  ;;  %3815 = vrot.lane.b32.xlu1 %v3781_v30, %s4718_s10  ;;  %v1912_v59 = vsel %vm7394_vm1, %v7298_v7, %v1908_v37  ;;  %v3477_v7 = vand.u32 2147483647, %v7269_v48  ;;  %v3480_v30 = vor.u32 1.1754944e-38, %v3479_v62  ;;  %v3519_v48 = vand.u32 2147483647, %v7287_v60 }
 0x5ef   :  { %3966 = vmatpush.msra.mxu3 %v3893_v51  ;;  %v1917_v18 = vsel %vm1914_vm4, %v1916_v2, %v1912_v59  ;;  %v3518_v10 = vsel %vm3517_vm2, %v7339_v26, %v3514_v47  ;;  %v3522_v37 = vor.u32 1.1754944e-38, %v3521_v12 }
 0x5f0   :  { %v2179_v50 = vmul.f32 %v6887_v27, %v1917_v18  ;;  %vm3478_vm9 = vcmp.eq.f32.partialorder %v3477_v7, 8.507059e+37  ;;  %vm3520_vm11 = vcmp.eq.f32.partialorder %v3519_v48, 8.507059e+37 }
 0x5f1   :  { %3018 = vrot.lane.b32.xlu2 %v2981_v8, %s4719_s12  ;;  %3967 = vmatpush.msra.mxu3 %v3892_v49  ;;  %v3481_v54 = vsel %vm3478_vm9, %v3480_v30, %v3476_v5  ;;  %v3523_v23 = vsel %vm3520_vm11, %v3522_v37, %v3518_v10  ;;  %v4633_v8 = vpop.eup %4632  ;;  %v1899_v30 = vand.u32 2147483647, %v6882_v43 }
 0x5f2   :  { %v3011_v28 = vpop.permute.xlu2 %3010  ;;  %v7426_v55 = vpop.xlane.xlu1 %3414  ;;  %v3782_v27 = vmul.f32 %v7296_v44, %v3481_v54  ;;  %v1891_v41 = vmul.f32 %v4633_v8, %v6882_v43  ;;  %vm1896_vm13 = vweird.f32 %v4633_v8 }
 0x5f3   :  { %3058 = vst.msk [vmem:[#allocation3 + $0x18] sm:$0xff] %vm3056_vm8, %v3011_v28  ;;  %v3749_v38 = vpop.f32.mrf.mxu2  ;;  %v4635_v56 = vpop.eup %4634  ;;  %vm1897_vm1 = vmor %vm1895_vm14, %vm1896_vm13  ;;  %vm1900_vm3 = vcmp.eq.f32.partialorder %v1899_v30, 8.507059e+37  ;;  %vm2712_vm13 = vweird.f32 %v7195_v11 }
 0x5f4   :  { %v3785_v36 = vmul.f32 %v3749_v38, %v3523_v23  ;;  %v1892_v49 = vsub.f32 1.0, %v1891_v41  ;;  %vm2727_vm4 = vweird.f32 %v4635_v56  ;;  %v2730_v38 = vand.u32 2147483647, %v7225_v3 }
 0x5f5   :  { %vm2728_vm7 = vmor %vm2726_vm5, %vm2727_vm4  ;;  %v2718_v41 = vand.u32 2147483648, %v7195_v11  ;;  %vm2754_vm5 = vweird.f32 %v7259_v58 }
 0x5f6   :  { %3016 = vrot.lane.b32.xlu1 %v2980_v15, %s4719_s12  ;;  %v1893_v28 = vmul.f32 %v4633_v8, %v1892_v49  ;;  %vm2731_vm11 = vcmp.eq.f32.partialorder %v2730_v38, 8.507059e+37 }
 0x5f8   :  { %v1894_v7 = vadd.f32 %v4633_v8, %v1893_v28 }
 0x5f9   :  { %2217 = vrot.lane.b32.xlu2 %v2179_v50, %s4717_s9 }
 0x5fa   :  { %v3013_v14 = vpop.permute.xlu2 %3012  ;;  %v7433_v60 = vpop.xlane.xlu1 %3416 }
 0x5fb   :  { %3059 = vst.msk [vmem:[#allocation3 + $0x28] sm:$0xff] %vm3056_vm8, %v3013_v14 }
 0x5ff   :  { %3817 = vrot.lane.b32.xlu0 %v3782_v27, %s4718_s10  ;;  %v2732_v27 = vand.u32 2147483648, %v7225_v3 }
 0x601   :  { %3823 = vrot.lane.b32.xlu2 %v3785_v36, %s4718_s10 }
 0x602   :  { %v3015_v12 = vpop.permute.xlu2 %3014 }
 0x60b   :  { %v3812_v19 = vpop.permute.xlu1 %3811 }
 0x60c   :  { %3860 = vst.msk [vmem:[#allocation3 + $0x8] sm:$0xff] %vm3859_vm12, %v3812_v19 }
 0x613   :  { %v3814_v26 = vpop.permute.xlu1 %3813  ;;  %v3876_v51 = vld [vmem:[#allocation3 + $0x8] sm:$0xff] }
 0x614   :  { %3861 = vst.msk [vmem:[#allocation3 + $0x18] sm:$0xff] %vm3859_vm12, %v3814_v26  ;;  %4259 = vmatmul.msk.f32.vlgmr.msra.gmra.mxu3 %vm67_vm0, %v3876_v51 }
 0x618   :  { %v7441_v20 = vpop.xlane.xlu0 %3404 }
 0x619   :  { %4636 = vrcp.f32 %v7441_v20  ;;  %v3507_v36 = vand.u32 2147483648, %v7441_v20  ;;  %vm3501_vm9 = vweird.f32 %v7441_v20  ;;  %v3505_v26 = vand.u32 2147483647, %v7441_v20 }
 0x61a   :  { %4638 = vrcp.f32 %v7195_v11 }
 0x61b   :  { %v3877_v44 = vld [vmem:[#allocation3 + $0x18] sm:$0xff]  ;;  %v3508_v49 = vor.u32 1.1754944e-38, %v3507_v36  ;;  %vm3506_vm14 = vcmp.eq.f32.partialorder %v3505_v26, 8.507059e+37  ;;  %4640 = vrcp.f32 %v7259_v58 }
 0x61c   :  { %4260 = vmatmul.msk.f32.gmra.mxu3 %vm67_vm0, %v3877_v44  ;;  %v2733_v44 = vor.u32 1.1754944e-38, %v2732_v27  ;;  %4642 = vrcp.f32 %v6962_v6 }
 0x61f   :  { %v4637_v59 = vpop.eup %4636 }
 0x620   :  { %2615 = vadd.xlane.f32.xlu1 %v7070_v22  ;;  %v2722_v22 = vmul.f32 %v4635_v56, %v7225_v3  ;;  %v7450_v2 = vpop.xlane.xlu0 %1808  ;;  %v3497_v62 = vmul.f32 %v4637_v59, %v7441_v20  ;;  %v4639_v63 = vpop.eup %4638  ;;  %vm3502_vm6 = vweird.f32 %v4637_v59 }
 0x621   :  { %v2708_v18 = vmul.f32 %v4639_v63, %v7195_v11  ;;  %vm3503_vm10 = vmor %vm3501_vm9, %vm3502_vm6  ;;  %vm2713_vm2 = vweird.f32 %v4639_v63 }
 0x622   :  { %v2723_v15 = vsub.f32 1.0, %v2722_v22  ;;  %v3498_v5 = vsub.f32 1.0, %v3497_v62 }
 0x623   :  { %v2709_v54 = vsub.f32 1.0, %v2708_v18 }
 0x624   :  { %v2724_v47 = vmul.f32 %v4635_v56, %v2723_v15  ;;  %v3499_v48 = vmul.f32 %v4637_v59, %v3498_v5 }
 0x625   :  { %v2710_v37 = vmul.f32 %v4639_v63, %v2709_v54 }
 0x626   :  { %v2725_v10 = vadd.f32 %v4635_v56, %v2724_v47  ;;  %v3500_v23 = vadd.f32 %v4637_v59, %v3499_v48 }
 0x628   :  { %1814 = vadd.xlane.f32.xlu1 %v8070_v45  ;;  %v2729_v19 = vsel %vm2728_vm7, %v4635_v56, %v2725_v10  ;;  %v3504_v3 = vsel %vm3503_vm10, %v4637_v59, %v3500_v23  ;;  %v2716_v56 = vand.u32 2147483647, %v7195_v11  ;;  %v2760_v10 = vand.u32 2147483648, %v7259_v58 }
 0x629   :  { %3418 = vadd.xlane.f32.xlu0 %v7147_v32  ;;  %v1901_v32 = vand.u32 2147483648, %v6882_v43  ;;  %v2734_v45 = vsel %vm2731_vm11, %v2733_v44, %v2729_v19  ;;  %v3509_v20 = vsel %vm3506_vm14, %v3508_v49, %v3504_v3 }
 0x62a   :  { %1816 = vadd.xlane.f32.xlu2 %v8071_v33  ;;  %v2983_v22 = vmul.f32 %v7256_v39, %v2734_v45  ;;  %v2719_v33 = vor.u32 1.1754944e-38, %v2718_v41  ;;  %v3784_v59 = vmul.f32 %v7409_v57, %v3509_v20  ;;  %v2761_v36 = vor.u32 1.1754944e-38, %v2760_v10 }
 0x62b   :  { %v1902_v14 = vor.u32 1.1754944e-38, %v1901_v32  ;;  %v4641_v32 = vpop.eup %4640 }
 0x62c   :  { %v4643_v30 = vpop.eup %4642  ;;  %vm2755_vm4 = vweird.f32 %v4641_v32 }
 0x62d   :  { %v1919_v54 = vmul.f32 %v4643_v30, %v6962_v6  ;;  %vm2756_vm6 = vmor %vm2754_vm5, %vm2755_vm4  ;;  %vm1924_vm9 = vweird.f32 %v4643_v30  ;;  %vm3529_vm5 = vweird.f32 %v7303_v16 }
 0x630   :  { %3420 = vadd.xlane.f32.xlu1 %v7171_v35  ;;  %v1898_v35 = vsel %vm1897_vm1, %v4633_v8, %v1894_v7  ;;  %v2711_v8 = vadd.f32 %v4639_v63, %v2710_v37  ;;  %vm2714_vm1 = vmor %vm2712_vm13, %vm2713_vm2  ;;  %vm1923_vm2 = vweird.f32 %v6962_v6 }
 0x631   :  { %v1903_v43 = vsel %vm1900_vm3, %v1902_v14, %v1898_v35  ;;  %vm2717_vm3 = vcmp.eq.f32.partialorder %v2716_v56, 8.507059e+37  ;;  %v1920_v14 = vsub.f32 1.0, %v1919_v54  ;;  %vm7515_vm11 = vmor %vm1923_vm2, %vm1924_vm9  ;;  %v2746_v54 = vand.u32 2147483648, %v7253_v29 }
 0x632   :  { %v2178_v51 = vmul.f32 %v6836_v25, %v1903_v43  ;;  %v2715_v25 = vsel %vm2714_vm1, %v4639_v63, %v2711_v8  ;;  %v1927_v8 = vand.u32 2147483647, %v6962_v6 }
 0x633   :  { %v2212_v50 = vpop.permute.xlu0 %2211  ;;  %v2720_v28 = vsel %vm2717_vm3, %v2719_v33, %v2715_v25  ;;  %v1921_v37 = vmul.f32 %v4643_v30, %v1920_v14 }
 0x634   :  { %2257 = vst.msk [vmem:[#allocation3 + $0x38] sm:$0xff] %vm2253_vm15, %v2212_v50  ;;  %v2982_v15 = vmul.f32 %v7247_v46, %v2720_v28  ;;  %v2750_v46 = vmul.f32 %v4641_v32, %v7259_v58  ;;  %vm1928_vm1 = vcmp.eq.f32.partialorder %v1927_v8, 8.507059e+37 }
 0x635   :  { %3060 = vst.msk [vmem:[#allocation3 + $0x38] sm:$0xff] %vm3056_vm8, %v3015_v12  ;;  %v1922_v19 = vadd.f32 %v4643_v30, %v1921_v37 }
 0x636   :  { %v2751_v47 = vsub.f32 1.0, %v2750_v46 }
 0x638   :  { %v2752_v48 = vmul.f32 %v4641_v32, %v2751_v47  ;;  %v3752_v47 = vpop.f32.mrf.mxu2 }
 0x63d   :  { %2215 = vrot.lane.b32.xlu0 %v2178_v51, %s4717_s9 }
 0x642   :  { %3022 = vrot.lane.b32.xlu2 %v2983_v22, %s4719_s12 }
 0x644   :  { %v7475_v62 = vpop.xlane.xlu2 %1812 }
 0x645   :  { %3821 = vrot.lane.b32.xlu0 %v3784_v59, %s4718_s10 }
 0x649   :  { %3020 = vrot.lane.b32.xlu1 %v2982_v15, %s4719_s12 }
 0x64c   :  { %v3820_v11 = vpop.permute.xlu2 %3819 }
 0x654   :  { %v7480_v7 = vpop.permute.xlu2 %3018 }
 0x65c   :  { %v2218_v63 = vpop.permute.xlu2 %2217 }
 0x65d   :  { %2260 = vst.msk [vmem:[#allocation3 + $0x68] sm:$0xff] %vm2253_vm15, %v2218_v63  ;;  %v2961_v63 = vpop.f32.mrf.mxu0 }
 0x65e   :  { %v7485_v57 = vpop.xlane.xlu0 %2613 }
 0x65f   :  { %4644 = vrcp.f32 %v7485_v57  ;;  %v2788_v3 = vand.u32 2147483648, %v7485_v57  ;;  %vm2782_vm13 = vweird.f32 %v7485_v57  ;;  %v2786_v56 = vand.u32 2147483647, %v7485_v57 }
 0x660   :  { %v3816_v39 = vpop.permute.xlu1 %3815  ;;  %4646 = vrcp.f32 %v7303_v16 }
 0x661   :  { %3862 = vst.msk [vmem:[#allocation3 + $0x28] sm:$0xff] %vm3859_vm12, %v3816_v39  ;;  %4648 = vrcp.f32 %v7253_v29  ;;  %vm2787_vm3 = vcmp.eq.f32.partialorder %v2786_v56, 8.507059e+37 }
 0x662   :  { %4650 = vrcp.f32 %v7398_v24 }
 0x663   :  { %4652 = vrcp.f32 %v7450_v2 }
 0x665   :  { %v4645_v50 = vpop.eup %4644 }
 0x666   :  { %v2778_v35 = vmul.f32 %v4645_v50, %v7485_v57  ;;  %v7502_v43 = vpop.eup %4646  ;;  %vm2783_vm10 = vweird.f32 %v4645_v50  ;;  %v3535_v57 = vand.u32 2147483648, %v7303_v16 }
 0x667   :  { %v3525_v23 = vmul.f32 %v7502_v43, %v7303_v16  ;;  %v4649_v44 = vpop.eup %4648  ;;  %vm2784_vm14 = vmor %vm2782_vm13, %vm2783_vm10  ;;  %vm3530_vm4 = vweird.f32 %v7502_v43  ;;  %vm2740_vm10 = vweird.f32 %v7253_v29 }
 0x668   :  { %v3017_v18 = vpop.permute.xlu1 %3016  ;;  %v3878_v5 = vld [vmem:[#allocation3 + $0x28] sm:$0xff]  ;;  %v2736_v25 = vmul.f32 %v4649_v44, %v7253_v29  ;;  %vm2741_vm9 = vweird.f32 %v4649_v44 }
 0x669   :  { %3061 = vst.msk [vmem:[#allocation3 + $0x48] sm:$0xff] %vm3056_vm8, %v3017_v18  ;;  %4261 = vmatmul.msk.f32.gmra.mxu3 %vm67_vm0, %v3878_v5  ;;  %v3533_v5 = vand.u32 2147483647, %v7303_v16  ;;  %vm2742_vm2 = vmor %vm2740_vm10, %vm2741_vm9  ;;  %vm1965_vm10 = vweird.f32 %v7450_v2 }
 0x66a   :  { %3864 = vst.msk [vmem:[#allocation3 + $0x48] sm:$0xff] %vm3859_vm12, %v3820_v11  ;;  %v2737_v15 = vsub.f32 1.0, %v2736_v25 }
 0x66b   :  { %3424 = vadd.xlane.f32.xlu2 %v7229_v52  ;;  %v2753_v52 = vadd.f32 %v4641_v32, %v2752_v48  ;;  %v2744_v48 = vand.u32 2147483647, %v7253_v29 }
 0x66f   :  { %2617 = vadd.xlane.f32.xlu0 %v7088_v0  ;;  %v2779_v0 = vsub.f32 1.0, %v2778_v35 }
 0x671   :  { %v3818_v12 = vpop.permute.xlu0 %3817  ;;  %v2780_v38 = vmul.f32 %v4645_v50, %v2779_v0  ;;  %v3880_v41 = vld [vmem:[#allocation3 + $0x48] sm:$0xff]  ;;  %v2747_v0 = vor.u32 1.1754944e-38, %v2746_v54  ;;  %v3577_v54 = vand.u32 2147483648, %v7426_v55 }
 0x672   :  { %3863 = vst.msk [vmem:[#allocation3 + $0x38] sm:$0xff] %vm3859_vm12, %v3818_v12  ;;  %v4651_v12 = vpop.eup %4650 }
 0x673   :  { %2619 = vadd.xlane.f32.xlu1 %v7119_v4  ;;  %v2758_v4 = vand.u32 2147483647, %v7259_v58  ;;  %v1929_v58 = vand.u32 2147483648, %v6962_v6  ;;  %v2781_v51 = vadd.f32 %v4645_v50, %v2780_v38  ;;  %v1926_v6 = vsel %vm7515_vm11, %v4643_v30, %v1922_v19 }
 0x674   :  { %v3536_v30 = vor.u32 1.1754944e-38, %v3535_v57  ;;  %vm2745_vm11 = vcmp.eq.f32.partialorder %v2744_v48, 8.507059e+37  ;;  %v1969_v57 = vand.u32 2147483647, %v7450_v2 }
 0x675   :  { %vm2759_vm7 = vcmp.eq.f32.partialorder %v2758_v4, 8.507059e+37  ;;  %v1930_v20 = vor.u32 1.1754944e-38, %v1929_v58  ;;  %v2785_v22 = vsel %vm2784_vm14, %v4645_v50, %v2781_v51  ;;  %vm3558_vm14 = vweird.f32 %v4651_v12 }
 0x677   :  { %3422 = vadd.xlane.f32.xlu0 %v7205_v42  ;;  %v2757_v42 = vsel %vm2756_vm6, %v4641_v32, %v2753_v52  ;;  %v1931_v59 = vsel %vm1928_vm1, %v1930_v20, %v1926_v6  ;;  %v2738_v32 = vmul.f32 %v4649_v44, %v2737_v15  ;;  %vm3531_vm6 = vmor %vm3529_vm5, %vm3530_vm4  ;;  %v3553_v52 = vmul.f32 %v4651_v12, %v7398_v24 }
 0x678   :  { %v2762_v26 = vsel %vm2759_vm7, %v2761_v36, %v2757_v42  ;;  %v2180_v39 = vmul.f32 %v6932_v1, %v1931_v59  ;;  %vm3534_vm7 = vcmp.eq.f32.partialorder %v3533_v5, 8.507059e+37 }
 0x679   :  { %v3879_v27 = vld [vmem:[#allocation3 + $0x38] sm:$0xff]  ;;  %v2985_v49 = vmul.f32 %v7272_v61, %v2762_v26  ;;  %v2789_v61 = vor.u32 1.1754944e-38, %v2788_v3  ;;  %v2739_v1 = vadd.f32 %v4649_v44, %v2738_v32 }
 0x67a   :  { %4262 = vmatmul.msk.f32.gmra.mxu3 %vm67_vm0, %v3879_v27  ;;  %v3554_v27 = vsub.f32 1.0, %v3553_v52 }
 0x67b   :  { %2621 = vadd.xlane.f32.xlu1 %v7153_v40  ;;  %v3526_v40 = vsub.f32 1.0, %v3525_v23  ;;  %v2790_v28 = vsel %vm2787_vm3, %v2789_v61, %v2785_v22  ;;  %v2743_v14 = vsel %vm2742_vm2, %v4649_v44, %v2739_v1  ;;  %v7550_v23 = vpop.f32.mrf.mxu2  ;;  %vm3557_vm3 = vweird.f32 %v7398_v24 }
 0x67c   :  { %v2987_v18 = vmul.f32 %v2961_v63, %v2790_v28  ;;  %v2748_v10 = vsel %vm2745_vm11, %v2747_v0, %v2743_v14  ;;  %v3555_v42 = vmul.f32 %v4651_v12, %v3554_v27  ;;  %vm7557_vm5 = vmor %vm3557_vm3, %vm3558_vm14  ;;  %vm1970_vm11 = vcmp.eq.f32.partialorder %v1969_v57, 8.507059e+37 }
 0x67d   :  { %v3527_v33 = vmul.f32 %v7502_v43, %v3526_v40  ;;  %v2984_v29 = vmul.f32 %v7266_v17, %v2748_v10  ;;  %v3563_v17 = vand.u32 2147483648, %v7398_v24  ;;  %v3561_v40 = vand.u32 2147483647, %v7398_v24  ;;  %v2964_v24 = vpop.f32.mrf.mxu0 }
 0x67e   :  { %v3556_v26 = vadd.f32 %v4651_v12, %v3555_v42  ;;  %vm3571_vm14 = vweird.f32 %v7426_v55  ;;  %v3578_v0 = vor.u32 1.1754944e-38, %v3577_v54 }
 0x67f   :  { %v3528_v11 = vadd.f32 %v7502_v43, %v3527_v33  ;;  %v3564_v20 = vor.u32 1.1754944e-38, %v3563_v17 }
 0x680   :  { %v3560_v56 = vsel %vm7557_vm5, %v4651_v12, %v3556_v26  ;;  %vm3585_vm5 = vweird.f32 %v7433_v60 }
 0x681   :  { %v3532_v46 = vsel %vm3531_vm6, %v7502_v43, %v3528_v11  ;;  %v4653_v43 = vpop.eup %4652 }
 0x682   :  { %4263 = vmatmul.msk.f32.gmra.mxu3 %vm67_vm0, %v3880_v41  ;;  %v3537_v50 = vsel %vm3534_vm7, %v3536_v30, %v3532_v46  ;;  %v1961_v38 = vmul.f32 %v4653_v43, %v7450_v2  ;;  %vm3562_vm7 = vcmp.eq.f32.partialorder %v3561_v40, 8.507059e+37  ;;  %vm1966_vm9 = vweird.f32 %v4653_v43 }
 0x683   :  { %3026 = vrot.lane.b32.xlu2 %v2985_v49, %s4719_s12  ;;  %v3786_v16 = vmul.f32 %v3752_v47, %v3537_v50  ;;  %v3565_v61 = vsel %vm3562_vm7, %v3564_v20, %v3560_v56  ;;  %v3758_v59 = vpop.f32.mrf.mxu2  ;;  %vm1967_vm2 = vmor %vm1965_vm10, %vm1966_vm9 }
 0x684   :  { %v1962_v58 = vsub.f32 1.0, %v1961_v38  ;;  %v3589_v38 = vand.u32 2147483647, %v7433_v60 }
 0x686   :  { %v1963_v6 = vmul.f32 %v4653_v43, %v1962_v58  ;;  %vm3590_vm7 = vcmp.eq.f32.partialorder %v3589_v38, 8.507059e+37  ;;  %v1999_v38 = vand.u32 2147483648, %v7475_v62 }
 0x688   :  { %v1964_v11 = vadd.f32 %v4653_v43, %v1963_v6 }
 0x68a   :  { %v1968_v32 = vsel %vm1967_vm2, %v4653_v43, %v1964_v11 }
 0x68b   :  { %2219 = vrot.lane.b32.xlu0 %v2180_v39, %s4717_s9  ;;  %3030 = vrot.lane.b32.xlu2 %v2987_v18, %s4719_s12  ;;  %v3788_v39 = vmul.f32 %v3758_v59, %v3565_v61  ;;  %v3549_v59 = vand.u32 2147483648, %v7328_v31 }
 0x693   :  { %3825 = vrot.lane.b32.xlu0 %v3786_v16, %s4718_s10  ;;  %v2616_v35 = vpop.xlane.xlu1 %2615  ;;  %v3575_v16 = vand.u32 2147483647, %v7426_v55 }
 0x694   :  { %4654 = vrcp.f32 %v2616_v35  ;;  %2221 = vrot.lane.b32.xlu1 %v7046_v21, %s4717_s9  ;;  %v2802_v19 = vand.u32 2147483648, %v2616_v35  ;;  %v2800_v51 = vand.u32 2147483647, %v2616_v35  ;;  %vm2796_vm1 = vweird.f32 %v2616_v35 }
 0x695   :  { %4656 = vrcp.f32 %v7426_v55  ;;  %vm3576_vm3 = vcmp.eq.f32.partialorder %v3575_v16, 8.507059e+37 }
 0x696   :  { %4658 = vrcp.f32 %v7433_v60  ;;  %v2803_v41 = vor.u32 1.1754944e-38, %v2802_v19  ;;  %vm2801_vm6 = vcmp.eq.f32.partialorder %v2800_v51, 8.507059e+37  ;;  %v3824_v19 = vpop.permute.xlu2 %3823 }
 0x69a   :  { %v4655_v4 = vpop.eup %4654 }
 0x69b   :  { %v2792_v37 = vmul.f32 %v4655_v4, %v2616_v35  ;;  %vm2797_vm13 = vweird.f32 %v4655_v4  ;;  %v7552_v44 = vpop.eup %4656  ;;  %v7568_v22 = vpop.xlane.xlu1 %1814 }
 0x69c   :  { %3024 = vrot.lane.b32.xlu1 %v2984_v29, %s4719_s12  ;;  %vm2798_vm4 = vmor %vm2796_vm1, %vm2797_vm13  ;;  %v3567_v49 = vmul.f32 %v7552_v44, %v7426_v55  ;;  %v7570_v28 = vpop.xlane.xlu0 %3418  ;;  %v7573_v63 = vpop.eup %4658  ;;  %vm3572_vm13 = vweird.f32 %v7552_v44 }
 0x69d   :  { %v2793_v36 = vsub.f32 1.0, %v2792_v37  ;;  %4660 = vrcp.f32 %v7570_v28  ;;  %v3581_v18 = vmul.f32 %v7573_v63, %v7433_v60  ;;  %vm3573_vm1 = vmor %vm3571_vm14, %vm3572_vm13  ;;  %v3591_v37 = vand.u32 2147483648, %v7433_v60  ;;  %v8076_v60 = vld [vmem:[#allocation70_spill] sm:$0xff] }
 0x69e   :  { %v3568_v15 = vsub.f32 1.0, %v3567_v49  ;;  %4662 = vrcp.f32 %v7328_v31  ;;  %v3605_v49 = vand.u32 2147483648, %v7570_v28  ;;  %vm3599_vm10 = vweird.f32 %v7570_v28  ;;  %v7651_v54 = vpop.xlane.xlu2 %1816 }
 0x69f   :  { %v2794_v21 = vmul.f32 %v4655_v4, %v2793_v36  ;;  %v3582_v1 = vsub.f32 1.0, %v3581_v18  ;;  %v3603_v6 = vand.u32 2147483647, %v7570_v28  ;;  %vm3543_vm14 = vweird.f32 %v7328_v31 }
 0x6a0   :  { %v3569_v5 = vmul.f32 %v7552_v44, %v3568_v15 }
 0x6a1   :  { %v2795_v8 = vadd.f32 %v4655_v4, %v2794_v21  ;;  %v3583_v14 = vmul.f32 %v7573_v63, %v3582_v1  ;;  %vm3604_vm13 = vcmp.eq.f32.partialorder %v3603_v6, 8.507059e+37 }
 0x6a3   :  { %v2799_v45 = vsel %vm2798_vm4, %v4655_v4, %v2795_v8  ;;  %v7586_v50 = vpop.xlane.xlu1 %3420  ;;  %v7589_v12 = vpop.eup %4660  ;;  %vm3586_vm4 = vweird.f32 %v7573_v63 }
 0x6a4   :  { %2223 = vrot.lane.b32.xlu1 %v7127_v34, %s4717_s9  ;;  %v2804_v25 = vsel %vm2801_vm6, %v2803_v41, %v2799_v45  ;;  %v1971_v34 = vand.u32 2147483648, %v7450_v2  ;;  %v3570_v2 = vadd.f32 %v7552_v44, %v3569_v5  ;;  %4664 = vrcp.f32 %v7586_v50  ;;  %v7603_v10 = vpop.eup %4662  ;;  %vm3587_vm6 = vmor %vm3585_vm5, %vm3586_vm4 }
 0x6a5   :  { %v2988_v33 = vmul.f32 %v2964_v24, %v2804_v25  ;;  %v3595_v52 = vmul.f32 %v7589_v12, %v7570_v28  ;;  %v3539_v29 = vmul.f32 %v7603_v10, %v7328_v31  ;;  %4666 = vrcp.f32 %v7276_v9 }
 0x6a6   :  { %v1972_v46 = vor.u32 1.1754944e-38, %v1971_v34  ;;  %v3574_v35 = vsel %vm3573_vm1, %v7552_v44, %v3570_v2  ;;  %v3592_v44 = vor.u32 1.1754944e-38, %v3591_v37  ;;  %vm3600_vm9 = vweird.f32 %v7589_v12 }
 0x6a7   :  { %3032 = vrot.lane.b32.xlu2 %v2988_v33, %s4719_s12  ;;  %v3579_v55 = vsel %vm3576_vm3, %v3578_v0, %v3574_v35  ;;  %v3596_v43 = vsub.f32 1.0, %v3595_v52  ;;  %v3540_v51 = vsub.f32 1.0, %v3539_v29  ;;  %vm3601_vm2 = vmor %vm3599_vm10, %vm3600_vm9  ;;  %v3606_v33 = vor.u32 1.1754944e-38, %v3605_v49 }
 0x6a8   :  { %v1973_v47 = vsel %vm1970_vm11, %v1972_v46, %v1968_v32  ;;  %vm3544_vm11 = vweird.f32 %v7603_v10  ;;  %v3547_v28 = vand.u32 2147483647, %v7328_v31  ;;  %4668 = vrcp.f32 %v7475_v62 }
 0x6a9   :  { %v2183_v48 = vmul.f32 %v7026_v13, %v1973_v47  ;;  %v3584_v13 = vadd.f32 %v7573_v63, %v3583_v14  ;;  %v3597_v26 = vmul.f32 %v7589_v12, %v3596_v43  ;;  %v3541_v45 = vmul.f32 %v7603_v10, %v3540_v51  ;;  %vm3545_vm1 = vmor %vm3543_vm14, %vm3544_vm11 }
 0x6aa   :  { %v7608_v4 = vpop.eup %4664  ;;  %v3619_v18 = vand.u32 2147483648, %v7586_v50  ;;  %v3550_v5 = vor.u32 1.1754944e-38, %v3549_v59  ;;  %vm3613_vm4 = vweird.f32 %v7586_v50  ;;  %v3617_v31 = vand.u32 2147483647, %v7586_v50 }
 0x6ab   :  { %v3588_v21 = vsel %vm3587_vm6, %v7573_v63, %v3584_v13  ;;  %v3609_v58 = vmul.f32 %v7608_v4, %v7586_v50  ;;  %v3598_v3 = vadd.f32 %v7589_v12, %v3597_v26  ;;  %v3542_v25 = vadd.f32 %v7603_v10, %v3541_v45  ;;  %v4667_v61 = vpop.eup %4666  ;;  %v7662_v13 = vpop.permute.xlu2 %3022  ;;  %v8078_v45 = vld [vmem:[#allocation60_spill] sm:$0xff] }
 0x6ac   :  { %3829 = vrot.lane.b32.xlu1 %v3788_v39, %s4718_s10  ;;  %v3593_v8 = vsel %vm3590_vm7, %v3592_v44, %v3588_v21  ;;  %vm3614_vm3 = vweird.f32 %v7608_v4  ;;  %v1975_v39 = vmul.f32 %v4667_v61, %v7276_v9  ;;  %vm3548_vm5 = vcmp.eq.f32.partialorder %v3547_v28, 8.507059e+37  ;;  %v8077_v21 = vld [vmem:[#allocation55_spill] sm:$0xff] }
 0x6ad   :  { %v3610_v41 = vsub.f32 1.0, %v3609_v58  ;;  %v3602_v20 = vsel %vm3601_vm2, %v7589_v12, %v3598_v3  ;;  %v3546_v57 = vsel %vm3545_vm1, %v7603_v10, %v3542_v25  ;;  %vm3615_vm6 = vmor %vm3613_vm4, %vm3614_vm3  ;;  %v3620_v1 = vor.u32 1.1754944e-38, %v3619_v18 }
 0x6ae   :  { %v3607_v63 = vsel %vm3604_vm13, %v3606_v33, %v3602_v20  ;;  %v3551_v46 = vsel %vm3548_vm5, %v3550_v5, %v3546_v57  ;;  %v1976_v47 = vsub.f32 1.0, %v1975_v39  ;;  %v4669_v2 = vpop.eup %4668  ;;  %vm3618_vm7 = vcmp.eq.f32.partialorder %v3617_v31, 8.507059e+37 }
 0x6af   :  { %v2216_v30 = vpop.permute.xlu0 %2215  ;;  %v3611_v24 = vmul.f32 %v7608_v4, %v3610_v41  ;;  %v3787_v12 = vmul.f32 %v7550_v23, %v3551_v46  ;;  %4670 = vrcp.f32 %v7568_v22  ;;  %v1989_v35 = vmul.f32 %v4669_v2, %v7475_v62 }
 0x6b0   :  { %2259 = vst.msk [vmem:[#allocation3 + $0x58] sm:$0xff] %vm2253_vm15, %v2216_v30  ;;  %v1977_v50 = vmul.f32 %v4667_v61, %v1976_v47  ;;  %vm1980_vm9 = vweird.f32 %v4667_v61  ;;  %v1985_v23 = vand.u32 2147483648, %v7276_v9  ;;  %vm1979_vm10 = vweird.f32 %v7276_v9  ;;  %v8085_v47 = vld [vmem:[#allocation18_spill] sm:$0xff] }
 0x6b1   :  { %3062 = vst.msk [vmem:[#allocation3 + $0x58] sm:$0xff] %vm3056_vm8, %v7480_v7  ;;  %v3761_v7 = vpop.f32.mrf.mxu2  ;;  %v3612_v34 = vadd.f32 %v7608_v4, %v3611_v24  ;;  %v1990_v0 = vsub.f32 1.0, %v1989_v35  ;;  %v1983_v10 = vand.u32 2147483647, %v7276_v9  ;;  %4672 = vrcp.f32 %v7651_v54  ;;  %vm1981_vm2 = vmor %vm1979_vm10, %vm1980_vm9 }
 0x6b2   :  { %v3789_v42 = vmul.f32 %v3761_v7, %v3579_v55  ;;  %v1978_v52 = vadd.f32 %v4667_v61, %v1977_v50  ;;  %vm1994_vm13 = vweird.f32 %v4669_v2  ;;  %vm1993_vm14 = vweird.f32 %v7475_v62  ;;  %v2967_v50 = vpop.f32.mrf.mxu0 }
 0x6b3   :  { %v3616_v30 = vsel %vm3615_vm6, %v7608_v4, %v3612_v34  ;;  %v1991_v55 = vmul.f32 %v4669_v2, %v1990_v0  ;;  %v1986_v4 = vor.u32 1.1754944e-38, %v1985_v23  ;;  %vm1984_vm11 = vcmp.eq.f32.partialorder %v1983_v10, 8.507059e+37  ;;  %vm1995_vm1 = vmor %vm1993_vm14, %vm1994_vm13 }
 0x6b4   :  { %2225 = vrot.lane.b32.xlu1 %v2183_v48, %s4717_s9  ;;  %v3621_v16 = vsel %vm3618_vm7, %v3620_v1, %v3616_v30  ;;  %v1982_v43 = vsel %vm1981_vm2, %v4667_v61, %v1978_v52  ;;  %v2000_v44 = vor.u32 1.1754944e-38, %v1999_v38  ;;  %vm2007_vm5 = vweird.f32 %v7568_v22 }
 0x6b5   :  { %v4671_v7 = vpop.eup %4670  ;;  %v1987_v29 = vsel %vm1984_vm11, %v1986_v4, %v1982_v43  ;;  %v2011_v41 = vand.u32 2147483647, %v7568_v22  ;;  %v2025_v59 = vand.u32 2147483647, %v7651_v54  ;;  %v2027_v34 = vand.u32 2147483648, %v7651_v54 }
 0x6b6   :  { %vm2008_vm4 = vweird.f32 %v4671_v7  ;;  %vm2021_vm10 = vweird.f32 %v7651_v54 }
 0x6b7   :  { %v3822_v27 = vpop.permute.xlu0 %3821  ;;  %v7666_v37 = vpop.eup %4672  ;;  %vm7685_vm6 = vmor %vm2007_vm5, %vm2008_vm4  ;;  %vm2012_vm7 = vcmp.eq.f32.partialorder %v2011_v41, 8.507059e+37  ;;  %vm7715_vm13 = vcmp.eq.f32.partialorder %v2025_v59, 8.507059e+37 }
 0x6b8   :  { %3865 = vst.msk [vmem:[#allocation3 + $0x58] sm:$0xff] %vm3859_vm12, %v3822_v27  ;;  %v2003_v27 = vmul.f32 %v4671_v7, %v7568_v22  ;;  %vm2022_vm9 = vweird.f32 %v7666_v37 }
 0x6b9   :  { %v3764_v17 = vpop.f32.mrf.mxu2  ;;  %vm7711_vm11 = vmor %vm2021_vm10, %vm2022_vm9 }
 0x6ba   :  { %v3790_v56 = vmul.f32 %v3764_v17, %v3593_v8  ;;  %v2004_v9 = vsub.f32 1.0, %v2003_v27 }
 0x6bb   :  { %v3021_v36 = vpop.permute.xlu1 %3020 }
 0x6bc   :  { %3063 = vst.msk [vmem:[#allocation3 + $0x68] sm:$0xff] %vm3056_vm8, %v3021_v36  ;;  %3831 = vrot.lane.b32.xlu1 %v3789_v42, %s4718_s10  ;;  %v1992_v42 = vadd.f32 %v4669_v2, %v1991_v55  ;;  %v1997_v36 = vand.u32 2147483647, %v7475_v62  ;;  %v2005_v26 = vmul.f32 %v4671_v7, %v2004_v9 }
 0x6bd   :  { %3866 = vst.msk [vmem:[#allocation3 + $0x68] sm:$0xff] %vm3859_vm12, %v3824_v19  ;;  %1818 = vadd.xlane.f32.xlu0 %v8076_v60  ;;  %v2184_v19 = vmul.f32 %v8077_v21, %v1987_v29 }
 0x6be   :  { %v1996_v51 = vsel %vm1995_vm1, %v4669_v2, %v1992_v42  ;;  %vm1998_vm3 = vcmp.eq.f32.partialorder %v1997_v36, 8.507059e+37  ;;  %v2006_v8 = vadd.f32 %v4671_v7, %v2005_v26 }
 0x6bf   :  { %v3881_v40 = vld [vmem:[#allocation3 + $0x58] sm:$0xff]  ;;  %v2001_v62 = vsel %vm1998_vm3, %v2000_v44, %v1996_v51 }
 0x6c0   :  { %4264 = vmatmul.msk.f32.gmra.mxu3 %vm67_vm0, %v3881_v40  ;;  %v2013_v40 = vand.u32 2147483648, %v7568_v22  ;;  %v2185_v49 = vmul.f32 %v8078_v45, %v2001_v62  ;;  %v2010_v20 = vsel %vm7685_vm6, %v4671_v7, %v2006_v8  ;;  %v8088_v44 = vld [vmem:[#allocation26_spill] sm:$0xff] }
 0x6c1   :  { %v3767_v15 = vpop.f32.mrf.mxu2 }
 0x6c2   :  { %v3791_v32 = vmul.f32 %v3767_v15, %v3607_v63  ;;  %v2014_v33 = vor.u32 1.1754944e-38, %v2013_v40 }
 0x6c4   :  { %3833 = vrot.lane.b32.xlu1 %v3790_v56, %s4718_s10  ;;  %v3882_v11 = vld [vmem:[#allocation3 + $0x68] sm:$0xff]  ;;  %v2970_v56 = vpop.f32.mrf.mxu0 }
 0x6c8   :  { %4265 = vmatmul.msk.f32.gmra.mxu3 %vm67_vm0, %v3882_v11  ;;  %v2015_v11 = vsel %vm2012_vm7, %v2014_v33, %v2010_v20 }
 0x6c9   :  { %v3770_v48 = vpop.f32.mrf.mxu2  ;;  %v2186_v1 = vmul.f32 %v8085_v47, %v2015_v11 }
 0x6ca   :  { %v3792_v14 = vmul.f32 %v3770_v48, %v3621_v16  ;;  %v2028_v48 = vor.u32 1.1754944e-38, %v2027_v34 }
 0x6cc   :  { %3835 = vrot.lane.b32.xlu1 %v3791_v32, %s4718_s10 }
 0x6d1   :  { %3827 = vrot.lane.b32.xlu0 %v3787_v12, %s4718_s10  ;;  %v3773_v8 = vpop.f32.mrf.mxu2 }
 0x6d4   :  { %3837 = vrot.lane.b32.xlu1 %v3792_v14, %s4718_s10 }
 0x6d9   :  { %3028 = vrot.lane.b32.xlu0 %v7279_v53, %s4719_s12  ;;  %v2017_v53 = vmul.f32 %v7666_v37, %v7651_v54 }
 0x6db   :  { %v2018_v60 = vsub.f32 1.0, %v2017_v53 }
 0x6dd   :  { %v2019_v6 = vmul.f32 %v7666_v37, %v2018_v60 }
 0x6de   :  { %v7674_v58 = vpop.xlane.xlu2 %3424 }
 0x6df   :  { %v2020_v28 = vadd.f32 %v7666_v37, %v2019_v6  ;;  %vm3641_vm9 = vweird.f32 %v7674_v58  ;;  %v3645_v26 = vand.u32 2147483647, %v7674_v58  ;;  %v3647_v6 = vand.u32 2147483648, %v7674_v58 }
 0x6e1   :  { %2227 = vrot.lane.b32.xlu0 %v2184_v19, %s4717_s9  ;;  %v2024_v54 = vsel %vm7711_vm11, %v7666_v37, %v2020_v28 }
 0x6e2   :  { %v2618_v17 = vpop.xlane.xlu0 %2617  ;;  %v2029_v55 = vsel %vm7715_vm13, %v2028_v48, %v2024_v54 }
 0x6e3   :  { %4674 = vrcp.f32 %v2618_v17  ;;  %v2814_v57 = vand.u32 2147483647, %v2618_v17  ;;  %v2816_v18 = vand.u32 2147483648, %v2618_v17  ;;  %vm2810_vm14 = vweird.f32 %v2618_v17 }
 0x6e4   :  { %4676 = vrcp.f32 %v7674_v58 }
 0x6e5   :  { %vm2815_vm3 = vcmp.eq.f32.partialorder %v2814_v57, 8.507059e+37  ;;  %v2817_v14 = vor.u32 1.1754944e-38, %v2816_v18  ;;  %v2973_v18 = vpop.f32.mrf.mxu0 }
 0x6e6   :  { %v7679_v3 = vpop.xlane.xlu1 %2619 }
 0x6e7   :  { %4678 = vrcp.f32 %v7679_v3  ;;  %vm2824_vm5 = vweird.f32 %v7679_v3  ;;  %v2830_v23 = vand.u32 2147483648, %v7679_v3  ;;  %v2828_v43 = vand.u32 2147483647, %v7679_v3 }
 0x6e9   :  { %v4675_v24 = vpop.eup %4674  ;;  %2229 = vrot.lane.b32.xlu0 %v2185_v49, %s4717_s9  ;;  %v2831_v51 = vor.u32 1.1754944e-38, %v2830_v23  ;;  %vm2829_vm10 = vcmp.eq.f32.partialorder %v2828_v43, 8.507059e+37 }
 0x6ea   :  { %v7693_v25 = vpop.eup %4676  ;;  %v2806_v22 = vmul.f32 %v4675_v24, %v2618_v17  ;;  %v7695_v61 = vpop.xlane.xlu0 %3422  ;;  %vm2811_vm2 = vweird.f32 %v4675_v24  ;;  %v2187_v17 = vmul.f32 %v8088_v44, %v2029_v55  ;;  %v8091_v55 = vld [vmem:[#allocation47_spill] sm:$0xff] }
 0x6eb   :  { %4680 = vrcp.f32 %v7695_v61  ;;  %v3637_v39 = vmul.f32 %v7693_v25, %v7674_v58  ;;  %vm2812_vm1 = vmor %vm2810_vm14, %vm2811_vm2  ;;  %v3631_v38 = vand.u32 2147483647, %v7695_v61  ;;  %v3633_v36 = vand.u32 2147483648, %v7695_v61 }
 0x6ec   :  { %v2807_v15 = vsub.f32 1.0, %v2806_v22  ;;  %vm3627_vm2 = vweird.f32 %v7695_v61  ;;  %vm3642_vm11 = vweird.f32 %v7693_v25 }
 0x6ed   :  { %v7701_v63 = vpop.eup %4678  ;;  %v3638_v35 = vsub.f32 1.0, %v3637_v39  ;;  %vm3632_vm14 = vcmp.eq.f32.partialorder %v3631_v38, 8.507059e+37 }
 0x6ee   :  { %v2808_v5 = vmul.f32 %v4675_v24, %v2807_v15  ;;  %v2820_v31 = vmul.f32 %v7701_v63, %v7679_v3  ;;  %v7709_v32 = vpop.xlane.xlu1 %2621  ;;  %vm2825_vm4 = vweird.f32 %v7701_v63  ;;  %v3634_v3 = vor.u32 1.1754944e-38, %v3633_v36 }
 0x6ef   :  { %4682 = vrcp.f32 %v7709_v32  ;;  %v3639_v42 = vmul.f32 %v7693_v25, %v3638_v35  ;;  %vm7736_vm6 = vmor %vm2824_vm5, %vm2825_vm4 }
 0x6f0   :  { %v2809_v2 = vadd.f32 %v4675_v24, %v2808_v5  ;;  %v2821_v12 = vsub.f32 1.0, %v2820_v31  ;;  %vm7760_vm4 = vmor %vm3641_vm9, %vm3642_vm11  ;;  %v3776_v5 = vpop.f32.mrf.mxu2 }
 0x6f1   :  { %v4681_v16 = vpop.eup %4680  ;;  %2231 = vrot.lane.b32.xlu0 %v2186_v1, %s4717_s9  ;;  %v3640_v40 = vadd.f32 %v7693_v25, %v3639_v42  ;;  %v3027_v1 = vpop.permute.xlu2 %3026 }
 0x6f2   :  { %v2822_v52 = vmul.f32 %v7701_v63, %v2821_v12  ;;  %v3623_v0 = vmul.f32 %v4681_v16, %v7695_v61  ;;  %v2813_v7 = vsel %vm2812_vm1, %v4675_v24, %v2809_v2  ;;  %vm3628_vm7 = vweird.f32 %v4681_v16 }
 0x6f3   :  { %v2818_v10 = vsel %vm2815_vm3, %v2817_v14, %v2813_v7  ;;  %vm3629_vm13 = vmor %vm3627_vm2, %vm3628_vm7  ;;  %vm2838_vm3 = vweird.f32 %v7709_v32  ;;  %v2844_v24 = vand.u32 2147483648, %v7709_v32  ;;  %v2842_v61 = vand.u32 2147483647, %v7709_v32 }
 0x6f4   :  { %v2823_v27 = vadd.f32 %v7701_v63, %v2822_v52  ;;  %v3624_v4 = vsub.f32 1.0, %v3623_v0  ;;  %v2989_v29 = vmul.f32 %v2967_v50, %v2818_v10  ;;  %v3644_v58 = vsel %vm7760_vm4, %v7693_v25, %v3640_v40 }
 0x6f5   :  { %v4683_v37 = vpop.eup %4682  ;;  %v2845_v34 = vor.u32 1.1754944e-38, %v2844_v24  ;;  %vm2843_vm7 = vcmp.eq.f32.partialorder %v2842_v61, 8.507059e+37 }
 0x6f6   :  { %v3625_v21 = vmul.f32 %v4681_v16, %v3624_v4  ;;  %v2834_v19 = vmul.f32 %v4683_v37, %v7709_v32  ;;  %3034 = vrot.lane.b32.xlu2 %v2989_v29, %s4719_s12  ;;  %v2827_v53 = vsel %vm7736_vm6, %v7701_v63, %v2823_v27  ;;  %vm2839_vm1 = vweird.f32 %v4683_v37 }
 0x6f7   :  { %v2832_v41 = vsel %vm2829_vm10, %v2831_v51, %v2827_v53  ;;  %vm2840_vm5 = vmor %vm2838_vm3, %vm2839_vm1  ;;  %v3648_v63 = vor.u32 1.1754944e-38, %v3647_v6  ;;  %vm3646_vm6 = vcmp.eq.f32.partialorder %v3645_v26, 8.507059e+37 }
 0x6f8   :  { %v3626_v60 = vadd.f32 %v4681_v16, %v3625_v21  ;;  %v2835_v62 = vsub.f32 1.0, %v2834_v19  ;;  %v2990_v28 = vmul.f32 %v2970_v56, %v2832_v41 }
 0x6f9   :  { %2233 = vrot.lane.b32.xlu0 %v2187_v17, %s4717_s9  ;;  %v3649_v39 = vsel %vm3646_vm6, %v3648_v63, %v3644_v58  ;;  %v3031_v9 = vpop.permute.xlu2 %3030 }
 0x6fa   :  { %v2836_v45 = vmul.f32 %v4683_v37, %v2835_v62  ;;  %v3630_v49 = vsel %vm3629_vm13, %v4681_v16, %v3626_v60  ;;  %v3794_v31 = vmul.f32 %v3776_v5, %v3649_v39 }
 0x6fb   :  { %v3635_v20 = vsel %vm3632_vm14, %v3634_v3, %v3630_v49  ;;  %v3969_v49 = vpop.f32.mrf.mxu3 }
 0x6fc   :  { %v2837_v22 = vadd.f32 %v4683_v37, %v2836_v45  ;;  %v3793_v59 = vmul.f32 %v3773_v8, %v3635_v20 }
 0x6fd   :  { %v2220_v15 = vpop.permute.xlu0 %2219 }
 0x6fe   :  { %2261 = vst.msk [vmem:[#allocation3 + $0x78] sm:$0xff] %vm2253_vm15, %v2220_v15  ;;  %3839 = vrot.lane.b32.xlu1 %v3793_v59, %s4718_s10  ;;  %3036 = vrot.lane.b32.xlu2 %v2990_v28, %s4719_s12  ;;  %v2841_v11 = vsel %vm2840_vm5, %v4683_v37, %v2837_v22 }
 0x6ff   :  { %3064 = vst.msk [vmem:[#allocation3 + $0x78] sm:$0xff] %vm3056_vm8, %v7662_v13  ;;  %v2846_v57 = vsel %vm2843_vm7, %v2845_v34, %v2841_v11  ;;  %v4429_v11 = vld [vmem:[%s7839_s6] ss:$0 sm:$0xff]  ;;  %s4720_s6 = smov [#allocation4]  }
 0x700   :  { %v2991_v32 = vmul.f32 %v2973_v18, %v2846_v57 }
 0x701   :  { %v3033_v21 = vpop.permute.xlu2 %3032 }
 0x703   :  { %v3972_v56 = vpop.f32.mrf.mxu3 }
 0x705   :  { %v3826_v46 = vpop.permute.xlu0 %3825 }
 0x706   :  { %3867 = vst.msk [vmem:[#allocation3 + $0x78] sm:$0xff] %vm3859_vm12, %v3826_v46  ;;  %v2222_v30 = vpop.permute.xlu1 %2221  ;;  %3841 = vrot.lane.b32.xlu1 %v3794_v31, %s4718_s10  ;;  %3038 = vrot.lane.b32.xlu2 %v2991_v32, %s4719_s12 }
 0x707   :  { %2262 = vst.msk [vmem:[#allocation3 + $0x88] sm:$0xff] %vm2253_vm15, %v2222_v30 }
 0x70b   :  { %v3975_v6 = vpop.f32.mrf.mxu3 }
 0x70d   :  { %v3883_v25 = vld [vmem:[#allocation3 + $0x78] sm:$0xff] }
 0x70e   :  { %4266 = vmatmul.msk.f32.gmra.mxu3 %vm67_vm0, %v3883_v25  ;;  %v3025_v13 = vpop.permute.xlu1 %3024 }
 0x70f   :  { %3065 = vst.msk [vmem:[#allocation3 + $0x88] sm:$0xff] %vm3056_vm8, %v3025_v13 }
 0x713   :  { %v3978_v24 = vpop.f32.mrf.mxu3 }
 0x716   :  { %v2224_v47 = vpop.permute.xlu1 %2223 }
 0x717   :  { %2263 = vst.msk [vmem:[#allocation3 + $0x98] sm:$0xff] %vm2253_vm15, %v2224_v47 }
 0x718   :  { %3066 = vst.msk [vmem:[#allocation3 + $0x98] sm:$0xff] %vm3056_vm8, %v3027_v1 }
 0x71b   :  { %v3981_v20 = vpop.f32.mrf.mxu3 }
 0x71e   :  { %v3830_v2 = vpop.permute.xlu1 %3829 }
 0x71f   :  { %3869 = vst.msk [vmem:[#allocation3 + $0x98] sm:$0xff] %vm3859_vm12, %v3830_v2  ;;  %v3973_v2 = vadd.f32 %v4429_v11, %v3972_v56 }
 0x726   :  { %v2226_v12 = vpop.permute.xlu1 %2225  ;;  %v3885_v36 = vld [vmem:[#allocation3 + $0x98] sm:$0xff] }
 0x727   :  { %2264 = vst.msk [vmem:[#allocation3 + $0xa8] sm:$0xff] %vm2253_vm15, %v2226_v12 }
 0x72e   :  { %v3832_v4 = vpop.permute.xlu1 %3831 }
 0x730   :  { %v1819_v54 = vpop.xlane.xlu0 %1818 }
 0x731   :  { %4684 = vrcp.f32 %v1819_v54  ;;  %v2041_v35 = vand.u32 2147483648, %v1819_v54  ;;  %v2039_v52 = vand.u32 2147483647, %v1819_v54  ;;  %vm2035_vm10 = vweird.f32 %v1819_v54 }
 0x733   :  { %v2042_v7 = vor.u32 1.1754944e-38, %v2041_v35  ;;  %vm2040_vm11 = vcmp.eq.f32.partialorder %v2039_v52, 8.507059e+37  ;;  %v3982_v52 = vadd.f32 %v4429_v11, %v3981_v20 }
 0x736   :  { %v3834_v42 = vpop.permute.xlu1 %3833 }
 0x737   :  { %v4685_v16 = vpop.eup %4684 }
 0x738   :  { %v2031_v50 = vmul.f32 %v4685_v16, %v1819_v54  ;;  %vm2036_vm9 = vweird.f32 %v4685_v16 }
 0x739   :  { %vm2037_vm2 = vmor %vm2035_vm10, %vm2036_vm9 }
 0x73a   :  { %v2032_v48 = vsub.f32 1.0, %v2031_v50 }
 0x73c   :  { %v2033_v14 = vmul.f32 %v4685_v16, %v2032_v48 }
 0x73e   :  { %v2034_v0 = vadd.f32 %v4685_v16, %v2033_v14  ;;  %v3836_v19 = vpop.permute.xlu1 %3835 }
 0x740   :  { %v2038_v23 = vsel %vm2037_vm2, %v4685_v16, %v2034_v0  ;;  %v3970_v16 = vadd.f32 %v4429_v11, %v3969_v49 }
 0x741   :  { %v2043_v10 = vsel %vm2040_vm11, %v2042_v7, %v2038_v23  ;;  %v3976_v23 = vadd.f32 %v4429_v11, %v3975_v6 }
 0x742   :  { %v2188_v27 = vmul.f32 %v8091_v55, %v2043_v10 }
 0x743   :  { %v3828_v43 = vpop.permute.xlu0 %3827  ;;  %v3984_v33 = vpop.f32.mrf.mxu3 }
 0x744   :  { %3868 = vst.msk [vmem:[#allocation3 + $0x88] sm:$0xff] %vm3859_vm12, %v3828_v43  ;;  %2235 = vrot.lane.b32.xlu0 %v2188_v27, %s4717_s9  ;;  %v3979_v27 = vadd.f32 %v4429_v11, %v3978_v24 }
 0x746   :  { %v3838_v60 = vpop.permute.xlu1 %3837 }
 0x74b   :  { %v3029_v29 = vpop.permute.xlu0 %3028  ;;  %v3884_v37 = vld [vmem:[#allocation3 + $0x88] sm:$0xff]  ;;  %v3987_v28 = vpop.f32.mrf.mxu3 }
 0x74c   :  { %3067 = vst.msk [vmem:[#allocation3 + $0xa8] sm:$0xff] %vm3056_vm8, %v3029_v29  ;;  %4267 = vmatmul.msk.f32.gmra.mxu3 %vm67_vm0, %v3884_v37  ;;  %v3985_v29 = vadd.f32 %v4429_v11, %v3984_v33 }
 0x74d   :  { %3870 = vst.msk [vmem:[#allocation3 + $0xa8] sm:$0xff] %vm3859_vm12, %v3832_v4 }
 0x750   :  { %v3035_v51 = vpop.permute.xlu2 %3034 }
 0x753   :  { %v2228_v38 = vpop.permute.xlu0 %2227 }
 0x754   :  { %2265 = vst.msk [vmem:[#allocation3 + $0xb8] sm:$0xff] %vm2253_vm15, %v2228_v38  ;;  %4268 = vmatmul.msk.f32.gmra.mxu3 %vm67_vm0, %v3885_v36  ;;  %v3886_v26 = vld [vmem:[#allocation3 + $0xa8] sm:$0xff] }
 0x755   :  { %3068 = vst.msk [vmem:[#allocation3 + $0xb8] sm:$0xff] %vm3056_vm8, %v3031_v9  ;;  %v3988_v9 = vadd.f32 %v4429_v11, %v3987_v28 }
 0x756   :  { %3871 = vst.msk [vmem:[#allocation3 + $0xb8] sm:$0xff] %vm3859_vm12, %v3834_v42 }
 0x758   :  { %v3037_v40 = vpop.permute.xlu2 %3036 }
 0x75b   :  { %v2230_v53 = vpop.permute.xlu0 %2229 }
 0x75c   :  { %2266 = vst.msk [vmem:[#allocation3 + $0xc8] sm:$0xff] %vm2253_vm15, %v2230_v53  ;;  %4269 = vmatmul.msk.f32.gmra.mxu3 %vm67_vm0, %v3886_v26 }
 0x75d   :  { %3069 = vst.msk [vmem:[#allocation3 + $0xc8] sm:$0xff] %vm3056_vm8, %v3033_v21  ;;  %v3887_v17 = vld [vmem:[#allocation3 + $0xb8] sm:$0xff] }
 0x75e   :  { %3872 = vst.msk [vmem:[#allocation3 + $0xc8] sm:$0xff] %vm3859_vm12, %v3836_v19 }
 0x760   :  { %v3039_v61 = vpop.permute.xlu2 %3038 }
 0x763   :  { %v2232_v44 = vpop.permute.xlu0 %2231 }
 0x764   :  { %2267 = vst.msk [vmem:[#allocation3 + $0xd8] sm:$0xff] %vm2253_vm15, %v2232_v44  ;;  %4270 = vmatmul.msk.f32.gmra.mxu3 %vm67_vm0, %v3887_v17 }
 0x765   :  { %3070 = vst.msk [vmem:[#allocation3 + $0xd8] sm:$0xff] %vm3056_vm8, %v3035_v51  ;;  %v3888_v8 = vld [vmem:[#allocation3 + $0xc8] sm:$0xff] }
 0x766   :  { %3873 = vst.msk [vmem:[#allocation3 + $0xd8] sm:$0xff] %vm3859_vm12, %v3838_v60 }
 0x76b   :  { %v2234_v62 = vpop.permute.xlu0 %2233 }
 0x76c   :  { %2268 = vst.msk [vmem:[#allocation3 + $0xe8] sm:$0xff] %vm2253_vm15, %v2234_v62  ;;  %4271 = vmatmul.msk.f32.gmra.mxu3 %vm67_vm0, %v3888_v8 }
 0x76d   :  { %3071 = vst.msk [vmem:[#allocation3 + $0xe8] sm:$0xff] %vm3056_vm8, %v3037_v40  ;;  %v3889_v41 = vld [vmem:[#allocation3 + $0xd8] sm:$0xff] }
 0x770   :  { %v3840_v3 = vpop.permute.xlu1 %3839 }
 0x771   :  { %3874 = vst.msk [vmem:[#allocation3 + $0xe8] sm:$0xff] %vm3859_vm12, %v3840_v3 }
 0x774   :  { %4272 = vmatmul.msk.f32.gmra.mxu3 %vm67_vm0, %v3889_v41 }
 0x778   :  { %v3890_v45 = vld [vmem:[#allocation3 + $0xe8] sm:$0xff]  ;;  %v3842_v59 = vpop.permute.xlu1 %3841 }
 0x77c   :  { %4273 = vmatmul.msk.f32.gmra.mxu3 %vm67_vm0, %v3890_v45 }
 0x791   :  { %v3990_v58 = vpop.f32.mrf.mxu3 }
 0x792   :  { %v3991_v21 = vadd.f32 %v4429_v11, %v3990_v58 }
 0x7b6   :  { %v2236_v22 = vpop.permute.xlu0 %2235 }
 0x7b7   :  { %2269 = vst.msk [vmem:[#allocation3 + $0xf8] sm:$0xff] %vm2253_vm15, %v2236_v22 }
 0x7b8   :  { %3072 = vst.msk [vmem:[#allocation3 + $0xf8] sm:$0xff] %vm3056_vm8, %v3039_v61 }
 0x7b9   :  { %3875 = vst.msk [vmem:[#allocation3 + $0xf8] sm:$0xff] %vm3859_vm12, %v3842_v59 }
 0x7c0   :  { %v3891_v15 = vld [vmem:[#allocation3 + $0xf8] sm:$0xff] }
 0x7c1   :  { %4274 = vmatmul.msk.f32.gmra.mxu3 %vm67_vm0, %v3891_v15 }
 0x7cf   :  { %v3993_v63 = vpop.f32.mrf.mxu3 }
 0x7d0   :  { %v3994_v34 = vadd.f32 %v4429_v11, %v3993_v63 }
 0x7d2   :  { %4025 = vrot.lane.b32.xlu0 %v3994_v34, %s4713_s11 }
 0x7d7   :  { %v3996_v39 = vpop.f32.mrf.mxu3 }
 0x7d8   :  { %v3997_v57 = vadd.f32 %v4429_v11, %v3996_v39 }
 0x7da   :  { %4027 = vrot.lane.b32.xlu2 %v3997_v57, %s4713_s11 }
 0x7df   :  { %v3999_v18 = vpop.f32.mrf.mxu3 }
 0x7e0   :  { %v4000_v5 = vadd.f32 %v4429_v11, %v3999_v18 }
 0x7e2   :  { %4029 = vrot.lane.b32.xlu1 %v4000_v5, %s4713_s11 }
 0x7e7   :  { %v4002_v31 = vpop.f32.mrf.mxu3 }
 0x7e8   :  { %v4003_v32 = vadd.f32 %v4429_v11, %v4002_v31 }
 0x7ea   :  { %4031 = vrot.lane.b32.xlu0 %v4003_v32, %s4713_s11 }
 0x7ef   :  { %v4005_v46 = vpop.f32.mrf.mxu3 }
 0x7f0   :  { %v4006_v30 = vadd.f32 %v4429_v11, %v4005_v46 }
 0x7f2   :  { %4033 = vrot.lane.b32.xlu2 %v4006_v30, %s4713_s11 }
 0x7f7   :  { %v4008_v25 = vpop.f32.mrf.mxu3 }
 0x7f8   :  { %v4009_v13 = vadd.f32 %v4429_v11, %v4008_v25 }
 0x7fa   :  { %4035 = vrot.lane.b32.xlu1 %v4009_v13, %s4713_s11 }
 0x7ff   :  { %v4011_v47 = vpop.f32.mrf.mxu3 }
 0x800   :  { %v4012_v1 = vadd.f32 %v4429_v11, %v4011_v47 }
 0x802   :  { %4037 = vrot.lane.b32.xlu0 %v4012_v1, %s4713_s11 }
 0x834   :  { %v4028_v12 = vpop.permute.xlu2 %4027 }
 0x835   :  { %v4050_v54 = vsel %vm67_vm0, %v3973_v2, %v4028_v12 }
 0x836   :  { %4058 = vst [vmem:[#allocation4 + $0x8] sm:$0xff] %v4050_v54 }
 0x844   :  { %v4026_v50 = vpop.permute.xlu0 %4025  ;;  %v4014_v48 = vpop.f32.mrf.mxu3 }
 0x845   :  { %v4049_v35 = vsel %vm67_vm0, %v3970_v16, %v4026_v50  ;;  %v4015_v14 = vadd.f32 %v4429_v11, %v4014_v48 }
 0x846   :  { %4057 = vst [vmem:[#allocation4] sm:$0xff] %v4049_v35 }
 0x847   :  { %4039 = vrot.lane.b32.xlu2 %v4015_v14, %s4713_s11  ;;  %s4069_s11 = sshll.u32 %s4720_s6, 4  ;;  %s4070_s11 = int_to_ptr.vmem [resolvable:$true] %s4069_s11 }
 0x84c   :  { %v4034_v0 = vpop.permute.xlu2 %4033 }
 0x84d   :  { %v4053_v7 = vsel %vm67_vm0, %v3982_v52, %v4034_v0 }
 0x84e   :  { %4061 = vst [vmem:[#allocation4 + $0x20] sm:$0xff] %v4053_v7 }
 0x854   :  { %v4030_v10 = vpop.permute.xlu1 %4029 }
 0x855   :  { %v4051_v55 = vsel %vm67_vm0, %v3976_v23, %v4030_v10 }
 0x856   :  { %4059 = vst [vmem:[#allocation4 + $0x10] sm:$0xff] %v4051_v55 }
 0x85c   :  { %v4032_v43 = vpop.permute.xlu0 %4031 }
 0x85d   :  { %v4052_v4 = vsel %vm67_vm0, %v3979_v27, %v4032_v43 }
 0x85e   :  { %4060 = vst [vmem:[#allocation4 + $0x18] sm:$0xff] %v4052_v4 }
 0x86c   :  { %v4036_v37 = vpop.permute.xlu1 %4035 }
 0x86d   :  { %v4054_v42 = vsel %vm67_vm0, %v3985_v29, %v4036_v37 }
 0x86e   :  { %4062 = vst [vmem:[#allocation4 + $0x28] sm:$0xff] %v4054_v42 }
 0x874   :  { %v4038_v38 = vpop.permute.xlu0 %4037 }
 0x875   :  { %v4055_v36 = vsel %vm67_vm0, %v3988_v9, %v4038_v38 }
 0x876   :  { %4063 = vst [vmem:[#allocation4 + $0x30] sm:$0xff] %v4055_v36 }
 0x8a1   :  { %v4040_v19 = vpop.permute.xlu2 %4039 }
 0x8a2   :  { %v4056_v53 = vsel %vm67_vm0, %v3991_v21, %v4040_v19 }
 0x8a3   :  { %4064 = vst [vmem:[#allocation4 + $0x38] sm:$0xff] %v4056_v53 }
 0x8a4   :  { %4077 = dma.vmem_to_hbm [thread:$0]  %s4070_s11, 1024, %s4072_s15, [#allocation5], %s4721_s1, %s4721_s1, %s4722_s16  }
 0x8a5   :  { %4711 = dma.done.wait [#allocation5], 1024  }
 0x8a6   :  { %4712 = vsyncadd [#allocation5], 4294966272 }
 0x8a7   :  { %4082 = vsyncpa [#allocation5], 1 }

</bundles_post_ra>
